<compile_context>
chip_gen: v7x
topology: tpu7x:2x2x1
jax: 0.10.0
libtpu: 0.0.40
codegen_flags: <defaults>
</compile_context>

<pallas_src>
import functools

import jax
import jax.numpy as jnp
from jax.experimental import pallas as pl
from jax.experimental.pallas import tpu as pltpu


_BATCH_TILE = 256  # >=128 (v5e) / >=256 (v6e, v7x) MXU rows per pass


def _round_up(x, m):
    return (x + m - 1) // m * m


# ----------------------------------------------------------------------------
# Fused 4-layer MLP kernel body (one batch tile per grid step, weights
# resident in VMEM across grid steps via constant-index BlockSpecs).
# ----------------------------------------------------------------------------
def _encoder_kernel(x_ref,
                    w1_ref, w2_ref, w3_ref, w4_ref,
                    b1_ref, b2_ref, b3_ref, b4_ref,
                    o_ref):
    # x_ref is already bf16 (cast fused into the wrapper-side pad).
    h = jnp.dot(x_ref[...], w1_ref[...],
                preferred_element_type=jnp.float32) + b1_ref[...]
    h = jnp.maximum(h, 0.0)

    h = jnp.dot(h.astype(jnp.bfloat16), w2_ref[...],
                preferred_element_type=jnp.float32) + b2_ref[...]
    h = jnp.maximum(h, 0.0)

    h = jnp.dot(h.astype(jnp.bfloat16), w3_ref[...],
                preferred_element_type=jnp.float32) + b3_ref[...]
    h = jnp.maximum(h, 0.0)

    y = jnp.dot(h.astype(jnp.bfloat16), w4_ref[...],
                preferred_element_type=jnp.float32) + b4_ref[...]
    o_ref[...] = y.astype(o_ref.dtype)


@functools.partial(jax.jit, static_argnames=("feature_dim",))
def encoder_forward(params, x, *, feature_dim):
    """Encoder.forward: one gridded Pallas call for the whole 4-layer MLP."""
    w1, w2, w3, w4 = params["w1"], params["w2"], params["w3"], params["w4"]
    b1, b2, b3, b4 = params["b1"], params["b2"], params["b3"], params["b4"]

    B, in_dim = x.shape
    p_in = w1.shape[0]
    p_out = w4.shape[1]

    # Batch tiling: up to _BATCH_TILE rows per grid step (8-row granularity
    # for tiny batches so the demo still works).
    b_tile = min(_round_up(max(B, 8), 8), _BATCH_TILE)
    B_pad = _round_up(max(B, 8), b_tile)
    n_tiles = B_pad // b_tile

    # Pad + cast in one op: kernel input is already bf16 (halves input DMA,
    # no separate f32 round trip inside the kernel).
    x_p = (jnp.zeros((B_pad, p_in), jnp.bfloat16)
           .at[:B, :in_dim].set(x.astype(jnp.bfloat16)))

    flops = 2 * B_pad * (w1.shape[0] * w1.shape[1]
                         + w2.shape[0] * w2.shape[1]
                         + w3.shape[0] * w3.shape[1]
                         + w4.shape[0] * w4.shape[1])
    bytes_accessed = (sum(int(w.size) * 2 for w in (w1, w2, w3, w4))  # bf16, once
                      + sum(int(b.size) * 4 for b in (b1, b2, b3, b4))
                      + int(x_p.size) * 2                             # bf16 input
                      + B_pad * p_out * 4)                            # f32 output

    grid_spec = pltpu.PrefetchScalarGridSpec(
        num_scalar_prefetch=0,
        grid=(n_tiles,),
        in_specs=[
            # x: one batch tile per grid step (default double-buffered).
            pl.BlockSpec((b_tile, p_in), lambda i: (i, 0)),
            # Weights: full array, constant block index -> fetched once,
            # resident in VMEM across all grid steps.
            pl.BlockSpec(w1.shape, lambda i: (0, 0)),
            pl.BlockSpec(w2.shape, lambda i: (0, 0)),
            pl.BlockSpec(w3.shape, lambda i: (0, 0)),
            pl.BlockSpec(w4.shape, lambda i: (0, 0)),
            # Biases (tiny), also resident.
            pl.BlockSpec(b1.shape, lambda i: (0, 0)),
            pl.BlockSpec(b2.shape, lambda i: (0, 0)),
            pl.BlockSpec(b3.shape, lambda i: (0, 0)),
            pl.BlockSpec(b4.shape, lambda i: (0, 0)),
        ],
        out_specs=pl.BlockSpec((b_tile, p_out), lambda i: (i, 0)),
    )

    out = pl.pallas_call(
        _encoder_kernel,
        out_shape=jax.ShapeDtypeStruct((B_pad, p_out), jnp.float32),
        grid_spec=grid_spec,
        compiler_params=pltpu.CompilerParams(
            # Batch tiles are independent -> shard across TCs on v7x.
            dimension_semantics=("parallel",),
            # Sized against v7x's 64 MiB/TC with headroom (usage is ~10 MB).
            vmem_limit_bytes=48 * 1024 * 1024),
        cost_estimate=pl.CostEstimate(flops=flops, transcendentals=0,
                                      bytes_accessed=bytes_accessed),
    )(x_p, w1, w2, w3, w4, b1, b2, b3, b4)

    return out[:B, :feature_dim]


# ----------------------------------------------------------------------------
# Parameter construction (PyTorch-style uniform init), padded + bf16 weights
# ----------------------------------------------------------------------------
def init_encoder_params(key, input_dim, feature_dim):
    dims = [input_dim, 500, 500, 2000, feature_dim]
    pdims = [_round_up(input_dim, 128), 512, 512, 2048,
             _round_up(feature_dim, 128)]
    params = {}
    for i in range(4):
        key, kw, kb = jax.random.split(key, 3)
        fan_in, fan_out = dims[i], dims[i + 1]
        bound = 1.0 / (fan_in ** 0.5)
        w = jax.random.uniform(kw, (fan_in, fan_out), jnp.float32, -bound, bound)
        b = jax.random.uniform(kb, (fan_out,), jnp.float32, -bound, bound)
        # Zero-pad to (8,128)-friendly sizes; padding is mathematically inert.
        w_p = (jnp.zeros((pdims[i], pdims[i + 1]), jnp.bfloat16)
               .at[:fan_in, :fan_out].set(w.astype(jnp.bfloat16)))
        b_p = (jnp.zeros((1, pdims[i + 1]), jnp.float32)
               .at[0, :fan_out].set(b))
        params[f"w{i + 1}"] = w_p
        params[f"b{i + 1}"] = b_p
    return params


# Pure-JAX reference using the exact same padded bf16 weights (for checking).
def reference_forward(params, x, feature_dim):
    p_in = params["w1"].shape[0]
    h = jnp.pad(x, ((0, 0), (0, p_in - x.shape[1])))
    for i in range(1, 5):
        w, b = params[f"w{i}"], params[f"b{i}"]
        h = jnp.dot(h.astype(jnp.bfloat16), w,
                    preferred_element_type=jnp.float32) + b
        if i < 4:
            h = jnp.maximum(h, 0.0)
    return h[:, :feature_dim]


# ----------------------------------------------------------------------------
# Demo
# ----------------------------------------------------------------------------
if __name__ == "__main__":
    input_dim = 64
    feature_dim = 32

    key = jax.random.PRNGKey(0)
    key, kp = jax.random.split(key)
    params = init_encoder_params(kp, input_dim, feature_dim)

    # batch=8 exercises the single-tile path; batch=520 exercises the
    # multi-step batch grid (tile=256, 3 grid steps) with resident weights.
    for batch in (8, 520):
        key, kx = jax.random.split(key)
        x = jax.random.uniform(kx, (batch, input_dim), jnp.float32)

        y = encoder_forward(params, x, feature_dim=feature_dim)
        jax.block_until_ready(y)

        y_ref = reference_forward(params, x, feature_dim)
        assert y.shape == (batch, feature_dim), y.shape
        assert jnp.allclose(y, y_ref, atol=1e-2, rtol=1e-2), \
            float(jnp.max(jnp.abs(y - y_ref)))

    # TODO(synk): Encoder.forward2 (fc head + torch.distributions.Normal) is a
    # separate method, not part of forward(); not implemented here.
    print("KERNEL_OK")
</pallas_src>

<mosaic_0001>
module attributes {stable_mosaic.version = 11 : i64} {
  func.func @_encoder_kernel(%arg0: i32, %arg1: memref<8x128xbf16, #tpu.memory_space<vmem>>, %arg2: memref<128x512xbf16, #tpu.memory_space<vmem>>, %arg3: memref<512x512xbf16, #tpu.memory_space<vmem>>, %arg4: memref<512x2048xbf16, #tpu.memory_space<vmem>>, %arg5: memref<2048x128xbf16, #tpu.memory_space<vmem>>, %arg6: memref<1x512xf32, #tpu.memory_space<vmem>>, %arg7: memref<1x512xf32, #tpu.memory_space<vmem>>, %arg8: memref<1x2048xf32, #tpu.memory_space<vmem>>, %arg9: memref<1x128xf32, #tpu.memory_space<vmem>>, %arg10: memref<8x128xf32, #tpu.memory_space<vmem>>) attributes {dimension_semantics = [#tpu.dimension_semantics<parallel>], iteration_bounds = array<i64: 1>, scalar_prefetch = 0 : i64, scratch_operands = 0 : i64, tpu.core_type = #tpu.core_type<tc>, window_params = [{transform_indices = @transform_0, window_bounds = array<i64: 8, 128>}, {pipeline_mode = #tpu.pipeline_mode<synchronous>, transform_indices = @transform_1, window_bounds = array<i64: 128, 512>}, {pipeline_mode = #tpu.pipeline_mode<synchronous>, transform_indices = @transform_2, window_bounds = array<i64: 512, 512>}, {pipeline_mode = #tpu.pipeline_mode<synchronous>, transform_indices = @transform_3, window_bounds = array<i64: 512, 2048>}, {pipeline_mode = #tpu.pipeline_mode<synchronous>, transform_indices = @transform_4, window_bounds = array<i64: 2048, 128>}, {pipeline_mode = #tpu.pipeline_mode<synchronous>, transform_indices = @transform_5, window_bounds = array<i64: 1, 512>}, {pipeline_mode = #tpu.pipeline_mode<synchronous>, transform_indices = @transform_6, window_bounds = array<i64: 1, 512>}, {pipeline_mode = #tpu.pipeline_mode<synchronous>, transform_indices = @transform_7, window_bounds = array<i64: 1, 2048>}, {pipeline_mode = #tpu.pipeline_mode<synchronous>, transform_indices = @transform_8, window_bounds = array<i64: 1, 128>}, {transform_indices = @transform_9, window_bounds = array<i64: 8, 128>}]} {
    %c0 = arith.constant 0 : index
    %c0_0 = arith.constant 0 : index
    %0 = vector.load %arg1[%c0, %c0_0] : memref<8x128xbf16, #tpu.memory_space<vmem>>, vector<8x128xbf16>
    %c0_1 = arith.constant 0 : index
    %c0_2 = arith.constant 0 : index
    %1 = vector.load %arg2[%c0_1, %c0_2] : memref<128x512xbf16, #tpu.memory_space<vmem>>, vector<128x512xbf16>
    %cst = arith.constant dense<0.000000e+00> : vector<8x512xf32>
    %2 = tpu.matmul %0, %1, %cst {dimension_numbers = #tpu.dot_dimension_numbers<[1], [0], [0], [1], [0, 0, 1, 1], [], []>} : vector<8x128xbf16>, vector<128x512xbf16>, vector<8x512xf32> -> vector<8x512xf32>
    %c0_3 = arith.constant 0 : index
    %c0_4 = arith.constant 0 : index
    %3 = vector.load %arg6[%c0_3, %c0_4] : memref<1x512xf32, #tpu.memory_space<vmem>>, vector<1x512xf32>
    %4 = vector.broadcast %3 : vector<1x512xf32> to vector<8x512xf32>
    %5 = arith.addf %2, %4 : vector<8x512xf32>
    %cst_5 = arith.constant 0.000000e+00 : f32
    %6 = vector.broadcast %cst_5 : f32 to vector<8x512xf32>
    %7 = arith.maximumf %5, %6 : vector<8x512xf32>
    %8 = arith.truncf %7 : vector<8x512xf32> to vector<8x512xbf16>
    %c0_6 = arith.constant 0 : index
    %c0_7 = arith.constant 0 : index
    %9 = vector.load %arg3[%c0_6, %c0_7] : memref<512x512xbf16, #tpu.memory_space<vmem>>, vector<512x512xbf16>
    %cst_8 = arith.constant dense<0.000000e+00> : vector<8x512xf32>
    %10 = tpu.matmul %8, %9, %cst_8 {dimension_numbers = #tpu.dot_dimension_numbers<[1], [0], [0], [1], [0, 0, 1, 1], [], []>} : vector<8x512xbf16>, vector<512x512xbf16>, vector<8x512xf32> -> vector<8x512xf32>
    %c0_9 = arith.constant 0 : index
    %c0_10 = arith.constant 0 : index
    %11 = vector.load %arg7[%c0_9, %c0_10] : memref<1x512xf32, #tpu.memory_space<vmem>>, vector<1x512xf32>
    %12 = vector.broadcast %11 : vector<1x512xf32> to vector<8x512xf32>
    %13 = arith.addf %10, %12 : vector<8x512xf32>
    %cst_11 = arith.constant 0.000000e+00 : f32
    %14 = vector.broadcast %cst_11 : f32 to vector<8x512xf32>
    %15 = arith.maximumf %13, %14 : vector<8x512xf32>
    %16 = arith.truncf %15 : vector<8x512xf32> to vector<8x512xbf16>
    %c0_12 = arith.constant 0 : index
    %c0_13 = arith.constant 0 : index
    %17 = vector.load %arg4[%c0_12, %c0_13] : memref<512x2048xbf16, #tpu.memory_space<vmem>>, vector<512x2048xbf16>
    %cst_14 = arith.constant dense<0.000000e+00> : vector<8x2048xf32>
    %18 = tpu.matmul %16, %17, %cst_14 {dimension_numbers = #tpu.dot_dimension_numbers<[1], [0], [0], [1], [0, 0, 1, 1], [], []>} : vector<8x512xbf16>, vector<512x2048xbf16>, vector<8x2048xf32> -> vector<8x2048xf32>
    %c0_15 = arith.constant 0 : index
    %c0_16 = arith.constant 0 : index
    %19 = vector.load %arg8[%c0_15, %c0_16] : memref<1x2048xf32, #tpu.memory_space<vmem>>, vector<1x2048xf32>
    %20 = vector.broadcast %19 : vector<1x2048xf32> to vector<8x2048xf32>
    %21 = arith.addf %18, %20 : vector<8x2048xf32>
    %cst_17 = arith.constant 0.000000e+00 : f32
    %22 = vector.broadcast %cst_17 : f32 to vector<8x2048xf32>
    %23 = arith.maximumf %21, %22 : vector<8x2048xf32>
    %24 = arith.truncf %23 : vector<8x2048xf32> to vector<8x2048xbf16>
    %c0_18 = arith.constant 0 : index
    %c0_19 = arith.constant 0 : index
    %25 = vector.load %arg5[%c0_18, %c0_19] : memref<2048x128xbf16, #tpu.memory_space<vmem>>, vector<2048x128xbf16>
    %cst_20 = arith.constant dense<0.000000e+00> : vector<8x128xf32>
    %26 = tpu.matmul %24, %25, %cst_20 {dimension_numbers = #tpu.dot_dimension_numbers<[1], [0], [0], [1], [0, 0, 1, 1], [], []>} : vector<8x2048xbf16>, vector<2048x128xbf16>, vector<8x128xf32> -> vector<8x128xf32>
    %c0_21 = arith.constant 0 : index
    %c0_22 = arith.constant 0 : index
    %27 = vector.load %arg9[%c0_21, %c0_22] : memref<1x128xf32, #tpu.memory_space<vmem>>, vector<1x128xf32>
    %28 = vector.broadcast %27 : vector<1x128xf32> to vector<8x128xf32>
    %29 = arith.addf %26, %28 : vector<8x128xf32>
    %c0_23 = arith.constant 0 : index
    %c0_24 = arith.constant 0 : index
    %30 = vector.load %arg10[%c0_23, %c0_24] : memref<8x128xf32, #tpu.memory_space<vmem>>, vector<8x128xf32>
    tpu.vector_store %arg10[%c0_23, %c0_24], %29 {strides = array<i32>} : memref<8x128xf32, #tpu.memory_space<vmem>>, vector<8x128xf32>,
    return
  }
  func.func @transform_0(%arg0: i32) -> (i32, i32) {
    %c0_i32 = arith.constant 0 : i32
    %c0_i32_0 = arith.constant 0 : i32
    return %arg0, %c0_i32 : i32, i32
  }
  func.func @transform_1(%arg0: i32) -> (i32, i32) {
    %c0_i32 = arith.constant 0 : i32
    %c0_i32_0 = arith.constant 0 : i32
    %c0_i32_1 = arith.constant 0 : i32
    return %c0_i32, %c0_i32_0 : i32, i32
  }
  func.func @transform_2(%arg0: i32) -> (i32, i32) {
    %c0_i32 = arith.constant 0 : i32
    %c0_i32_0 = arith.constant 0 : i32
    %c0_i32_1 = arith.constant 0 : i32
    return %c0_i32, %c0_i32_0 : i32, i32
  }
  func.func @transform_3(%arg0: i32) -> (i32, i32) {
    %c0_i32 = arith.constant 0 : i32
    %c0_i32_0 = arith.constant 0 : i32
    %c0_i32_1 = arith.constant 0 : i32
    return %c0_i32, %c0_i32_0 : i32, i32
  }
  func.func @transform_4(%arg0: i32) -> (i32, i32) {
    %c0_i32 = arith.constant 0 : i32
    %c0_i32_0 = arith.constant 0 : i32
    %c0_i32_1 = arith.constant 0 : i32
    return %c0_i32, %c0_i32_0 : i32, i32
  }
  func.func @transform_5(%arg0: i32) -> (i32, i32) {
    %c0_i32 = arith.constant 0 : i32
    %c0_i32_0 = arith.constant 0 : i32
    %c0_i32_1 = arith.constant 0 : i32
    return %c0_i32, %c0_i32_0 : i32, i32
  }
  func.func @transform_6(%arg0: i32) -> (i32, i32) {
    %c0_i32 = arith.constant 0 : i32
    %c0_i32_0 = arith.constant 0 : i32
    %c0_i32_1 = arith.constant 0 : i32
    return %c0_i32, %c0_i32_0 : i32, i32
  }
  func.func @transform_7(%arg0: i32) -> (i32, i32) {
    %c0_i32 = arith.constant 0 : i32
    %c0_i32_0 = arith.constant 0 : i32
    %c0_i32_1 = arith.constant 0 : i32
    return %c0_i32, %c0_i32_0 : i32, i32
  }
  func.func @transform_8(%arg0: i32) -> (i32, i32) {
    %c0_i32 = arith.constant 0 : i32
    %c0_i32_0 = arith.constant 0 : i32
    %c0_i32_1 = arith.constant 0 : i32
    return %c0_i32, %c0_i32_0 : i32, i32
  }
  func.func @transform_9(%arg0: i32) -> (i32, i32) {
    %c0_i32 = arith.constant 0 : i32
    %c0_i32_0 = arith.constant 0 : i32
    return %arg0, %c0_i32 : i32, i32
  }
}

</mosaic_0001>

<bundles_post_ra>
// kernel: encoder_forward.1
= control target key start
LH: loop header
LB: loop body
LE: loop exit
PB: predicated region body
PF: predicated region fallthrough
CT: control target
= control target key end

     0   :  { %14 = vsyncpa [#allocation3], 0  ;;  %s8591_s0 = inlined_call_operand.vmem [shape: bf16[8,128], index: 0, kind: input, shape index: {}]   ;;  %s8592_s1 = inlined_call_operand.hbm [shape: bf16[128,512], index: 1, kind: input, shape index: {}]   ;;  %s8593_s2 = inlined_call_operand.hbm [shape: bf16[512,512], index: 2, kind: input, shape index: {}]   ;;  %s8594_s3 = inlined_call_operand.hbm [shape: bf16[512,2048], index: 3, kind: input, shape index: {}]   ;;  %s8595_s4 = inlined_call_operand.hbm [shape: bf16[2048,128], index: 4, kind: input, shape index: {}]   ;;  %s8596_s5 = inlined_call_operand.hbm [shape: f32[1,512], index: 5, kind: input, shape index: {}]   ;;  %s8597_s6 = inlined_call_operand.hbm [shape: f32[1,512], index: 6, kind: input, shape index: {}]   ;;  %s8598_s7 = inlined_call_operand.hbm [shape: f32[1,2048], index: 7, kind: input, shape index: {}]   ;;  %s8599_s8 = inlined_call_operand.hbm [shape: f32[1,128], index: 8, kind: input, shape index: {}]   ;;  %s8600_s9 = inlined_call_operand.hbm [shape: f32[8,128], index: 9, kind: output, shape index: {}]  }
   0x1   :  { %15 = vsyncpa [#allocation6], 0 }
   0x2   :  { %16 = vsyncpa [#allocation9], 0 }
   0x3   :  { %17 = vsyncpa [#allocation12], 0 }
   0x4   :  { %18 = vsyncpa [#allocation15], 0 }
   0x5   :  { %19 = vsyncpa [#allocation4], 0  ;;  %s8247_s30 = smov [#allocation5]   ;;  %s8248_s11 = smov [#allocation8]  }
   0x6   :  { %s39_s10 = sshll.u32 %s8247_s30, 4  ;;  %s63_s12 = sshll.u32 %s8248_s11, 4  ;;  %s40_s10 = int_to_ptr.vmem [resolvable:$true] %s39_s10  ;;  %s64_s12 = int_to_ptr.vmem [resolvable:$true] %s63_s12 }
   0x7   :  { %s8037_s15 = scalar_lea.hbm %s8593_s2, 16384 }
   0x8   :  { %p8038_p0 = scmp.ne.s32.totalorder %s8593_s2, %s8037_s15  ;;  %p8041_p1 = scmp.lt.u32.totalorder %s8037_s15, %s8593_s2 }
   0xa   :  { %p8043_p2 = pnand %p8041_p1, %p8038_p0 }
   0xc   :  { %8046 = shalt.err (!%p8043_p2)
}
   0xd   :  { %s8047_s20 = scalar_lea.vmem %s40_s10, 16384  ;;  %p8052_p4 = scmp.lt.s32.totalorder %s40_s10, %s40_s10 }
   0xe   :  { %p8048_p3 = scmp.ne.s32.totalorder %s40_s10, %s8047_s20  ;;  %p8053_p5 = scmp.lt.s32.totalorder %s8047_s20, %s8047_s20 }
  0x10   :  { %p8054_p6 = por %p8053_p5, %p8052_p4 }
  0x12   :  { %p8055_p7 = pnand %p8054_p6, %p8048_p3 }
  0x14   :  { %8058 = shalt.err (!%p8055_p7)
}
  0x15   :  { %s8249_s21 = smov 256   ;;  %s8250_s22 = smov 16  }
  0x16   :  { %45 = dma.hbm_to_vmem [thread:$0]  %s8593_s2, 16384, %s40_s10, [#allocation6], %s8249_s21, %s8249_s21, %s8250_s22  }
  0x17   :  { %s8059_s27 = scalar_lea.hbm %s8595_s4, 16384 }
  0x18   :  { %p8060_p8 = scmp.ne.s32.totalorder %s8595_s4, %s8059_s27  ;;  %p8063_p9 = scmp.lt.u32.totalorder %s8059_s27, %s8595_s4 }
  0x1a   :  { %p8065_p10 = pnand %p8063_p9, %p8060_p8 }
  0x1c   :  { %8068 = shalt.err (!%p8065_p10)
}
  0x1d   :  { %s8069_s13 = scalar_lea.vmem %s64_s12, 16384  ;;  %p8074_p12 = scmp.lt.s32.totalorder %s64_s12, %s64_s12 }
  0x1e   :  { %p8070_p11 = scmp.ne.s32.totalorder %s64_s12, %s8069_s13  ;;  %p8075_p13 = scmp.lt.s32.totalorder %s8069_s13, %s8069_s13 }
  0x20   :  { %p8076_p0 = por %p8075_p13, %p8074_p12 }
  0x22   :  { %p8077_p1 = pnand %p8076_p0, %p8070_p11 }
  0x24   :  { %8080 = shalt.err (!%p8077_p1)
}
  0x25   :  { %s8251_s2 = smov 64   ;;  %s8252_s10 = smov 4  }
  0x26   :  { %69 = dma.hbm_to_vmem [thread:$0]  %s8595_s4, 16384, %s64_s12, [#allocation9], %s8251_s2, %s8251_s2, %s8252_s10  }
  0x27   :  { %s8253_s16 = smov [#allocation11]   ;;  %s8254_s18 = smov [#allocation2]  }
  0x28   :  { %s86_s17 = sshll.u32 %s8253_s16, 4  ;;  %s27_s19 = sshll.u32 %s8254_s18, 4  ;;  %s87_s17 = int_to_ptr.vmem [resolvable:$true] %s86_s17  ;;  %s8341_s19 = int_to_ptr.vmem [resolvable:$true] %s27_s19 }
  0x29   :  { %s8081_s24 = scalar_lea.hbm %s8597_s6, 64 }
  0x2a   :  { %p8082_p2 = scmp.ne.s32.totalorder %s8597_s6, %s8081_s24  ;;  %p8085_p3 = scmp.lt.u32.totalorder %s8081_s24, %s8597_s6 }
  0x2c   :  { %p8087_p4 = pnand %p8085_p3, %p8082_p2 }
  0x2e   :  { %8090 = shalt.err (!%p8087_p4)
}
  0x2f   :  { %s8091_s4 = scalar_lea.vmem %s87_s17, 64  ;;  %p8096_p6 = scmp.lt.s32.totalorder %s87_s17, %s87_s17 }
  0x30   :  { %p8092_p5 = scmp.ne.s32.totalorder %s87_s17, %s8091_s4  ;;  %p8097_p7 = scmp.lt.s32.totalorder %s8091_s4, %s8091_s4 }
  0x32   :  { %p8098_p8 = por %p8097_p7, %p8096_p6 }
  0x34   :  { %p8099_p9 = pnand %p8098_p8, %p8092_p5 }
  0x36   :  { %8102 = shalt.err (!%p8099_p9)
}
  0x37   :  { %89 = dma.hbm_to_vmem [thread:$0]  %s8597_s6, 64, %s87_s17, [#allocation12]  }
  0x38   :  { %s8103_s13 = scalar_lea.hbm %s8592_s1, 4096 }
  0x39   :  { %p8104_p10 = scmp.ne.s32.totalorder %s8592_s1, %s8103_s13  ;;  %p8107_p11 = scmp.lt.u32.totalorder %s8103_s13, %s8592_s1 }
  0x3b   :  { %p8109_p12 = pnand %p8107_p11, %p8104_p10 }
  0x3d   :  { %8112 = shalt.err (!%p8109_p12)
}
  0x3e   :  { %s8113_s18 = scalar_lea.vmem %s8341_s19, 4096  ;;  %p8118_p0 = scmp.lt.s32.totalorder %s8341_s19, %s8341_s19 }
  0x3f   :  { %p8114_p13 = scmp.ne.s32.totalorder %s8341_s19, %s8113_s18  ;;  %p8119_p1 = scmp.lt.s32.totalorder %s8113_s18, %s8113_s18 }
  0x41   :  { %p8120_p2 = por %p8119_p1, %p8118_p0 }
  0x43   :  { %p8121_p3 = pnand %p8120_p2, %p8114_p13 }
  0x45   :  { %8124 = shalt.err (!%p8121_p3)
}
  0x46   :  { %33 = dma.hbm_to_vmem [thread:$0]  %s8592_s1, 4096, %s8341_s19, [#allocation3], %s8249_s21, %s8249_s21, %s8250_s22  }
  0x47   :  { %s8255_s20 = smov [#allocation7]   ;;  %s8256_s24 = smov [#allocation10]  }
  0x48   :  { %s51_s23 = sshll.u32 %s8255_s20, 4  ;;  %s76_s25 = sshll.u32 %s8256_s24, 4  ;;  %s52_s23 = int_to_ptr.vmem [resolvable:$true] %s51_s23  ;;  %s77_s25 = int_to_ptr.vmem [resolvable:$true] %s76_s25 }
  0x49   :  { %s8125_s28 = scalar_lea.hbm %s8594_s3, 65536 }
  0x4a   :  { %p8126_p4 = scmp.ne.s32.totalorder %s8594_s3, %s8125_s28  ;;  %p8129_p5 = scmp.lt.u32.totalorder %s8125_s28, %s8594_s3 }
  0x4c   :  { %p8131_p6 = pnand %p8129_p5, %p8126_p4 }
  0x4e   :  { %8134 = shalt.err (!%p8131_p6)
}
  0x4f   :  { %s8135_s1 = scalar_lea.vmem %s52_s23, 65536  ;;  %p8140_p8 = scmp.lt.s32.totalorder %s52_s23, %s52_s23 }
  0x50   :  { %p8136_p7 = scmp.ne.s32.totalorder %s52_s23, %s8135_s1  ;;  %p8141_p9 = scmp.lt.s32.totalorder %s8135_s1, %s8135_s1 }
  0x52   :  { %p8142_p10 = por %p8141_p9, %p8140_p8 }
  0x54   :  { %p8143_p11 = pnand %p8142_p10, %p8136_p7 }
  0x56   :  { %8146 = shalt.err (!%p8143_p11)
}
  0x57   :  { %s8257_s21 = smov 1024   ;;  %s8147_s10 = scalar_lea.hbm %s8596_s5, 64 }
  0x58   :  { %57 = dma.hbm_to_vmem [thread:$0]  %s8594_s3, 65536, %s52_s23, [#allocation6], %s8257_s21, %s8257_s21, %s8251_s2  }
  0x59   :  { %p8148_p12 = scmp.ne.s32.totalorder %s8596_s5, %s8147_s10  ;;  %p8151_p13 = scmp.lt.u32.totalorder %s8147_s10, %s8596_s5 }
  0x5b   :  { %p8153_p0 = pnand %p8151_p13, %p8148_p12 }
  0x5d   :  { %8156 = shalt.err (!%p8153_p0)
}
  0x5e   :  { %s8157_s6 = scalar_lea.vmem %s77_s25, 64  ;;  %p8162_p2 = scmp.lt.s32.totalorder %s77_s25, %s77_s25 }
  0x5f   :  { %p8158_p1 = scmp.ne.s32.totalorder %s77_s25, %s8157_s6  ;;  %p8163_p3 = scmp.lt.s32.totalorder %s8157_s6, %s8157_s6 }
  0x61   :  { %p8164_p4 = por %p8163_p3, %p8162_p2 }
  0x63   :  { %p8165_p5 = pnand %p8164_p4, %p8158_p1 }
  0x65   :  { %8168 = shalt.err (!%p8165_p5)
}
  0x66   :  { %79 = dma.hbm_to_vmem [thread:$0]  %s8596_s5, 64, %s77_s25, [#allocation9]  }
  0x67   :  { %s8258_s17 = smov [#allocation13]   ;;  %s8259_s23 = smov [#allocation14]  }
  0x68   :  { %s96_s20 = sshll.u32 %s8258_s17, 4  ;;  %s106_s24 = sshll.u32 %s8259_s23, 4  ;;  %s97_s20 = int_to_ptr.vmem [resolvable:$true] %s96_s20  ;;  %s107_s24 = int_to_ptr.vmem [resolvable:$true] %s106_s24 }
  0x69   :  { %s8169_s28 = scalar_lea.hbm %s8598_s7, 256 }
  0x6a   :  { %p8170_p6 = scmp.ne.s32.totalorder %s8598_s7, %s8169_s28  ;;  %p8173_p7 = scmp.lt.u32.totalorder %s8169_s28, %s8598_s7 }
  0x6c   :  { %p8175_p8 = pnand %p8173_p7, %p8170_p6 }
  0x6e   :  { %8178 = shalt.err (!%p8175_p8)
}
  0x6f   :  { %s8179_s5 = scalar_lea.vmem %s97_s20, 256  ;;  %p8184_p10 = scmp.lt.s32.totalorder %s97_s20, %s97_s20 }
  0x70   :  { %p8180_p9 = scmp.ne.s32.totalorder %s97_s20, %s8179_s5  ;;  %p8185_p11 = scmp.lt.s32.totalorder %s8179_s5, %s8179_s5 }
  0x72   :  { %p8186_p12 = por %p8185_p11, %p8184_p10 }
  0x74   :  { %p8187_p13 = pnand %p8186_p12, %p8180_p9 }
  0x76   :  { %8190 = shalt.err (!%p8187_p13)
}
  0x77   :  { %99 = dma.hbm_to_vmem [thread:$0]  %s8598_s7, 256, %s97_s20, [#allocation12]  }
  0x78   :  { %s8191_s19 = scalar_lea.hbm %s8599_s8, 16 }
  0x79   :  { %p8192_p0 = scmp.ne.s32.totalorder %s8599_s8, %s8191_s19  ;;  %p8195_p1 = scmp.lt.u32.totalorder %s8191_s19, %s8599_s8 }
  0x7b   :  { %p8197_p2 = pnand %p8195_p1, %p8192_p0 }
  0x7d   :  { %8200 = shalt.err (!%p8197_p2)
}
  0x7e   :  { %s8201_s15 = scalar_lea.vmem %s107_s24, 16  ;;  %s8205_s16 = scalar_lea.vmem %s107_s24, 32 }
  0x7f   :  { %p8202_p3 = scmp.ne.s32.totalorder %s107_s24, %s8201_s15  ;;  %p8206_p4 = scmp.lt.s32.totalorder %s107_s24, %s107_s24 }
  0x80   :  { %p8207_p5 = scmp.lt.s32.totalorder %s8205_s16, %s8201_s15 }
  0x82   :  { %p8208_p6 = por %p8207_p5, %p8206_p4 }
  0x84   :  { %p8209_p7 = pnand %p8208_p6, %p8202_p3 }
  0x86   :  { %8212 = shalt.err (!%p8209_p7)
}
  0x87   :  { %109 = dma.hbm_to_vmem [thread:$0]  %s8599_s8, 16, %s107_s24, [#allocation15]  }
  0x88   :  { %8235 = dma.done.wait [#allocation3], 4096  }
  0x89   :  { %8236 = vsyncadd [#allocation3], 4294963200 }
  0x8a   :  { %8237 = dma.done.wait [#allocation6], 81920  }
  0x8b   :  { %8238 = vsyncadd [#allocation6], 4294885376 }
  0x8c   :  { %8239 = dma.done.wait [#allocation9], 16448  }
  0x8d   :  { %8240 = vsyncadd [#allocation9], 4294950848 }
  0x8e   :  { %8241 = dma.done.wait [#allocation12], 320  }
  0x8f   :  { %8242 = vsyncadd [#allocation12], 4294966976 }
  0x90   :  { %8243 = dma.done.wait [#allocation15], 16  }
  0x91   :  { %8244 = vsyncadd [#allocation15], 4294967280  ;;  %v8260_v0 = vmov 0   ;;  %v7669_v1 = vld [vmem:[#allocation2 + $0x4] ss:$16 sps:$4 sm:$0xff]  }
  0x92   :  { %382 = vmatprep.mubr.bf16.mxu0 %v8260_v0  ;;  %423 = vmatprep.mubr.bf16.mxu1 %v8260_v0  ;;  %v7671_v2 = vld [vmem:[#allocation2] ss:$16 sps:$4 sm:$0xff]   ;;  %v7672_v3 = vld [vmem:[#allocation2 + $0x24] ss:$16 sps:$4 sm:$0xff]   ;;  %v7693_v10 = vld [vmem:[#allocation2 + $0xc] ss:$16 sps:$4 sm:$0xff]  }
  0x93   :  { %350 = vmatprep.subr.bf16.mxu0 %v7669_v1  ;;  %v7674_v4 = vld [vmem:[#allocation2 + $0x20] ss:$16 sps:$4 sm:$0xff]   ;;  %v7675_v5 = vld [vmem:[#allocation2 + $0x44] ss:$16 sps:$4 sm:$0xff]   ;;  %v7695_v11 = vld [vmem:[#allocation2 + $0x8] ss:$16 sps:$4 sm:$0xff]   ;;  %391 = vmatprep.subr.bf16.mxu1 %v7693_v10 }
  0x94   :  { %351 = vmatpush1.bf16.msra.mxu0 %v7671_v2  ;;  %v7677_v6 = vld [vmem:[#allocation2 + $0x40] ss:$16 sps:$4 sm:$0xff]   ;;  %v7678_v7 = vld [vmem:[#allocation2 + $0x64] ss:$16 sps:$4 sm:$0xff]   ;;  %v7696_v12 = vld [vmem:[#allocation2 + $0x2c] ss:$16 sps:$4 sm:$0xff]   ;;  %392 = vmatpush1.bf16.msra.mxu1 %v7695_v11 }
  0x95   :  { %352 = vmatprep.subr.bf16.mxu0 %v7672_v3  ;;  %v7680_v8 = vld [vmem:[#allocation2 + $0x60] ss:$16 sps:$4 sm:$0xff]   ;;  %v7681_v9 = vld [vmem:[#allocation2 + $0x84] ss:$16 sps:$4 sm:$0xff]   ;;  %v7698_v14 = vld [vmem:[#allocation2 + $0x28] ss:$16 sps:$4 sm:$0xff]   ;;  %393 = vmatprep.subr.bf16.mxu1 %v7696_v12 }
  0x96   :  { %v7683_v13 = vld [vmem:[#allocation2 + $0x80] ss:$16 sps:$4 sm:$0xff]   ;;  %v7699_v15 = vld [vmem:[#allocation2 + $0x4c] ss:$16 sps:$4 sm:$0xff]   ;;  %v7684_v16 = vld [vmem:[#allocation2 + $0xa4] ss:$16 sps:$4 sm:$0xff]  }
  0x97   :  { %v7686_v17 = vld [vmem:[#allocation2 + $0xa0] ss:$16 sps:$4 sm:$0xff]   ;;  %v7701_v18 = vld [vmem:[#allocation2 + $0x48] ss:$16 sps:$4 sm:$0xff]   ;;  %v7702_v19 = vld [vmem:[#allocation2 + $0x6c] ss:$16 sps:$4 sm:$0xff]  }
  0x98   :  { %353 = vmatpush1.bf16.msra.mxu0 %v7674_v4  ;;  %394 = vmatpush1.bf16.msra.mxu1 %v7698_v14  ;;  %v7687_v20 = vld [vmem:[#allocation2 + $0xc4] ss:$16 sps:$4 sm:$0xff]   ;;  %v7689_v21 = vld [vmem:[#allocation2 + $0xc0] ss:$16 sps:$4 sm:$0xff]   ;;  %v7704_v22 = vld [vmem:[#allocation2 + $0x68] ss:$16 sps:$4 sm:$0xff]  }
  0x99   :  { %354 = vmatprep.subr.bf16.mxu0 %v7675_v5  ;;  %395 = vmatprep.subr.bf16.mxu1 %v7699_v15  ;;  %v7705_v23 = vld [vmem:[#allocation2 + $0x8c] ss:$16 sps:$4 sm:$0xff]   ;;  %v7690_v24 = vld [vmem:[#allocation2 + $0xe4] ss:$16 sps:$4 sm:$0xff]   ;;  %v7692_v25 = vld [vmem:[#allocation2 + $0xe0] ss:$16 sps:$4 sm:$0xff]  }
  0x9a   :  { %v7707_v26 = vld [vmem:[#allocation2 + $0x88] ss:$16 sps:$4 sm:$0xff]   ;;  %v7708_v27 = vld [vmem:[#allocation2 + $0xac] ss:$16 sps:$4 sm:$0xff]   ;;  %v7719_v28 = vld [vmem:[#allocation5 + $0x4] ss:$16 sps:$4 sm:$0xff]  }
  0x9b   :  { %v135_v29 = vld [vmem:[%s8591_s0] sm:$0xf]  ;;  %v7710_v30 = vld [vmem:[#allocation2 + $0xa8] ss:$16 sps:$4 sm:$0xff]   ;;  %v7711_v31 = vld [vmem:[#allocation2 + $0xcc] ss:$16 sps:$4 sm:$0xff]  }
  0x9c   :  { %355 = vmatpush1.bf16.msra.mxu0 %v7677_v6  ;;  %396 = vmatpush1.bf16.msra.mxu1 %v7701_v18  ;;  %v7717_v32 = vld [vmem:[#allocation5] ss:$16 sps:$4 sm:$0xff]   ;;  %v7725_v33 = vld [vmem:[#allocation5 + $0x24] ss:$16 sps:$4 sm:$0xff]   ;;  %v7713_v34 = vld [vmem:[#allocation2 + $0xc8] ss:$16 sps:$4 sm:$0xff]  }
  0x9d   :  { %356 = vmatprep.subr.bf16.mxu0 %v7678_v7  ;;  %397 = vmatprep.subr.bf16.mxu1 %v7702_v19  ;;  %v7714_v35 = vld [vmem:[#allocation2 + $0xec] ss:$16 sps:$4 sm:$0xff]   ;;  %v7723_v36 = vld [vmem:[#allocation5 + $0x20] ss:$16 sps:$4 sm:$0xff]   ;;  %v7731_v37 = vld [vmem:[#allocation5 + $0x44] ss:$16 sps:$4 sm:$0xff]  }
  0x9e   :  { %v7716_v38 = vld [vmem:[#allocation2 + $0xe8] ss:$16 sps:$4 sm:$0xff]   ;;  %v7722_v39 = vld [vmem:[#allocation5 + $0xc] ss:$16 sps:$4 sm:$0xff]   ;;  %v7729_v40 = vld [vmem:[#allocation5 + $0x40] ss:$16 sps:$4 sm:$0xff]  }
  0x9f   :  { %v7737_v41 = vld [vmem:[#allocation5 + $0x64] ss:$16 sps:$4 sm:$0xff]   ;;  %v7720_v42 = vld [vmem:[#allocation5 + $0x8] ss:$16 sps:$4 sm:$0xff]   ;;  %v7728_v43 = vld [vmem:[#allocation5 + $0x2c] ss:$16 sps:$4 sm:$0xff]  }
  0xa0   :  { %357 = vmatpush1.bf16.msra.mxu0 %v7680_v8  ;;  %398 = vmatpush1.bf16.msra.mxu1 %v7704_v22  ;;  %v7735_v44 = vld [vmem:[#allocation5 + $0x60] ss:$16 sps:$4 sm:$0xff]   ;;  %v7743_v45 = vld [vmem:[#allocation5 + $0x84] ss:$16 sps:$4 sm:$0xff]   ;;  %v7726_v46 = vld [vmem:[#allocation5 + $0x28] ss:$16 sps:$4 sm:$0xff]  }
  0xa1   :  { %358 = vmatprep.subr.bf16.mxu0 %v7681_v9  ;;  %399 = vmatprep.subr.bf16.mxu1 %v7705_v23  ;;  %v7734_v47 = vld [vmem:[#allocation5 + $0x4c] ss:$16 sps:$4 sm:$0xff]   ;;  %v7741_v48 = vld [vmem:[#allocation5 + $0x80] ss:$16 sps:$4 sm:$0xff]   ;;  %v7749_v49 = vld [vmem:[#allocation5 + $0xa4] ss:$16 sps:$4 sm:$0xff]  }
  0xa2   :  { %v7732_v50 = vld [vmem:[#allocation5 + $0x48] ss:$16 sps:$4 sm:$0xff]   ;;  %v7740_v51 = vld [vmem:[#allocation5 + $0x6c] ss:$16 sps:$4 sm:$0xff]   ;;  %v7747_v52 = vld [vmem:[#allocation5 + $0xa0] ss:$16 sps:$4 sm:$0xff]  }
  0xa3   :  { %v7755_v53 = vld [vmem:[#allocation5 + $0xc4] ss:$16 sps:$4 sm:$0xff]   ;;  %v7738_v54 = vld [vmem:[#allocation5 + $0x68] ss:$16 sps:$4 sm:$0xff]   ;;  %v7746_v55 = vld [vmem:[#allocation5 + $0x8c] ss:$16 sps:$4 sm:$0xff]  }
  0xa4   :  { %359 = vmatpush1.bf16.msra.mxu0 %v7683_v13  ;;  %400 = vmatpush1.bf16.msra.mxu1 %v7707_v26  ;;  %v7753_v56 = vld [vmem:[#allocation5 + $0xc0] ss:$16 sps:$4 sm:$0xff]   ;;  %v7761_v57 = vld [vmem:[#allocation5 + $0xe4] ss:$16 sps:$4 sm:$0xff]   ;;  %v7744_v58 = vld [vmem:[#allocation5 + $0x88] ss:$16 sps:$4 sm:$0xff]  }
  0xa5   :  { %360 = vmatprep.subr.bf16.mxu0 %v7684_v16  ;;  %401 = vmatprep.subr.bf16.mxu1 %v7708_v27  ;;  %v7752_v59 = vld [vmem:[#allocation5 + $0xac] ss:$16 sps:$4 sm:$0xff]   ;;  %v7759_v60 = vld [vmem:[#allocation5 + $0xe0] ss:$16 sps:$4 sm:$0xff]   ;;  %v7767_v61 = vld [vmem:[#allocation5 + $0x104] ss:$16 sps:$4 sm:$0xff]  }
  0xa6   :  { %v7750_v62 = vld [vmem:[#allocation5 + $0xa8] ss:$16 sps:$4 sm:$0xff]   ;;  %v7758_v63 = vld [vmem:[#allocation5 + $0xcc] ss:$16 sps:$4 sm:$0xff]   ;;  %v7765_v0 = vld [vmem:[#allocation5 + $0x100] ss:$16 sps:$4 sm:$0xff]  }
  0xa7   :  { %v7773_v1 = vld [vmem:[#allocation5 + $0x124] ss:$16 sps:$4 sm:$0xff]   ;;  %v7756_v2 = vld [vmem:[#allocation5 + $0xc8] ss:$16 sps:$4 sm:$0xff]   ;;  %v7764_v3 = vld [vmem:[#allocation5 + $0xec] ss:$16 sps:$4 sm:$0xff]  }
  0xa8   :  { %361 = vmatpush1.bf16.msra.mxu0 %v7686_v17  ;;  %402 = vmatpush1.bf16.msra.mxu1 %v7710_v30  ;;  %v7771_v4 = vld [vmem:[#allocation5 + $0x120] ss:$16 sps:$4 sm:$0xff]   ;;  %v7779_v5 = vld [vmem:[#allocation5 + $0x144] ss:$16 sps:$4 sm:$0xff]   ;;  %v7762_v6 = vld [vmem:[#allocation5 + $0xe8] ss:$16 sps:$4 sm:$0xff]  }
  0xa9   :  { %362 = vmatprep.subr.bf16.mxu0 %v7687_v20  ;;  %403 = vmatprep.subr.bf16.mxu1 %v7711_v31  ;;  %v7770_v7 = vld [vmem:[#allocation5 + $0x10c] ss:$16 sps:$4 sm:$0xff]   ;;  %v7777_v8 = vld [vmem:[#allocation5 + $0x140] ss:$16 sps:$4 sm:$0xff]   ;;  %v7785_v9 = vld [vmem:[#allocation5 + $0x164] ss:$16 sps:$4 sm:$0xff]  }
  0xaa   :  { %v7768_v10 = vld [vmem:[#allocation5 + $0x108] ss:$16 sps:$4 sm:$0xff]   ;;  %v7776_v11 = vld [vmem:[#allocation5 + $0x12c] ss:$16 sps:$4 sm:$0xff]   ;;  %v7783_v12 = vld [vmem:[#allocation5 + $0x160] ss:$16 sps:$4 sm:$0xff]  }
  0xab   :  { %v7791_v13 = vld [vmem:[#allocation5 + $0x184] ss:$16 sps:$4 sm:$0xff]   ;;  %v7774_v14 = vld [vmem:[#allocation5 + $0x128] ss:$16 sps:$4 sm:$0xff]   ;;  %v7782_v15 = vld [vmem:[#allocation5 + $0x14c] ss:$16 sps:$4 sm:$0xff]  }
  0xac   :  { %363 = vmatpush1.bf16.msra.mxu0 %v7689_v21  ;;  %404 = vmatpush1.bf16.msra.mxu1 %v7713_v34  ;;  %v7789_v16 = vld [vmem:[#allocation5 + $0x180] ss:$16 sps:$4 sm:$0xff]   ;;  %v7797_v17 = vld [vmem:[#allocation5 + $0x1a4] ss:$16 sps:$4 sm:$0xff]   ;;  %v7780_v18 = vld [vmem:[#allocation5 + $0x148] ss:$16 sps:$4 sm:$0xff]  }
  0xad   :  { %364 = vmatprep.subr.bf16.mxu0 %v7690_v24  ;;  %405 = vmatprep.subr.bf16.mxu1 %v7714_v35  ;;  %v7788_v19 = vld [vmem:[#allocation5 + $0x16c] ss:$16 sps:$4 sm:$0xff]   ;;  %v7795_v20 = vld [vmem:[#allocation5 + $0x1a0] ss:$16 sps:$4 sm:$0xff]   ;;  %v7786_v21 = vld [vmem:[#allocation5 + $0x168] ss:$16 sps:$4 sm:$0xff]  }
  0xae   :  { %v7794_v22 = vld [vmem:[#allocation5 + $0x18c] ss:$16 sps:$4 sm:$0xff]   ;;  %v7792_v23 = vld [vmem:[#allocation5 + $0x188] ss:$16 sps:$4 sm:$0xff]   ;;  %v7803_v26 = vld [vmem:[#allocation5 + $0x1c4] ss:$16 sps:$4 sm:$0xff]  }
  0xaf   :  { %v7800_v24 = vld [vmem:[#allocation5 + $0x1ac] ss:$16 sps:$4 sm:$0xff]   ;;  %v7809_v30 = vld [vmem:[#allocation5 + $0x1e4] ss:$16 sps:$4 sm:$0xff]   ;;  %s8261_s0 = smov [#allocation16]  }
  0xb0   :  { %365 = vmatpush1.bf16.msra.mxu0 %v7692_v25  ;;  %406 = vmatpush1.bf16.msra.mxu1 %v7716_v38  ;;  %v7798_v25 = vld [vmem:[#allocation5 + $0x1a8] ss:$16 sps:$4 sm:$0xff]   ;;  %v7806_v27 = vld [vmem:[#allocation5 + $0x1cc] ss:$16 sps:$4 sm:$0xff]   ;;  %v7815_v34 = vld [vmem:[#allocation5 + $0x204] ss:$16 sps:$4 sm:$0xff]  }
  0xb1   :  { %1230 = vmatprep.subr.bf16.mxu0 %v7719_v28  ;;  %1312 = vmatprep.subr.bf16.mxu1 %v7722_v39  ;;  %v7801_v28 = vld [vmem:[#allocation5 + $0x1c0] ss:$16 sps:$4 sm:$0xff]   ;;  %v7812_v31 = vld [vmem:[#allocation5 + $0x1ec] ss:$16 sps:$4 sm:$0xff]   ;;  %s6604_s3 = sshll.u32 %s8261_s0, 4  ;;  %s6605_s3 = int_to_ptr.vmem [resolvable:$true] %s6604_s3 }
  0xb2   :  { %v7818_v35 = vld [vmem:[#allocation5 + $0x20c] ss:$16 sps:$4 sm:$0xff]   ;;  %v8432_v39 = vld [vmem:[#allocation10] sm:$0xf]  ;;  %s8213_s2 = scalar_lea.vmem %s6605_s3, 128  ;;  %p8218_p9 = scmp.lt.s32.totalorder %s6605_s3, %s6605_s3 }
  0xb3   :  { %383 = vmatmul.mubr.bf16.vlgmr.msra.gmra.mrb[0].mxu0 %v135_v29  ;;  %424 = vmatmul.mubr.bf16.vlgmr.msra.gmra.mrb[0].mxu1 %v135_v29  ;;  %v7804_v29 = vld [vmem:[#allocation5 + $0x1c8] ss:$16 sps:$4 sm:$0xff]   ;;  %p8214_p8 = scmp.ne.s32.totalorder %s6605_s3, %s8213_s2  ;;  %p8219_p10 = scmp.lt.s32.totalorder %s8213_s2, %s8213_s2 }
  0xb4   :  { %1231 = vmatpush1.bf16.msra.mxu0 %v7717_v32  ;;  %1313 = vmatpush1.bf16.msra.mxu1 %v7720_v42  ;;  %v7807_v32 = vld [vmem:[#allocation5 + $0x1e0] ss:$16 sps:$4 sm:$0xff]  }
  0xb5   :  { %1232 = vmatprep.subr.bf16.mxu0 %v7725_v33  ;;  %1314 = vmatprep.subr.bf16.mxu1 %v7728_v43  ;;  %v7810_v33 = vld [vmem:[#allocation5 + $0x1e8] ss:$16 sps:$4 sm:$0xff]   ;;  %p8220_p11 = por %p8219_p10, %p8218_p9 }
  0xb7   :  { %p8221_p12 = pnand %p8220_p11, %p8214_p8 }
  0xb8   :  { %1233 = vmatpush1.bf16.msra.mxu0 %v7723_v36  ;;  %1315 = vmatpush1.bf16.msra.mxu1 %v7726_v46  ;;  %v170_v36 = vlaneseq }
  0xb9   :  { %1234 = vmatprep.subr.bf16.mxu0 %v7731_v37  ;;  %1316 = vmatprep.subr.bf16.mxu1 %v7734_v47 }
  0xba   :  { %v8427_v37 = vshrl.u32 %v170_v36, 7  ;;  %v7875_v36 = vld [vmem:[#allocation5 + $0x344] ss:$16 sps:$4 sm:$0xff]  }
  0xbc   :  { %1235 = vmatpush1.bf16.msra.mxu0 %v7729_v40  ;;  %1317 = vmatpush1.bf16.msra.mxu1 %v7732_v50  ;;  %v8430_v38 = vsub.s32 0, %v8427_v37  ;;  %v8435_v40 = vsub.s32 1, %v8427_v37 }
  0xbd   :  { %1236 = vmatprep.subr.bf16.mxu0 %v7737_v41  ;;  %1318 = vmatprep.subr.bf16.mxu1 %v7740_v51  ;;  %v8442_v51 = vsub.s32 3, %v8427_v37 }
  0xbe   :  { %v173_v41 = vrot.slane %v8432_v39, %v8430_v38  ;;  %v177_v42 = vrot.slane %v8432_v39, %v8435_v40 }
  0xc0   :  { %1237 = vmatpush1.bf16.msra.mxu0 %v7735_v44  ;;  %1319 = vmatpush1.bf16.msra.mxu1 %v7738_v54  ;;  %v7816_v54 = vld [vmem:[#allocation5 + $0x208] ss:$16 sps:$4 sm:$0xff]  }
  0xc1   :  { %1238 = vmatprep.subr.bf16.mxu0 %v7743_v45  ;;  %1320 = vmatprep.subr.bf16.mxu1 %v7746_v55 }
  0xc4   :  { %1239 = vmatpush1.bf16.msra.mxu0 %v7741_v48  ;;  %1321 = vmatpush1.bf16.msra.mxu1 %v7744_v58  ;;  %v185_v58 = vrot.slane %v8432_v39, %v8442_v51 }
  0xc5   :  { %1240 = vmatprep.subr.bf16.mxu0 %v7749_v49  ;;  %1322 = vmatprep.subr.bf16.mxu1 %v7752_v59  ;;  %v7819_v59 = vld [vmem:[#allocation5 + $0x220] ss:$16 sps:$4 sm:$0xff]  }
  0xc8   :  { %1241 = vmatpush1.bf16.msra.mxu0 %v7747_v52  ;;  %1323 = vmatpush1.bf16.msra.mxu1 %v7750_v62  ;;  %v7830_v62 = vld [vmem:[#allocation5 + $0x24c] ss:$16 sps:$4 sm:$0xff]  }
  0xc9   :  { %1242 = vmatprep.subr.bf16.mxu0 %v7755_v53  ;;  %1324 = vmatprep.subr.bf16.mxu1 %v7758_v63  ;;  %v7813_v53 = vld [vmem:[#allocation5 + $0x200] ss:$16 sps:$4 sm:$0xff]  }
  0xcc   :  { %1243 = vmatpush1.bf16.msra.mxu0 %v7753_v56  ;;  %1325 = vmatpush1.bf16.msra.mxu1 %v7756_v2  ;;  %v7821_v56 = vld [vmem:[#allocation5 + $0x224] ss:$16 sps:$4 sm:$0xff]  }
  0xcd   :  { %1244 = vmatprep.subr.bf16.mxu0 %v7761_v57  ;;  %1326 = vmatprep.subr.bf16.mxu1 %v7764_v3  ;;  %v7824_v57 = vld [vmem:[#allocation5 + $0x22c] ss:$16 sps:$4 sm:$0xff]   ;;  %v7825_v3 = vld [vmem:[#allocation5 + $0x240] ss:$16 sps:$4 sm:$0xff]  }
  0xd0   :  { %1245 = vmatpush1.bf16.msra.mxu0 %v7759_v60  ;;  %1327 = vmatpush1.bf16.msra.mxu1 %v7762_v6  ;;  %v7822_v60 = vld [vmem:[#allocation5 + $0x228] ss:$16 sps:$4 sm:$0xff]   ;;  %v7833_v6 = vld [vmem:[#allocation5 + $0x264] ss:$16 sps:$4 sm:$0xff]  }
  0xd1   :  { %1246 = vmatprep.subr.bf16.mxu0 %v7767_v61  ;;  %1328 = vmatprep.subr.bf16.mxu1 %v7770_v7  ;;  %v7827_v61 = vld [vmem:[#allocation5 + $0x244] ss:$16 sps:$4 sm:$0xff]   ;;  %v7836_v7 = vld [vmem:[#allocation5 + $0x26c] ss:$16 sps:$4 sm:$0xff]  }
  0xd4   :  { %1247 = vmatpush1.bf16.msra.mxu0 %v7765_v0  ;;  %1329 = vmatpush1.bf16.msra.mxu1 %v7768_v10  ;;  %v7831_v10 = vld [vmem:[#allocation5 + $0x260] ss:$16 sps:$4 sm:$0xff]  }
  0xd5   :  { %1248 = vmatprep.subr.bf16.mxu0 %v7773_v1  ;;  %1330 = vmatprep.subr.bf16.mxu1 %v7776_v11  ;;  %v7834_v11 = vld [vmem:[#allocation5 + $0x268] ss:$16 sps:$4 sm:$0xff]  }
  0xd8   :  { %1249 = vmatpush1.bf16.msra.mxu0 %v7771_v4  ;;  %1331 = vmatpush1.bf16.msra.mxu1 %v7774_v14  ;;  %v7828_v4 = vld [vmem:[#allocation5 + $0x248] ss:$16 sps:$4 sm:$0xff]   ;;  %v7837_v14 = vld [vmem:[#allocation5 + $0x280] ss:$16 sps:$4 sm:$0xff]  }
  0xd9   :  { %1250 = vmatprep.subr.bf16.mxu0 %v7779_v5  ;;  %1332 = vmatprep.subr.bf16.mxu1 %v7782_v15  ;;  %v7840_v15 = vld [vmem:[#allocation5 + $0x288] ss:$16 sps:$4 sm:$0xff]  }
  0xdc   :  { %1251 = vmatpush1.bf16.msra.mxu0 %v7777_v8  ;;  %1333 = vmatpush1.bf16.msra.mxu1 %v7780_v18  ;;  %v7843_v18 = vld [vmem:[#allocation5 + $0x2a0] ss:$16 sps:$4 sm:$0xff]  }
  0xdd   :  { %1252 = vmatprep.subr.bf16.mxu0 %v7785_v9  ;;  %1334 = vmatprep.subr.bf16.mxu1 %v7788_v19  ;;  %v7846_v19 = vld [vmem:[#allocation5 + $0x2a8] ss:$16 sps:$4 sm:$0xff]  }
  0xe0   :  { %1253 = vmatpush1.bf16.msra.mxu0 %v7783_v12  ;;  %1335 = vmatpush1.bf16.msra.mxu1 %v7786_v21  ;;  %v7839_v12 = vld [vmem:[#allocation5 + $0x284] ss:$16 sps:$4 sm:$0xff]   ;;  %v7854_v21 = vld [vmem:[#allocation5 + $0x2cc] ss:$16 sps:$4 sm:$0xff]  }
  0xe1   :  { %1254 = vmatprep.subr.bf16.mxu0 %v7791_v13  ;;  %1336 = vmatprep.subr.bf16.mxu1 %v7794_v22  ;;  %v7842_v13 = vld [vmem:[#allocation5 + $0x28c] ss:$16 sps:$4 sm:$0xff]   ;;  %v7849_v22 = vld [vmem:[#allocation5 + $0x2c0] ss:$16 sps:$4 sm:$0xff]  }
  0xe4   :  { %1255 = vmatpush1.bf16.msra.mxu0 %v7789_v16  ;;  %1337 = vmatpush1.bf16.msra.mxu1 %v7792_v23  ;;  %v7845_v16 = vld [vmem:[#allocation5 + $0x2a4] ss:$16 sps:$4 sm:$0xff]   ;;  %v7852_v23 = vld [vmem:[#allocation5 + $0x2c8] ss:$16 sps:$4 sm:$0xff]  }
  0xe5   :  { %1256 = vmatprep.subr.bf16.mxu0 %v7797_v17  ;;  %1338 = vmatprep.subr.bf16.mxu1 %v7800_v24  ;;  %v7848_v17 = vld [vmem:[#allocation5 + $0x2ac] ss:$16 sps:$4 sm:$0xff]   ;;  %v7857_v24 = vld [vmem:[#allocation5 + $0x2e4] ss:$16 sps:$4 sm:$0xff]  }
  0xe8   :  { %1257 = vmatpush1.bf16.msra.mxu0 %v7795_v20  ;;  %1339 = vmatpush1.bf16.msra.mxu1 %v7798_v25  ;;  %v7851_v20 = vld [vmem:[#allocation5 + $0x2c4] ss:$16 sps:$4 sm:$0xff]   ;;  %v7860_v25 = vld [vmem:[#allocation5 + $0x2ec] ss:$16 sps:$4 sm:$0xff]  }
  0xe9   :  { %1258 = vmatprep.subr.bf16.mxu0 %v7803_v26  ;;  %1340 = vmatprep.subr.bf16.mxu1 %v7806_v27  ;;  %v7855_v26 = vld [vmem:[#allocation5 + $0x2e0] ss:$16 sps:$4 sm:$0xff]   ;;  %v7858_v27 = vld [vmem:[#allocation5 + $0x2e8] ss:$16 sps:$4 sm:$0xff]  }
  0xec   :  { %1259 = vmatpush1.bf16.msra.mxu0 %v7801_v28  ;;  %1341 = vmatpush1.bf16.msra.mxu1 %v7804_v29  ;;  %v7863_v28 = vld [vmem:[#allocation5 + $0x304] ss:$16 sps:$4 sm:$0xff]   ;;  %v7866_v29 = vld [vmem:[#allocation5 + $0x30c] ss:$16 sps:$4 sm:$0xff]  }
  0xed   :  { %1260 = vmatprep.subr.bf16.mxu0 %v7809_v30  ;;  %1342 = vmatprep.subr.bf16.mxu1 %v7812_v31  ;;  %v7861_v30 = vld [vmem:[#allocation5 + $0x300] ss:$16 sps:$4 sm:$0xff]   ;;  %v7864_v31 = vld [vmem:[#allocation5 + $0x308] ss:$16 sps:$4 sm:$0xff]  }
  0xf0   :  { %1261 = vmatpush1.bf16.msra.mxu0 %v7807_v32  ;;  %1343 = vmatpush1.bf16.msra.mxu1 %v7810_v33  ;;  %v7869_v32 = vld [vmem:[#allocation5 + $0x324] ss:$16 sps:$4 sm:$0xff]   ;;  %v7872_v33 = vld [vmem:[#allocation5 + $0x32c] ss:$16 sps:$4 sm:$0xff]  }
  0xf1   :  { %1271 = vmatprep.subr.bf16.mxu0 %v7815_v34  ;;  %1353 = vmatprep.subr.bf16.mxu1 %v7818_v35  ;;  %v7867_v34 = vld [vmem:[#allocation5 + $0x320] ss:$16 sps:$4 sm:$0xff]   ;;  %v7870_v35 = vld [vmem:[#allocation5 + $0x328] ss:$16 sps:$4 sm:$0xff]  }
 0x186   :  { %v384_v43 = vpop.f32.mrb[0].mxu0  ;;  %v8446_v63 = vpop.f32.mrb[0].mxu1 }
 0x187   :  { %v385_v44 = vadd.f32 %v384_v43, %v173_v41  ;;  %v386_v45 = vpop.f32.mrb[1].mxu0  ;;  %v427_v0 = vpop.f32.mrb[1].mxu1  ;;  %v7878_v41 = vld [vmem:[#allocation5 + $0x34c] ss:$16 sps:$4 sm:$0xff]   ;;  %v7876_v43 = vld [vmem:[#allocation5 + $0x348] ss:$16 sps:$4 sm:$0xff]  }
 0x188   :  { %v387_v46 = vadd.f32 %v386_v45, %v177_v42  ;;  %v388_v47 = vpop.f32.mrb[2].mxu0  ;;  %v428_v1 = vadd.f32 %v427_v0, %v185_v58  ;;  %v429_v2 = vpop.f32.mrb[2].mxu1  ;;  %v7873_v42 = vld [vmem:[#allocation5 + $0x340] ss:$16 sps:$4 sm:$0xff]   ;;  %v7884_v45 = vld [vmem:[#allocation5 + $0x36c] ss:$16 sps:$4 sm:$0xff]  }
 0x189   :  { %v432_v48 = vmax.f32 %v385_v44, 0.0  ;;  %v389_v49 = vpop.f32.mrb[3].mxu0  ;;  %v430_v5 = vpop.f32.mrb[3].mxu1  ;;  %v7881_v44 = vld [vmem:[#allocation5 + $0x364] ss:$16 sps:$4 sm:$0xff]  }
 0x18a   :  { %v433_v50 = vmax.f32 %v387_v46, 0.0  ;;  %v435_v8 = vmax.f32 %v428_v1, 0.0  ;;  %v7879_v46 = vld [vmem:[#allocation5 + $0x360] ss:$16 sps:$4 sm:$0xff]   ;;  %v7882_v47 = vld [vmem:[#allocation5 + $0x368] ss:$16 sps:$4 sm:$0xff]  }
 0x18b   :  { %v436_v55 = vpack.c.bf16 %v432_v48, %v432_v48  ;;  %v7887_v48 = vld [vmem:[#allocation5 + $0x384] ss:$16 sps:$4 sm:$0xff]   ;;  %v7890_v49 = vld [vmem:[#allocation5 + $0x38c] ss:$16 sps:$4 sm:$0xff]  }
 0x18c   :  { %v437_v52 = vpack.c.bf16 %v433_v50, %v433_v50  ;;  %v439_v9 = vpack.c.bf16 %v435_v8, %v435_v8  ;;  %v7885_v50 = vld [vmem:[#allocation5 + $0x380] ss:$16 sps:$4 sm:$0xff]   ;;  %v7905_v1 = vld [vmem:[#allocation5 + $0x3e4] ss:$16 sps:$4 sm:$0xff]   ;;  %v7908_v2 = vld [vmem:[#allocation5 + $0x3ec] ss:$16 sps:$4 sm:$0xff]  }
 0x18d   :  { %v1403_v5 = vld [vmem:[#allocation7 + $0x8] sm:$0xff] }
 0x18e   :  { %1262 = vmatprep.mubr.bf16.mxu0 %v437_v52  ;;  %1344 = vmatprep.mubr.bf16.mxu1 %v437_v52  ;;  %v7888_v52 = vld [vmem:[#allocation5 + $0x388] ss:$16 sps:$4 sm:$0xff]  }
 0x18f   :  { %1263 = vmatmul.mubr.bf16.vlgmr.msra.gmra.mrb[4].mxu0 %v436_v55  ;;  %1345 = vmatmul.mubr.bf16.vlgmr.msra.gmra.mrb[4].mxu1 %v436_v55  ;;  %v7896_v55 = vld [vmem:[#allocation5 + $0x3ac] ss:$16 sps:$4 sm:$0xff]  }
 0x190   :  { %1272 = vmatpush1.bf16.msra.mxu0 %v7813_v53  ;;  %1354 = vmatpush1.bf16.msra.mxu1 %v7816_v54  ;;  %v8449_v53 = vsub.s32 2, %v8427_v37  ;;  %v7893_v54 = vld [vmem:[#allocation5 + $0x3a4] ss:$16 sps:$4 sm:$0xff]  }
 0x191   :  { %1273 = vmatprep.subr.bf16.mxu0 %v7821_v56  ;;  %1355 = vmatprep.subr.bf16.mxu1 %v7824_v57  ;;  %v7891_v56 = vld [vmem:[#allocation5 + $0x3a0] ss:$16 sps:$4 sm:$0xff]   ;;  %v7894_v57 = vld [vmem:[#allocation5 + $0x3a8] ss:$16 sps:$4 sm:$0xff]  }
 0x192   :  { %1303 = vmatprep.mubr.bf16.mxu0 %v439_v9  ;;  %1385 = vmatprep.mubr.bf16.mxu1 %v439_v9  ;;  %v181_v58 = vrot.slane %v8432_v39, %v8449_v53  ;;  %v7903_v39 = vld [vmem:[#allocation5 + $0x3e0] ss:$16 sps:$4 sm:$0xff]  }
 0x194   :  { %1274 = vmatpush1.bf16.msra.mxu0 %v7819_v59  ;;  %1356 = vmatpush1.bf16.msra.mxu1 %v7822_v60  ;;  %v7899_v59 = vld [vmem:[#allocation5 + $0x3c4] ss:$16 sps:$4 sm:$0xff]   ;;  %v7902_v60 = vld [vmem:[#allocation5 + $0x3cc] ss:$16 sps:$4 sm:$0xff]   ;;  %v426_v0 = vadd.f32 %v8446_v63, %v181_v58 }
 0x195   :  { %1275 = vmatprep.subr.bf16.mxu0 %v7827_v61  ;;  %1357 = vmatprep.subr.bf16.mxu1 %v7830_v62  ;;  %v7897_v61 = vld [vmem:[#allocation5 + $0x3c0] ss:$16 sps:$4 sm:$0xff]   ;;  %v7900_v62 = vld [vmem:[#allocation5 + $0x3c8] ss:$16 sps:$4 sm:$0xff]  }
 0x196   :  { %v434_v8 = vmax.f32 %v426_v0, 0.0  ;;  %v1419_v63 = vld [vmem:[#allocation7 + $0x88] sm:$0xff]  ;;  %v1506_v58 = vld [vmem:[#allocation7 + $0x340] sm:$0xff] }
 0x198   :  { %1276 = vmatpush1.bf16.msra.mxu0 %v7825_v3  ;;  %1358 = vmatpush1.bf16.msra.mxu1 %v7828_v4  ;;  %v1402_v3 = vld [vmem:[#allocation7] sm:$0xff] }
 0x199   :  { %1277 = vmatprep.subr.bf16.mxu0 %v7833_v6  ;;  %1359 = vmatprep.subr.bf16.mxu1 %v7836_v7  ;;  %v1410_v4 = vld [vmem:[#allocation7 + $0x40] sm:$0xff]  ;;  %v1411_v6 = vld [vmem:[#allocation7 + $0x48] sm:$0xff] }
 0x19a   :  { %v7906_v7 = vld [vmem:[#allocation5 + $0x3e8] ss:$16 sps:$4 sm:$0xff]   ;;  %v6778_v9 = vcombine.high %v1402_v3, %v1410_v4 }
 0x19c   :  { %1278 = vmatpush1.bf16.msra.mxu0 %v7831_v10  ;;  %1360 = vmatpush1.bf16.msra.mxu1 %v7834_v11  ;;  %v6780_v10 = vcombine.high %v1403_v5, %v1411_v6  ;;  %v1418_v11 = vld [vmem:[#allocation7 + $0x80] sm:$0xff] }
 0x19d   :  { %1279 = vmatprep.subr.bf16.mxu0 %v7839_v12  ;;  %1361 = vmatprep.subr.bf16.mxu1 %v7842_v13  ;;  %v1426_v12 = vld [vmem:[#allocation7 + $0xc0] sm:$0xff]  ;;  %v1427_v13 = vld [vmem:[#allocation7 + $0xc8] sm:$0xff] }
 0x1a0   :  { %1280 = vmatpush1.bf16.msra.mxu0 %v7837_v14  ;;  %1362 = vmatpush1.bf16.msra.mxu1 %v7840_v15  ;;  %v6777_v14 = vcombine.low %v1402_v3, %v1410_v4  ;;  %v6779_v15 = vcombine.low %v1403_v5, %v1411_v6  ;;  %v1522_v3 = vld [vmem:[#allocation7 + $0x3c0] sm:$0xff]  ;;  %v1515_v4 = vld [vmem:[#allocation7 + $0x388] sm:$0xff] }
 0x1a1   :  { %1281 = vmatprep.subr.bf16.mxu0 %v7845_v16  ;;  %1363 = vmatprep.subr.bf16.mxu1 %v7848_v17  ;;  %v438_v16 = vpack.c.bf16 %v434_v8, %v434_v8  ;;  %v6794_v17 = vcombine.high %v1418_v11, %v1426_v12  ;;  %v1523_v5 = vld [vmem:[#allocation7 + $0x3c8] sm:$0xff] }
 0x1a2   :  { %v6892_v8 = vcombine.high %v1515_v4, %v1523_v5 }
 0x1a4   :  { %1282 = vmatpush1.bf16.msra.mxu0 %v7843_v18  ;;  %1364 = vmatpush1.bf16.msra.mxu1 %v7846_v19  ;;  %v6796_v18 = vcombine.high %v1419_v63, %v1427_v13  ;;  %v1434_v19 = vld [vmem:[#allocation7 + $0x100] sm:$0xff] }
 0x1a5   :  { %1283 = vmatprep.subr.bf16.mxu0 %v7851_v20  ;;  %1365 = vmatprep.subr.bf16.mxu1 %v7854_v21  ;;  %v1442_v20 = vld [vmem:[#allocation7 + $0x140] sm:$0xff]  ;;  %v1435_v21 = vld [vmem:[#allocation7 + $0x108] sm:$0xff] }
 0x1a8   :  { %1284 = vmatpush1.bf16.msra.mxu0 %v7849_v22  ;;  %1366 = vmatpush1.bf16.msra.mxu1 %v7852_v23  ;;  %v1443_v22 = vld [vmem:[#allocation7 + $0x148] sm:$0xff]  ;;  %v6793_v23 = vcombine.low %v1418_v11, %v1426_v12 }
 0x1a9   :  { %1285 = vmatprep.subr.bf16.mxu0 %v7857_v24  ;;  %1367 = vmatprep.subr.bf16.mxu1 %v7860_v25  ;;  %v6795_v24 = vcombine.low %v1419_v63, %v1427_v13  ;;  %v6810_v25 = vcombine.high %v1434_v19, %v1442_v20  ;;  %v1531_v11 = vld [vmem:[#allocation7 + $0x408] sm:$0xff]  ;;  %v6891_v13 = vcombine.low %v1515_v4, %v1523_v5 }
 0x1aa   :  { %v1539_v12 = vld [vmem:[#allocation7 + $0x448] sm:$0xff] }
 0x1ab   :  { %v1635_v5 = vld [vmem:[#allocation7 + $0x748] sm:$0xff] }
 0x1ac   :  { %1286 = vmatpush1.bf16.msra.mxu0 %v7855_v26  ;;  %1368 = vmatpush1.bf16.msra.mxu1 %v7858_v27  ;;  %v6812_v26 = vcombine.high %v1435_v21, %v1443_v22  ;;  %v1450_v27 = vld [vmem:[#allocation7 + $0x180] sm:$0xff] }
 0x1ad   :  { %1287 = vmatprep.subr.bf16.mxu0 %v7863_v28  ;;  %1369 = vmatprep.subr.bf16.mxu1 %v7866_v29  ;;  %v1458_v28 = vld [vmem:[#allocation7 + $0x1c0] sm:$0xff]  ;;  %v1451_v29 = vld [vmem:[#allocation7 + $0x188] sm:$0xff] }
 0x1b0   :  { %1288 = vmatpush1.bf16.msra.mxu0 %v7861_v30  ;;  %1370 = vmatpush1.bf16.msra.mxu1 %v7864_v31  ;;  %v1459_v30 = vld [vmem:[#allocation7 + $0x1c8] sm:$0xff]  ;;  %v6809_v31 = vcombine.low %v1434_v19, %v1442_v20 }
 0x1b1   :  { %1289 = vmatprep.subr.bf16.mxu0 %v7869_v32  ;;  %1371 = vmatprep.subr.bf16.mxu1 %v7872_v33  ;;  %v6811_v32 = vcombine.low %v1435_v21, %v1443_v22  ;;  %v6826_v33 = vcombine.high %v1450_v27, %v1458_v28  ;;  %v1555_v19 = vld [vmem:[#allocation7 + $0x4c8] sm:$0xff]  ;;  %v6907_v21 = vcombine.low %v1531_v11, %v1539_v12 }
 0x1b4   :  { %1290 = vmatpush1.bf16.msra.mxu0 %v7867_v34  ;;  %1372 = vmatpush1.bf16.msra.mxu1 %v7870_v35  ;;  %v6828_v34 = vcombine.high %v1451_v29, %v1459_v30  ;;  %v1466_v35 = vld [vmem:[#allocation7 + $0x200] sm:$0xff] }
 0x1b5   :  { %1291 = vmatprep.subr.bf16.mxu0 %v7875_v36  ;;  %1373 = vmatprep.subr.bf16.mxu1 %v7878_v41  ;;  %v1474_v36 = vld [vmem:[#allocation7 + $0x240] sm:$0xff]  ;;  %v1467_v41 = vld [vmem:[#allocation7 + $0x208] sm:$0xff] }
 0x1b8   :  { %1292 = vmatpush1.bf16.msra.mxu0 %v7873_v42  ;;  %1374 = vmatpush1.bf16.msra.mxu1 %v7876_v43  ;;  %v1475_v42 = vld [vmem:[#allocation7 + $0x248] sm:$0xff]  ;;  %v6825_v43 = vcombine.low %v1450_v27, %v1458_v28 }
 0x1b9   :  { %1293 = vmatprep.subr.bf16.mxu0 %v7881_v44  ;;  %1375 = vmatprep.subr.bf16.mxu1 %v7884_v45  ;;  %v6827_v44 = vcombine.low %v1451_v29, %v1459_v30  ;;  %v6842_v45 = vcombine.high %v1466_v35, %v1474_v36  ;;  %v1571_v27 = vld [vmem:[#allocation7 + $0x548] sm:$0xff] }
 0x1bc   :  { %1294 = vmatpush1.bf16.msra.mxu0 %v7879_v46  ;;  %1376 = vmatpush1.bf16.msra.mxu1 %v7882_v47  ;;  %v6844_v46 = vcombine.high %v1467_v41, %v1475_v42  ;;  %v1482_v47 = vld [vmem:[#allocation7 + $0x280] sm:$0xff] }
 0x1bd   :  { %1295 = vmatprep.subr.bf16.mxu0 %v7887_v48  ;;  %1377 = vmatprep.subr.bf16.mxu1 %v7890_v49  ;;  %v1490_v48 = vld [vmem:[#allocation7 + $0x2c0] sm:$0xff]  ;;  %v1483_v49 = vld [vmem:[#allocation7 + $0x288] sm:$0xff] }
 0x1c0   :  { %1296 = vmatpush1.bf16.msra.mxu0 %v7885_v50  ;;  %1378 = vmatpush1.bf16.msra.mxu1 %v7888_v52  ;;  %v1491_v50 = vld [vmem:[#allocation7 + $0x2c8] sm:$0xff]  ;;  %v6841_v52 = vcombine.low %v1466_v35, %v1474_v36 }
 0x1c1   :  { %1297 = vmatprep.subr.bf16.mxu0 %v7893_v54  ;;  %1379 = vmatprep.subr.bf16.mxu1 %v7896_v55  ;;  %v6843_v54 = vcombine.low %v1467_v41, %v1475_v42  ;;  %v6858_v55 = vcombine.high %v1482_v47, %v1490_v48  ;;  %v1587_v35 = vld [vmem:[#allocation7 + $0x5c8] sm:$0xff] }
 0x1c4   :  { %1298 = vmatpush1.bf16.msra.mxu0 %v7891_v56  ;;  %1380 = vmatpush1.bf16.msra.mxu1 %v7894_v57  ;;  %v6860_v56 = vcombine.high %v1483_v49, %v1491_v50  ;;  %v1498_v57 = vld [vmem:[#allocation7 + $0x300] sm:$0xff] }
 0x1c5   :  { %1299 = vmatprep.subr.bf16.mxu0 %v7899_v59  ;;  %1381 = vmatprep.subr.bf16.mxu1 %v7902_v60  ;;  %v1499_v59 = vld [vmem:[#allocation7 + $0x308] sm:$0xff]  ;;  %v6874_v0 = vcombine.high %v1498_v57, %v1506_v58  ;;  %v6873_v6 = vcombine.low %v1498_v57, %v1506_v58 }
 0x1c6   :  { %v1507_v60 = vld [vmem:[#allocation7 + $0x348] sm:$0xff] }
 0x1c7   :  { %v1619_v57 = vld [vmem:[#allocation7 + $0x6c8] sm:$0xff] }
 0x1c8   :  { %1300 = vmatpush1.bf16.msra.mxu0 %v7897_v61  ;;  %1382 = vmatpush1.bf16.msra.mxu1 %v7900_v62  ;;  %v6857_v61 = vcombine.low %v1482_v47, %v1490_v48  ;;  %v6859_v62 = vcombine.low %v1483_v49, %v1491_v50  ;;  %v1603_v47 = vld [vmem:[#allocation7 + $0x648] sm:$0xff] }
 0x1c9   :  { %1301 = vmatprep.subr.bf16.mxu0 %v7905_v1  ;;  %1383 = vmatprep.subr.bf16.mxu1 %v7908_v2  ;;  %v6876_v1 = vcombine.high %v1499_v59, %v1507_v60  ;;  %v1514_v2 = vld [vmem:[#allocation7 + $0x380] sm:$0xff] }
 0x1ca   :  { %v6889_v63 = vcombine.low %v1514_v2, %v1522_v3 }
 0x1cc   :  { %1302 = vmatpush1.bf16.msra.mxu0 %v7903_v39  ;;  %1384 = vmatpush1.bf16.msra.mxu1 %v7906_v7  ;;  %v6875_v39 = vcombine.low %v1499_v59, %v1507_v60  ;;  %v6890_v7 = vcombine.high %v1514_v2, %v1522_v3  ;;  %v1634_v2 = vld [vmem:[#allocation7 + $0x740] sm:$0xff]  ;;  %v1627_v3 = vld [vmem:[#allocation7 + $0x708] sm:$0xff] }
 0x1cd   :  { %4558 = vmatprep.subr.bf16.mxu0 %v6778_v9  ;;  %4640 = vmatprep.subr.bf16.mxu1 %v6780_v10  ;;  %v1530_v9 = vld [vmem:[#allocation7 + $0x400] sm:$0xff] }
 0x1ce   :  { %v1538_v10 = vld [vmem:[#allocation7 + $0x440] sm:$0xff] }
 0x1cf   :  { %1304 = vmatmul.mubr.bf16.vlgmr.msra.gmra.mrb[4].mxu0 %v438_v16  ;;  %1386 = vmatmul.mubr.bf16.vlgmr.msra.gmra.mrb[4].mxu1 %v438_v16  ;;  %v1546_v16 = vld [vmem:[#allocation7 + $0x480] sm:$0xff]  ;;  %v6905_v20 = vcombine.low %v1530_v9, %v1538_v10 }
 0x1d0   :  { %4559 = vmatpush1.bf16.msra.mxu0 %v6777_v14  ;;  %4641 = vmatpush1.bf16.msra.mxu1 %v6779_v15  ;;  %v6906_v14 = vcombine.high %v1530_v9, %v1538_v10  ;;  %v6908_v15 = vcombine.high %v1531_v11, %v1539_v12  ;;  %v1650_v9 = vld [vmem:[#allocation7 + $0x7c0] sm:$0xff]  ;;  %v1643_v10 = vld [vmem:[#allocation7 + $0x788] sm:$0xff] }
 0x1d1   :  { %4560 = vmatprep.subr.bf16.mxu0 %v6794_v17  ;;  %4642 = vmatprep.subr.bf16.mxu1 %v6796_v18  ;;  %v1554_v17 = vld [vmem:[#allocation7 + $0x4c0] sm:$0xff]  ;;  %v1547_v18 = vld [vmem:[#allocation7 + $0x488] sm:$0xff] }
 0x1d2   :  { %v6922_v22 = vcombine.high %v1546_v16, %v1554_v17  ;;  %v6921_v28 = vcombine.low %v1546_v16, %v1554_v17  ;;  %v6923_v29 = vcombine.low %v1547_v18, %v1555_v19  ;;  %v1651_v12 = vld [vmem:[#allocation7 + $0x7c8] sm:$0xff]  ;;  %v1666_v16 = vld [vmem:[#allocation7 + $0x840] sm:$0xff] }
 0x1d3   :  { %v1659_v17 = vld [vmem:[#allocation7 + $0x808] sm:$0xff] }
 0x1d4   :  { %4561 = vmatpush1.bf16.msra.mxu0 %v6793_v23  ;;  %4643 = vmatpush1.bf16.msra.mxu1 %v6795_v24  ;;  %v6924_v23 = vcombine.high %v1547_v18, %v1555_v19  ;;  %v1562_v24 = vld [vmem:[#allocation7 + $0x500] sm:$0xff]  ;;  %v1667_v19 = vld [vmem:[#allocation7 + $0x848] sm:$0xff] }
 0x1d5   :  { %4562 = vmatprep.subr.bf16.mxu0 %v6810_v25  ;;  %4644 = vmatprep.subr.bf16.mxu1 %v6812_v26  ;;  %v1570_v25 = vld [vmem:[#allocation7 + $0x540] sm:$0xff]  ;;  %v1563_v26 = vld [vmem:[#allocation7 + $0x508] sm:$0xff] }
 0x1d6   :  { %v6938_v30 = vcombine.high %v1562_v24, %v1570_v25  ;;  %v6937_v36 = vcombine.low %v1562_v24, %v1570_v25  ;;  %v6939_v41 = vcombine.low %v1563_v26, %v1571_v27 }
 0x1d8   :  { %4563 = vmatpush1.bf16.msra.mxu0 %v6809_v31  ;;  %4645 = vmatpush1.bf16.msra.mxu1 %v6811_v32  ;;  %v6940_v31 = vcombine.high %v1563_v26, %v1571_v27  ;;  %v1578_v32 = vld [vmem:[#allocation7 + $0x580] sm:$0xff] }
 0x1d9   :  { %4564 = vmatprep.subr.bf16.mxu0 %v6826_v33  ;;  %4646 = vmatprep.subr.bf16.mxu1 %v6828_v34  ;;  %v1586_v33 = vld [vmem:[#allocation7 + $0x5c0] sm:$0xff]  ;;  %v1579_v34 = vld [vmem:[#allocation7 + $0x588] sm:$0xff] }
 0x1da   :  { %v6954_v42 = vcombine.high %v1578_v32, %v1586_v33  ;;  %v6953_v48 = vcombine.low %v1578_v32, %v1586_v33  ;;  %v6955_v49 = vcombine.low %v1579_v34, %v1587_v35 }
 0x1dc   :  { %4565 = vmatpush1.bf16.msra.mxu0 %v6825_v43  ;;  %4647 = vmatpush1.bf16.msra.mxu1 %v6827_v44  ;;  %v6956_v43 = vcombine.high %v1579_v34, %v1587_v35  ;;  %v1594_v44 = vld [vmem:[#allocation7 + $0x600] sm:$0xff] }
 0x1dd   :  { %4566 = vmatprep.subr.bf16.mxu0 %v6842_v45  ;;  %4648 = vmatprep.subr.bf16.mxu1 %v6844_v46  ;;  %v1602_v45 = vld [vmem:[#allocation7 + $0x640] sm:$0xff]  ;;  %v1595_v46 = vld [vmem:[#allocation7 + $0x608] sm:$0xff] }
 0x1de   :  { %v6970_v50 = vcombine.high %v1594_v44, %v1602_v45  ;;  %v6969_v58 = vcombine.low %v1594_v44, %v1602_v45  ;;  %v6971_v59 = vcombine.low %v1595_v46, %v1603_v47  ;;  %v1674_v44 = vld [vmem:[#allocation7 + $0x880] sm:$0xff] }
 0x1e0   :  { %4567 = vmatpush1.bf16.msra.mxu0 %v6841_v52  ;;  %4649 = vmatpush1.bf16.msra.mxu1 %v6843_v54  ;;  %v6972_v52 = vcombine.high %v1595_v46, %v1603_v47  ;;  %v1610_v54 = vld [vmem:[#allocation7 + $0x680] sm:$0xff]  ;;  %v1675_v47 = vld [vmem:[#allocation7 + $0x888] sm:$0xff] }
 0x1e1   :  { %4568 = vmatprep.subr.bf16.mxu0 %v6858_v55  ;;  %4650 = vmatprep.subr.bf16.mxu1 %v6860_v56  ;;  %v1618_v55 = vld [vmem:[#allocation7 + $0x6c0] sm:$0xff]  ;;  %v1611_v56 = vld [vmem:[#allocation7 + $0x688] sm:$0xff] }
 0x1e2   :  { %v6986_v60 = vcombine.high %v1610_v54, %v1618_v55  ;;  %v1682_v46 = vld [vmem:[#allocation7 + $0x8c0] sm:$0xff] }
 0x1e4   :  { %4569 = vmatpush1.bf16.msra.mxu0 %v6857_v61  ;;  %4651 = vmatpush1.bf16.msra.mxu1 %v6859_v62  ;;  %v6988_v61 = vcombine.high %v1611_v56, %v1619_v57  ;;  %v6985_v62 = vcombine.low %v1610_v54, %v1618_v55  ;;  %v7050_v54 = vcombine.high %v1674_v44, %v1682_v46 }
 0x1e5   :  { %4570 = vmatprep.subr.bf16.mxu0 %v6874_v0  ;;  %4652 = vmatprep.subr.bf16.mxu1 %v6876_v1  ;;  %v6987_v0 = vcombine.low %v1611_v56, %v1619_v57  ;;  %v1626_v1 = vld [vmem:[#allocation7 + $0x700] sm:$0xff]  ;;  %v1691_v57 = vld [vmem:[#allocation7 + $0x908] sm:$0xff] }
 0x1e6   :  { %v7002_v4 = vcombine.high %v1626_v1, %v1634_v2  ;;  %v1698_v56 = vld [vmem:[#allocation7 + $0x940] sm:$0xff] }
 0x1e8   :  { %4571 = vmatpush1.bf16.msra.mxu0 %v6873_v6  ;;  %4653 = vmatpush1.bf16.msra.mxu1 %v6875_v39  ;;  %v7001_v6 = vcombine.low %v1626_v1, %v1634_v2  ;;  %v7003_v39 = vcombine.low %v1627_v3, %v1635_v5  ;;  %v1706_v1 = vld [vmem:[#allocation7 + $0x980] sm:$0xff] }
 0x1e9   :  { %4572 = vmatprep.subr.bf16.mxu0 %v6890_v7  ;;  %4654 = vmatprep.subr.bf16.mxu1 %v6892_v8  ;;  %v7004_v7 = vcombine.high %v1627_v3, %v1635_v5  ;;  %v1642_v8 = vld [vmem:[#allocation7 + $0x780] sm:$0xff]  ;;  %v1707_v3 = vld [vmem:[#allocation7 + $0x988] sm:$0xff] }
 0x1ea   :  { %v7018_v11 = vcombine.high %v1642_v8, %v1650_v9  ;;  %v1714_v2 = vld [vmem:[#allocation7 + $0x9c0] sm:$0xff] }
 0x1ec   :  { %4573 = vmatpush1.bf16.msra.mxu0 %v6889_v63  ;;  %4655 = vmatpush1.bf16.msra.mxu1 %v6891_v13  ;;  %v7017_v63 = vcombine.low %v1642_v8, %v1650_v9  ;;  %v7019_v13 = vcombine.low %v1643_v10, %v1651_v12  ;;  %v1722_v8 = vld [vmem:[#allocation7 + $0xa00] sm:$0xff] }
 0x1ed   :  { %4574 = vmatprep.subr.bf16.mxu0 %v6906_v14  ;;  %4656 = vmatprep.subr.bf16.mxu1 %v6908_v15  ;;  %v7020_v14 = vcombine.high %v1643_v10, %v1651_v12  ;;  %v1658_v15 = vld [vmem:[#allocation7 + $0x800] sm:$0xff]  ;;  %v1723_v10 = vld [vmem:[#allocation7 + $0xa08] sm:$0xff]  ;;  %v7081_v12 = vcombine.low %v1706_v1, %v1714_v2 }
 0x1ee   :  { %v7034_v18 = vcombine.high %v1658_v15, %v1666_v16  ;;  %v1730_v9 = vld [vmem:[#allocation7 + $0xa40] sm:$0xff] }
 0x1f0   :  { %4575 = vmatpush1.bf16.msra.mxu0 %v6905_v20  ;;  %4657 = vmatpush1.bf16.msra.mxu1 %v6907_v21  ;;  %v7033_v20 = vcombine.low %v1658_v15, %v1666_v16  ;;  %v7035_v21 = vcombine.low %v1659_v17, %v1667_v19  ;;  %v1738_v15 = vld [vmem:[#allocation7 + $0xa80] sm:$0xff] }
 0x1f1   :  { %4576 = vmatprep.subr.bf16.mxu0 %v6922_v22  ;;  %4658 = vmatprep.subr.bf16.mxu1 %v6924_v23  ;;  %v7036_v22 = vcombine.high %v1659_v17, %v1667_v19  ;;  %v8454_v23 = vld [vmem:[#allocation11] sm:$0xf]  ;;  %v1739_v17 = vld [vmem:[#allocation7 + $0xa88] sm:$0xff]  ;;  %v7097_v19 = vcombine.low %v1722_v8, %v1730_v9 }
 0x1f2   :  { %v573_v24 = vrot.slane %v8454_v23, %v8430_v38  ;;  %v577_v25 = vrot.slane %v8454_v23, %v8435_v40  ;;  %v585_v26 = vrot.slane %v8454_v23, %v8442_v51  ;;  %v1746_v16 = vld [vmem:[#allocation7 + $0xac0] sm:$0xff] }
 0x1f4   :  { %4577 = vmatpush1.bf16.msra.mxu0 %v6921_v28  ;;  %4659 = vmatpush1.bf16.msra.mxu1 %v6923_v29 }
 0x1f5   :  { %4578 = vmatprep.subr.bf16.mxu0 %v6938_v30  ;;  %4660 = vmatprep.subr.bf16.mxu1 %v6940_v31 }
 0x1f8   :  { %4579 = vmatpush1.bf16.msra.mxu0 %v6937_v36  ;;  %4661 = vmatpush1.bf16.msra.mxu1 %v6939_v41 }
 0x1f9   :  { %4580 = vmatprep.subr.bf16.mxu0 %v6954_v42  ;;  %4662 = vmatprep.subr.bf16.mxu1 %v6956_v43 }
 0x1fc   :  { %4581 = vmatpush1.bf16.msra.mxu0 %v6953_v48  ;;  %4663 = vmatpush1.bf16.msra.mxu1 %v6955_v49  ;;  %v1683_v48 = vld [vmem:[#allocation7 + $0x8c8] sm:$0xff] }
 0x1fd   :  { %4582 = vmatprep.subr.bf16.mxu0 %v6970_v50  ;;  %4664 = vmatprep.subr.bf16.mxu1 %v6972_v52  ;;  %v1690_v52 = vld [vmem:[#allocation7 + $0x900] sm:$0xff]  ;;  %v7052_v55 = vcombine.high %v1675_v47, %v1683_v48 }
 0x1fe   :  { %v7065_v5 = vcombine.low %v1690_v52, %v1698_v56 }
 0x200   :  { %4583 = vmatpush1.bf16.msra.mxu0 %v6969_v58  ;;  %4665 = vmatpush1.bf16.msra.mxu1 %v6971_v59  ;;  %v1699_v58 = vld [vmem:[#allocation7 + $0x948] sm:$0xff] }
 0x201   :  { %4584 = vmatprep.subr.bf16.mxu0 %v6986_v60  ;;  %4666 = vmatprep.subr.bf16.mxu1 %v6988_v61  ;;  %v7049_v60 = vcombine.low %v1674_v44, %v1682_v46  ;;  %v7051_v61 = vcombine.low %v1675_v47, %v1683_v48  ;;  %v1794_v46 = vld [vmem:[#allocation7 + $0xc40] sm:$0xff]  ;;  %v1787_v47 = vld [vmem:[#allocation7 + $0xc08] sm:$0xff] }
 0x202   :  { %v1795_v48 = vld [vmem:[#allocation7 + $0xc48] sm:$0xff] }
 0x204   :  { %4585 = vmatpush1.bf16.msra.mxu0 %v6985_v62  ;;  %4667 = vmatpush1.bf16.msra.mxu1 %v6987_v0  ;;  %v7066_v62 = vcombine.high %v1690_v52, %v1698_v56  ;;  %v7068_v0 = vcombine.high %v1691_v57, %v1699_v58  ;;  %v7164_v56 = vcombine.high %v1787_v47, %v1795_v48 }
 0x205   :  { %4586 = vmatprep.subr.bf16.mxu0 %v7002_v4  ;;  %4668 = vmatprep.subr.bf16.mxu1 %v7004_v7  ;;  %v1715_v4 = vld [vmem:[#allocation7 + $0x9c8] sm:$0xff] }
 0x206   :  { %v7084_v7 = vcombine.high %v1707_v3, %v1715_v4 }
 0x208   :  { %4587 = vmatpush1.bf16.msra.mxu0 %v7001_v6  ;;  %4669 = vmatpush1.bf16.msra.mxu1 %v7003_v39  ;;  %v7067_v6 = vcombine.low %v1691_v57, %v1699_v58  ;;  %v7082_v39 = vcombine.high %v1706_v1, %v1714_v2  ;;  %v1802_v57 = vld [vmem:[#allocation7 + $0xc80] sm:$0xff] }
 0x209   :  { %4588 = vmatprep.subr.bf16.mxu0 %v7018_v11  ;;  %4670 = vmatprep.subr.bf16.mxu1 %v7020_v14  ;;  %v1731_v11 = vld [vmem:[#allocation7 + $0xa48] sm:$0xff]  ;;  %v1810_v58 = vld [vmem:[#allocation7 + $0xcc0] sm:$0xff] }
 0x20a   :  { %v7100_v14 = vcombine.high %v1723_v10, %v1731_v11  ;;  %v7178_v1 = vcombine.high %v1802_v57, %v1810_v58 }
 0x20c   :  { %4589 = vmatpush1.bf16.msra.mxu0 %v7017_v63  ;;  %4671 = vmatpush1.bf16.msra.mxu1 %v7019_v13  ;;  %v7083_v63 = vcombine.low %v1707_v3, %v1715_v4  ;;  %v7098_v13 = vcombine.high %v1722_v8, %v1730_v9  ;;  %v1818_v3 = vld [vmem:[#allocation7 + $0xd00] sm:$0xff] }
 0x20d   :  { %4599 = vmatprep.subr.bf16.mxu0 %v7034_v18  ;;  %4681 = vmatprep.subr.bf16.mxu1 %v7036_v22  ;;  %v1747_v18 = vld [vmem:[#allocation7 + $0xac8] sm:$0xff]  ;;  %v1826_v4 = vld [vmem:[#allocation7 + $0xd40] sm:$0xff] }
 0x20e   :  { %v7116_v22 = vcombine.high %v1739_v17, %v1747_v18  ;;  %v7194_v8 = vcombine.high %v1818_v3, %v1826_v4 }
 0x2a2   :  { %v1305_v27 = vpop.f32.mrb[4].mxu0  ;;  %v8462_v28 = vpop.f32.mrb[4].mxu1 }
 0x2a3   :  { %v7594_v29 = vadd.f32 %v1305_v27, %v573_v24  ;;  %v1307_v30 = vpop.f32.mrb[5].mxu0  ;;  %v1389_v31 = vpop.f32.mrb[5].mxu1  ;;  %v1754_v24 = vld [vmem:[#allocation7 + $0xb00] sm:$0xff]  ;;  %v1763_v27 = vld [vmem:[#allocation7 + $0xb48] sm:$0xff] }
 0x2a4   :  { %v7595_v32 = vadd.f32 %v1307_v30, %v577_v25  ;;  %v7597_v33 = vadd.f32 %v1389_v31, %v585_v26  ;;  %v1309_v34 = vpop.f32.mrb[6].mxu0  ;;  %v1391_v35 = vpop.f32.mrb[6].mxu1  ;;  %v1762_v25 = vld [vmem:[#allocation7 + $0xb40] sm:$0xff]  ;;  %v1755_v26 = vld [vmem:[#allocation7 + $0xb08] sm:$0xff]  ;;  %v7115_v30 = vcombine.low %v1739_v17, %v1747_v18 }
 0x2a5   :  { %v1394_v36 = vmax.f32 %v7594_v29, 0.0  ;;  %v1310_v41 = vpop.f32.mrb[7].mxu0  ;;  %v1392_v42 = vpop.f32.mrb[7].mxu1  ;;  %v7113_v29 = vcombine.low %v1738_v15, %v1746_v16  ;;  %v7130_v31 = vcombine.high %v1754_v24, %v1762_v25  ;;  %v1778_v34 = vld [vmem:[#allocation7 + $0xbc0] sm:$0xff]  ;;  %v1771_v35 = vld [vmem:[#allocation7 + $0xb88] sm:$0xff] }
 0x2a6   :  { %v1395_v43 = vmax.f32 %v7595_v32, 0.0  ;;  %v1397_v45 = vmax.f32 %v7597_v33, 0.0  ;;  %v7132_v32 = vcombine.high %v1755_v26, %v1763_v27  ;;  %v1770_v33 = vld [vmem:[#allocation7 + $0xb80] sm:$0xff]  ;;  %v7129_v41 = vcombine.low %v1754_v24, %v1762_v25 }
 0x2a7   :  { %v8466_v50 = vpack.c.bf16 %v1394_v36, %v1394_v36  ;;  %v1779_v36 = vld [vmem:[#allocation7 + $0xbc8] sm:$0xff]  ;;  %v7131_v42 = vcombine.low %v1755_v26, %v1763_v27  ;;  %v7145_v52 = vcombine.low %v1770_v33, %v1778_v34  ;;  %v1850_v17 = vld [vmem:[#allocation7 + $0xe00] sm:$0xff] }
 0x2a8   :  { %v8464_v49 = vpack.c.bf16 %v1395_v43, %v1395_v43  ;;  %v8470_v59 = vpack.c.bf16 %v1397_v45, %v1397_v45  ;;  %v7146_v43 = vcombine.high %v1770_v33, %v1778_v34  ;;  %v7148_v44 = vcombine.high %v1771_v35, %v1779_v36  ;;  %v1786_v45 = vld [vmem:[#allocation7 + $0xc00] sm:$0xff] }
 0x2a9   :  { %v1858_v18 = vld [vmem:[#allocation7 + $0xe40] sm:$0xff] }
 0x2aa   :  { %4590 = vmatprep.mubr.bf16.mxu0 %v8464_v49  ;;  %4672 = vmatprep.mubr.bf16.mxu1 %v8464_v49  ;;  %v7226_v24 = vcombine.high %v1850_v17, %v1858_v18  ;;  %v1866_v26 = vld [vmem:[#allocation7 + $0xe80] sm:$0xff] }
 0x2ab   :  { %4591 = vmatmul.mubr.bf16.vlgmr.msra.gmra.mrb[8].mxu0 %v8466_v50  ;;  %4673 = vmatmul.mubr.bf16.vlgmr.msra.gmra.mrb[8].mxu1 %v8466_v50  ;;  %v1874_v27 = vld [vmem:[#allocation7 + $0xec0] sm:$0xff] }
 0x2ac   :  { %4600 = vmatpush1.bf16.msra.mxu0 %v7033_v20  ;;  %4682 = vmatpush1.bf16.msra.mxu1 %v7035_v21  ;;  %v7099_v20 = vcombine.low %v1723_v10, %v1731_v11  ;;  %v7114_v21 = vcombine.high %v1738_v15, %v1746_v16  ;;  %v1834_v10 = vld [vmem:[#allocation7 + $0xd80] sm:$0xff]  ;;  %v7242_v33 = vcombine.high %v1866_v26, %v1874_v27 }
 0x2ad   :  { %4631 = vmatprep.mubr.bf16.mxu0 %v8470_v59  ;;  %4713 = vmatprep.mubr.bf16.mxu1 %v8470_v59  ;;  %v1842_v11 = vld [vmem:[#allocation7 + $0xdc0] sm:$0xff] }
 0x2ae   :  { %4601 = vmatprep.subr.bf16.mxu0 %v7050_v54  ;;  %4683 = vmatprep.subr.bf16.mxu1 %v7052_v55  ;;  %v7147_v54 = vcombine.low %v1771_v35, %v1779_v36  ;;  %v7162_v55 = vcombine.high %v1786_v45, %v1794_v46  ;;  %v7210_v15 = vcombine.high %v1834_v10, %v1842_v11  ;;  %v1882_v35 = vld [vmem:[#allocation7 + $0xf00] sm:$0xff] }
 0x2af   :  { %v1890_v36 = vld [vmem:[#allocation7 + $0xf40] sm:$0xff] }
 0x2b0   :  { %4602 = vmatpush1.bf16.msra.mxu0 %v7049_v60  ;;  %4684 = vmatpush1.bf16.msra.mxu1 %v7051_v61  ;;  %v1803_v60 = vld [vmem:[#allocation7 + $0xc88] sm:$0xff] }
 0x2b1   :  { %4603 = vmatprep.subr.bf16.mxu0 %v7066_v62  ;;  %4685 = vmatprep.subr.bf16.mxu1 %v7068_v0  ;;  %v1811_v61 = vld [vmem:[#allocation7 + $0xcc8] sm:$0xff]  ;;  %v7161_v62 = vcombine.low %v1786_v45, %v1794_v46  ;;  %v7163_v0 = vcombine.low %v1787_v47, %v1795_v48  ;;  %v581_v45 = vrot.slane %v8454_v23, %v8449_v53  ;;  %v1898_v48 = vld [vmem:[#allocation7 + $0xf80] sm:$0xff]  ;;  %v1412_v23 = vld [vmem:[#allocation7 + $0x50] sm:$0xff] }
 0x2b2   :  { %v7180_v2 = vcombine.high %v1803_v60, %v1811_v61  ;;  %v7258_v46 = vcombine.high %v1882_v35, %v1890_v36 }
 0x2b4   :  { %4604 = vmatpush1.bf16.msra.mxu0 %v7065_v5  ;;  %4686 = vmatpush1.bf16.msra.mxu1 %v7067_v6  ;;  %v1819_v5 = vld [vmem:[#allocation7 + $0xd08] sm:$0xff] }
 0x2b5   :  { %4605 = vmatprep.subr.bf16.mxu0 %v7082_v39  ;;  %4687 = vmatprep.subr.bf16.mxu1 %v7084_v7  ;;  %v1827_v6 = vld [vmem:[#allocation7 + $0xd48] sm:$0xff]  ;;  %v7177_v39 = vcombine.low %v1802_v57, %v1810_v58  ;;  %v7179_v7 = vcombine.low %v1803_v60, %v1811_v61  ;;  %v7596_v58 = vadd.f32 %v8462_v28, %v581_v45  ;;  %v1421_v28 = vld [vmem:[#allocation7 + $0x98] sm:$0xff] }
 0x2b6   :  { %v7196_v9 = vcombine.high %v1819_v5, %v1827_v6  ;;  %v1485_v45 = vld [vmem:[#allocation7 + $0x298] sm:$0xff] }
 0x2b8   :  { %4606 = vmatpush1.bf16.msra.mxu0 %v7081_v12  ;;  %4688 = vmatpush1.bf16.msra.mxu1 %v7083_v63  ;;  %v1835_v12 = vld [vmem:[#allocation7 + $0xd88] sm:$0xff] }
 0x2b9   :  { %4607 = vmatprep.subr.bf16.mxu0 %v7098_v13  ;;  %4689 = vmatprep.subr.bf16.mxu1 %v7100_v14  ;;  %v1843_v63 = vld [vmem:[#allocation7 + $0xdc8] sm:$0xff]  ;;  %v7193_v13 = vcombine.low %v1818_v3, %v1826_v4  ;;  %v7195_v14 = vcombine.low %v1819_v5, %v1827_v6  ;;  %v1396_v4 = vmax.f32 %v7596_v58, 0.0  ;;  %v1509_v58 = vld [vmem:[#allocation7 + $0x358] sm:$0xff] }
 0x2ba   :  { %v7212_v16 = vcombine.high %v1835_v12, %v1843_v63 }
 0x2bc   :  { %4608 = vmatpush1.bf16.msra.mxu0 %v7097_v19  ;;  %4690 = vmatpush1.bf16.msra.mxu1 %v7099_v20  ;;  %v1851_v19 = vld [vmem:[#allocation7 + $0xe08] sm:$0xff] }
 0x2bd   :  { %4609 = vmatprep.subr.bf16.mxu0 %v7114_v21  ;;  %4691 = vmatprep.subr.bf16.mxu1 %v7116_v22  ;;  %v1859_v20 = vld [vmem:[#allocation7 + $0xe48] sm:$0xff]  ;;  %v7209_v21 = vcombine.low %v1834_v10, %v1842_v11  ;;  %v7211_v22 = vcombine.low %v1835_v12, %v1843_v63  ;;  %v8479_v10 = vpack.c.bf16 %v1396_v4, %v1396_v4 }
 0x2be   :  { %v7228_v25 = vcombine.high %v1851_v19, %v1859_v20 }
 0x2c0   :  { %4610 = vmatpush1.bf16.msra.mxu0 %v7113_v29  ;;  %4692 = vmatpush1.bf16.msra.mxu1 %v7115_v30  ;;  %v1867_v29 = vld [vmem:[#allocation7 + $0xe88] sm:$0xff] }
 0x2c1   :  { %4611 = vmatprep.subr.bf16.mxu0 %v7130_v31  ;;  %4693 = vmatprep.subr.bf16.mxu1 %v7132_v32  ;;  %v1875_v30 = vld [vmem:[#allocation7 + $0xec8] sm:$0xff]  ;;  %v7225_v31 = vcombine.low %v1850_v17, %v1858_v18  ;;  %v7227_v32 = vcombine.low %v1851_v19, %v1859_v20 }
 0x2c2   :  { %v7244_v34 = vcombine.high %v1867_v29, %v1875_v30 }
 0x2c4   :  { %4612 = vmatpush1.bf16.msra.mxu0 %v7129_v41  ;;  %4694 = vmatpush1.bf16.msra.mxu1 %v7131_v42  ;;  %v1883_v41 = vld [vmem:[#allocation7 + $0xf08] sm:$0xff] }
 0x2c5   :  { %4613 = vmatprep.subr.bf16.mxu0 %v7146_v43  ;;  %4695 = vmatprep.subr.bf16.mxu1 %v7148_v44  ;;  %v1891_v42 = vld [vmem:[#allocation7 + $0xf48] sm:$0xff]  ;;  %v7241_v43 = vcombine.low %v1866_v26, %v1874_v27  ;;  %v7243_v44 = vcombine.low %v1867_v29, %v1875_v30 }
 0x2c6   :  { %v7260_v47 = vcombine.high %v1883_v41, %v1891_v42  ;;  %v7259_v57 = vcombine.low %v1883_v41, %v1891_v42 }
 0x2c8   :  { %4614 = vmatpush1.bf16.msra.mxu0 %v7145_v52  ;;  %4696 = vmatpush1.bf16.msra.mxu1 %v7147_v54  ;;  %v1906_v52 = vld [vmem:[#allocation7 + $0xfc0] sm:$0xff]  ;;  %v1899_v54 = vld [vmem:[#allocation7 + $0xf88] sm:$0xff] }
 0x2c9   :  { %4615 = vmatprep.subr.bf16.mxu0 %v7162_v55  ;;  %4697 = vmatprep.subr.bf16.mxu1 %v7164_v56  ;;  %v1907_v55 = vld [vmem:[#allocation7 + $0xfc8] sm:$0xff]  ;;  %v7257_v56 = vcombine.low %v1882_v35, %v1890_v36  ;;  %v7274_v60 = vcombine.high %v1898_v48, %v1906_v52 }
 0x2ca   :  { %v7276_v61 = vcombine.high %v1899_v54, %v1907_v55  ;;  %v7275_v3 = vcombine.low %v1899_v54, %v1907_v55  ;;  %v1500_v55 = vld [vmem:[#allocation7 + $0x310] sm:$0xff] }
 0x2cc   :  { %4616 = vmatpush1.bf16.msra.mxu0 %v7161_v62  ;;  %4698 = vmatpush1.bf16.msra.mxu1 %v7163_v0  ;;  %v1404_v62 = vld [vmem:[#allocation7 + $0x10] sm:$0xff]  ;;  %v1405_v0 = vld [vmem:[#allocation7 + $0x18] sm:$0xff] }
 0x2cd   :  { %4617 = vmatprep.subr.bf16.mxu0 %v7178_v1  ;;  %4699 = vmatprep.subr.bf16.mxu1 %v7180_v2  ;;  %v1413_v1 = vld [vmem:[#allocation7 + $0x58] sm:$0xff]  ;;  %v7273_v2 = vcombine.low %v1898_v48, %v1906_v52  ;;  %v6782_v5 = vcombine.high %v1404_v62, %v1412_v23 }
 0x2ce   :  { %v6784_v6 = vcombine.high %v1405_v0, %v1413_v1  ;;  %v6783_v11 = vcombine.low %v1405_v0, %v1413_v1  ;;  %v1516_v0 = vld [vmem:[#allocation7 + $0x390] sm:$0xff] }
 0x2cf   :  { %v1524_v1 = vld [vmem:[#allocation7 + $0x3d0] sm:$0xff] }
 0x2d0   :  { %4618 = vmatpush1.bf16.msra.mxu0 %v7177_v39  ;;  %4700 = vmatpush1.bf16.msra.mxu1 %v7179_v7  ;;  %v1420_v39 = vld [vmem:[#allocation7 + $0x90] sm:$0xff] }
 0x2d1   :  { %4619 = vmatprep.subr.bf16.mxu0 %v7194_v8  ;;  %4701 = vmatprep.subr.bf16.mxu1 %v7196_v9  ;;  %v1428_v7 = vld [vmem:[#allocation7 + $0xd0] sm:$0xff]  ;;  %v1429_v8 = vld [vmem:[#allocation7 + $0xd8] sm:$0xff]  ;;  %v6781_v9 = vcombine.low %v1404_v62, %v1412_v23 }
 0x2d2   :  { %v6798_v12 = vcombine.high %v1420_v39, %v1428_v7  ;;  %v6800_v63 = vcombine.high %v1421_v28, %v1429_v8  ;;  %v6797_v17 = vcombine.low %v1420_v39, %v1428_v7  ;;  %v6799_v18 = vcombine.low %v1421_v28, %v1429_v8  ;;  %v1532_v7 = vld [vmem:[#allocation7 + $0x410] sm:$0xff]  ;;  %v1533_v8 = vld [vmem:[#allocation7 + $0x418] sm:$0xff] }
 0x2d3   :  { %v1540_v28 = vld [vmem:[#allocation7 + $0x450] sm:$0xff] }
 0x2d4   :  { %4620 = vmatpush1.bf16.msra.mxu0 %v7193_v13  ;;  %4702 = vmatpush1.bf16.msra.mxu1 %v7195_v14  ;;  %v1436_v13 = vld [vmem:[#allocation7 + $0x110] sm:$0xff] }
 0x2d5   :  { %4621 = vmatprep.subr.bf16.mxu0 %v7210_v15  ;;  %4703 = vmatprep.subr.bf16.mxu1 %v7212_v16  ;;  %v1444_v14 = vld [vmem:[#allocation7 + $0x150] sm:$0xff]  ;;  %v1437_v15 = vld [vmem:[#allocation7 + $0x118] sm:$0xff] }
 0x2d6   :  { %v1445_v16 = vld [vmem:[#allocation7 + $0x158] sm:$0xff]  ;;  %v6814_v19 = vcombine.high %v1436_v13, %v1444_v14  ;;  %v6813_v26 = vcombine.low %v1436_v13, %v1444_v14  ;;  %v1548_v14 = vld [vmem:[#allocation7 + $0x490] sm:$0xff] }
 0x2d7   :  { %v6816_v20 = vcombine.high %v1437_v15, %v1445_v16  ;;  %v6815_v27 = vcombine.low %v1437_v15, %v1445_v16  ;;  %v1556_v15 = vld [vmem:[#allocation7 + $0x4d0] sm:$0xff]  ;;  %v1549_v16 = vld [vmem:[#allocation7 + $0x498] sm:$0xff] }
 0x2d8   :  { %4622 = vmatpush1.bf16.msra.mxu0 %v7209_v21  ;;  %4704 = vmatpush1.bf16.msra.mxu1 %v7211_v22  ;;  %v1452_v21 = vld [vmem:[#allocation7 + $0x190] sm:$0xff] }
 0x2d9   :  { %4623 = vmatprep.subr.bf16.mxu0 %v7226_v24  ;;  %4705 = vmatprep.subr.bf16.mxu1 %v7228_v25  ;;  %v1460_v22 = vld [vmem:[#allocation7 + $0x1d0] sm:$0xff]  ;;  %v1453_v24 = vld [vmem:[#allocation7 + $0x198] sm:$0xff] }
 0x2da   :  { %v1461_v25 = vld [vmem:[#allocation7 + $0x1d8] sm:$0xff]  ;;  %v6830_v29 = vcombine.high %v1452_v21, %v1460_v22  ;;  %v6829_v35 = vcombine.low %v1452_v21, %v1460_v22  ;;  %v1564_v22 = vld [vmem:[#allocation7 + $0x510] sm:$0xff] }
 0x2db   :  { %v6832_v30 = vcombine.high %v1453_v24, %v1461_v25  ;;  %v6831_v36 = vcombine.low %v1453_v24, %v1461_v25  ;;  %v1572_v24 = vld [vmem:[#allocation7 + $0x550] sm:$0xff]  ;;  %v1565_v25 = vld [vmem:[#allocation7 + $0x518] sm:$0xff] }
 0x2dc   :  { %4624 = vmatpush1.bf16.msra.mxu0 %v7225_v31  ;;  %4706 = vmatpush1.bf16.msra.mxu1 %v7227_v32  ;;  %v1468_v31 = vld [vmem:[#allocation7 + $0x210] sm:$0xff] }
 0x2dd   :  { %4625 = vmatprep.subr.bf16.mxu0 %v7242_v33  ;;  %4707 = vmatprep.subr.bf16.mxu1 %v7244_v34  ;;  %v1476_v32 = vld [vmem:[#allocation7 + $0x250] sm:$0xff]  ;;  %v1469_v33 = vld [vmem:[#allocation7 + $0x218] sm:$0xff] }
 0x2de   :  { %v1477_v34 = vld [vmem:[#allocation7 + $0x258] sm:$0xff]  ;;  %v6846_v41 = vcombine.high %v1468_v31, %v1476_v32 }
 0x2df   :  { %v6848_v42 = vcombine.high %v1469_v33, %v1477_v34  ;;  %v6847_v48 = vcombine.low %v1469_v33, %v1477_v34  ;;  %v1588_v33 = vld [vmem:[#allocation7 + $0x5d0] sm:$0xff]  ;;  %v1581_v34 = vld [vmem:[#allocation7 + $0x598] sm:$0xff] }
 0x2e0   :  { %4626 = vmatpush1.bf16.msra.mxu0 %v7241_v43  ;;  %4708 = vmatpush1.bf16.msra.mxu1 %v7243_v44  ;;  %v1484_v43 = vld [vmem:[#allocation7 + $0x290] sm:$0xff] }
 0x2e1   :  { %4627 = vmatprep.subr.bf16.mxu0 %v7258_v46  ;;  %4709 = vmatprep.subr.bf16.mxu1 %v7260_v47  ;;  %v1492_v44 = vld [vmem:[#allocation7 + $0x2d0] sm:$0xff]  ;;  %v1493_v46 = vld [vmem:[#allocation7 + $0x2d8] sm:$0xff]  ;;  %v6845_v47 = vcombine.low %v1468_v31, %v1476_v32 }
 0x2e2   :  { %v6862_v52 = vcombine.high %v1484_v43, %v1492_v44  ;;  %v6864_v54 = vcombine.high %v1485_v45, %v1493_v46  ;;  %v1580_v32 = vld [vmem:[#allocation7 + $0x590] sm:$0xff] }
 0x2e4   :  { %4628 = vmatpush1.bf16.msra.mxu0 %v7257_v56  ;;  %4710 = vmatpush1.bf16.msra.mxu1 %v7259_v57  ;;  %v1508_v56 = vld [vmem:[#allocation7 + $0x350] sm:$0xff]  ;;  %v1501_v57 = vld [vmem:[#allocation7 + $0x318] sm:$0xff] }
 0x2e5   :  { %4629 = vmatprep.subr.bf16.mxu0 %v7274_v60  ;;  %4711 = vmatprep.subr.bf16.mxu1 %v7276_v61  ;;  %v6861_v60 = vcombine.low %v1484_v43, %v1492_v44  ;;  %v6863_v61 = vcombine.low %v1485_v45, %v1493_v46  ;;  %v6878_v62 = vcombine.high %v1500_v55, %v1508_v56  ;;  %v1596_v44 = vld [vmem:[#allocation7 + $0x610] sm:$0xff]  ;;  %v1597_v46 = vld [vmem:[#allocation7 + $0x618] sm:$0xff] }
 0x2e6   :  { %v6880_v23 = vcombine.high %v1501_v57, %v1509_v58  ;;  %v6877_v4 = vcombine.low %v1500_v55, %v1508_v56  ;;  %v1604_v45 = vld [vmem:[#allocation7 + $0x650] sm:$0xff] }
 0x2e7   :  { %v1612_v56 = vld [vmem:[#allocation7 + $0x690] sm:$0xff] }
 0x2e8   :  { %4630 = vmatpush1.bf16.msra.mxu0 %v7273_v2  ;;  %4712 = vmatpush1.bf16.msra.mxu1 %v7275_v3  ;;  %v1517_v2 = vld [vmem:[#allocation7 + $0x398] sm:$0xff] }
 0x2e9   :  { %4722 = vmatprep.subr.bf16.mxu0 %v6782_v5  ;;  %4804 = vmatprep.subr.bf16.mxu1 %v6784_v6  ;;  %v1525_v3 = vld [vmem:[#allocation7 + $0x3d8] sm:$0xff]  ;;  %v6879_v5 = vcombine.low %v1501_v57, %v1509_v58  ;;  %v6894_v6 = vcombine.high %v1516_v0, %v1524_v1  ;;  %v1620_v57 = vld [vmem:[#allocation7 + $0x6d0] sm:$0xff] }
 0x2ea   :  { %v6896_v39 = vcombine.high %v1517_v2, %v1525_v3  ;;  %v1613_v58 = vld [vmem:[#allocation7 + $0x698] sm:$0xff] }
 0x2eb   :  { %4632 = vmatmul.mubr.bf16.vlgmr.msra.gmra.mrb[8].mxu0 %v8479_v10  ;;  %4714 = vmatmul.mubr.bf16.vlgmr.msra.gmra.mrb[8].mxu1 %v8479_v10 }
 0x2ec   :  { %4723 = vmatpush1.bf16.msra.mxu0 %v6781_v9  ;;  %4754 = vmatprep.mubr.bf16.mxu0 %v8464_v49  ;;  %v1541_v9 = vld [vmem:[#allocation7 + $0x458] sm:$0xff] }
 0x2ed   :  { %4805 = vmatpush1.bf16.msra.mxu1 %v6783_v11  ;;  %4836 = vmatprep.mubr.bf16.mxu1 %v8464_v49  ;;  %v6893_v11 = vcombine.low %v1516_v0, %v1524_v1  ;;  %v6912_v13 = vcombine.high %v1533_v8, %v1541_v9  ;;  %v1628_v1 = vld [vmem:[#allocation7 + $0x710] sm:$0xff] }
 0x2ee   :  { %4724 = vmatprep.subr.bf16.mxu0 %v6798_v12  ;;  %4806 = vmatprep.subr.bf16.mxu1 %v6800_v63  ;;  %v6895_v12 = vcombine.low %v1517_v2, %v1525_v3  ;;  %v6910_v63 = vcombine.high %v1532_v7, %v1540_v28  ;;  %v1636_v2 = vld [vmem:[#allocation7 + $0x750] sm:$0xff]  ;;  %v1629_v3 = vld [vmem:[#allocation7 + $0x718] sm:$0xff] }
 0x2f0   :  { %4725 = vmatpush1.bf16.msra.mxu0 %v6797_v17  ;;  %v1557_v17 = vld [vmem:[#allocation7 + $0x4d8] sm:$0xff] }
 0x2f1   :  { %4807 = vmatpush1.bf16.msra.mxu1 %v6799_v18  ;;  %4726 = vmatprep.subr.bf16.mxu0 %v6814_v19  ;;  %v6909_v18 = vcombine.low %v1532_v7, %v1540_v28  ;;  %v6911_v19 = vcombine.low %v1533_v8, %v1541_v9  ;;  %v6928_v21 = vcombine.high %v1549_v16, %v1557_v17  ;;  %v1644_v28 = vld [vmem:[#allocation7 + $0x790] sm:$0xff]  ;;  %v1645_v9 = vld [vmem:[#allocation7 + $0x798] sm:$0xff] }
 0x2f2   :  { %4808 = vmatprep.subr.bf16.mxu1 %v6816_v20  ;;  %v6926_v20 = vcombine.high %v1548_v14, %v1556_v15  ;;  %v1652_v8 = vld [vmem:[#allocation7 + $0x7d0] sm:$0xff] }
 0x2f4   :  { %4727 = vmatpush1.bf16.msra.mxu0 %v6813_v26  ;;  %v1573_v26 = vld [vmem:[#allocation7 + $0x558] sm:$0xff] }
 0x2f5   :  { %4809 = vmatpush1.bf16.msra.mxu1 %v6815_v27  ;;  %4728 = vmatprep.subr.bf16.mxu0 %v6830_v29  ;;  %v6925_v27 = vcombine.low %v1548_v14, %v1556_v15  ;;  %v6927_v29 = vcombine.low %v1549_v16, %v1557_v17  ;;  %v6944_v31 = vcombine.high %v1565_v25, %v1573_v26  ;;  %v1660_v15 = vld [vmem:[#allocation7 + $0x810] sm:$0xff]  ;;  %v1661_v17 = vld [vmem:[#allocation7 + $0x818] sm:$0xff] }
 0x2f6   :  { %4810 = vmatprep.subr.bf16.mxu1 %v6832_v30  ;;  %v6942_v30 = vcombine.high %v1564_v22, %v1572_v24  ;;  %v1668_v16 = vld [vmem:[#allocation7 + $0x850] sm:$0xff] }
 0x2f8   :  { %4729 = vmatpush1.bf16.msra.mxu0 %v6829_v35  ;;  %v1589_v35 = vld [vmem:[#allocation7 + $0x5d8] sm:$0xff] }
 0x2f9   :  { %4811 = vmatpush1.bf16.msra.mxu1 %v6831_v36  ;;  %4730 = vmatprep.subr.bf16.mxu0 %v6846_v41  ;;  %v6941_v36 = vcombine.low %v1564_v22, %v1572_v24  ;;  %v6943_v41 = vcombine.low %v1565_v25, %v1573_v26  ;;  %v6960_v43 = vcombine.high %v1581_v34, %v1589_v35  ;;  %v1676_v24 = vld [vmem:[#allocation7 + $0x890] sm:$0xff] }
 0x2fa   :  { %4812 = vmatprep.subr.bf16.mxu1 %v6848_v42  ;;  %v6958_v42 = vcombine.high %v1580_v32, %v1588_v33  ;;  %v1684_v25 = vld [vmem:[#allocation7 + $0x8d0] sm:$0xff]  ;;  %v7037_v26 = vcombine.low %v1660_v15, %v1668_v16 }
 0x2fc   :  { %4731 = vmatpush1.bf16.msra.mxu0 %v6845_v47  ;;  %v1605_v47 = vld [vmem:[#allocation7 + $0x658] sm:$0xff] }
 0x2fd   :  { %4813 = vmatpush1.bf16.msra.mxu1 %v6847_v48  ;;  %4732 = vmatprep.subr.bf16.mxu0 %v6862_v52  ;;  %v6957_v48 = vcombine.low %v1580_v32, %v1588_v33  ;;  %v6959_v52 = vcombine.low %v1581_v34, %v1589_v35  ;;  %v6976_v55 = vcombine.high %v1597_v46, %v1605_v47  ;;  %v1692_v32 = vld [vmem:[#allocation7 + $0x910] sm:$0xff]  ;;  %v1693_v35 = vld [vmem:[#allocation7 + $0x918] sm:$0xff] }
 0x2fe   :  { %4814 = vmatprep.subr.bf16.mxu1 %v6864_v54  ;;  %v6974_v54 = vcombine.high %v1596_v44, %v1604_v45  ;;  %v1700_v33 = vld [vmem:[#allocation7 + $0x950] sm:$0xff] }
 0x300   :  { %4733 = vmatpush1.bf16.msra.mxu0 %v6861_v60  ;;  %v1621_v60 = vld [vmem:[#allocation7 + $0x6d8] sm:$0xff] }
 0x301   :  { %4815 = vmatpush1.bf16.msra.mxu1 %v6863_v61  ;;  %4734 = vmatprep.subr.bf16.mxu0 %v6878_v62  ;;  %v6973_v61 = vcombine.low %v1596_v44, %v1604_v45  ;;  %v6975_v62 = vcombine.low %v1597_v46, %v1605_v47  ;;  %v6992_v0 = vcombine.high %v1613_v58, %v1621_v60  ;;  %v1708_v45 = vld [vmem:[#allocation7 + $0x990] sm:$0xff]  ;;  %v1709_v47 = vld [vmem:[#allocation7 + $0x998] sm:$0xff] }
 0x302   :  { %4816 = vmatprep.subr.bf16.mxu1 %v6880_v23  ;;  %v6990_v23 = vcombine.high %v1612_v56, %v1620_v57  ;;  %v1716_v46 = vld [vmem:[#allocation7 + $0x9d0] sm:$0xff] }
 0x304   :  { %4735 = vmatpush1.bf16.msra.mxu0 %v6877_v4  ;;  %v1637_v4 = vld [vmem:[#allocation7 + $0x758] sm:$0xff] }
 0x305   :  { %4817 = vmatpush1.bf16.msra.mxu1 %v6879_v5  ;;  %4736 = vmatprep.subr.bf16.mxu0 %v6894_v6  ;;  %v6989_v5 = vcombine.low %v1612_v56, %v1620_v57  ;;  %v6991_v6 = vcombine.low %v1613_v58, %v1621_v60  ;;  %v7008_v7 = vcombine.high %v1629_v3, %v1637_v4  ;;  %v1724_v57 = vld [vmem:[#allocation7 + $0xa10] sm:$0xff]  ;;  %v1725_v60 = vld [vmem:[#allocation7 + $0xa18] sm:$0xff] }
 0x306   :  { %4818 = vmatprep.subr.bf16.mxu1 %v6896_v39  ;;  %v7006_v39 = vcombine.high %v1628_v1, %v1636_v2  ;;  %v1732_v58 = vld [vmem:[#allocation7 + $0xa50] sm:$0xff] }
 0x308   :  { %4737 = vmatpush1.bf16.msra.mxu0 %v6893_v11  ;;  %v1653_v11 = vld [vmem:[#allocation7 + $0x7d8] sm:$0xff] }
 0x309   :  { %4819 = vmatpush1.bf16.msra.mxu1 %v6895_v12  ;;  %4738 = vmatprep.subr.bf16.mxu0 %v6910_v63  ;;  %v7005_v12 = vcombine.low %v1628_v1, %v1636_v2  ;;  %v7007_v63 = vcombine.low %v1629_v3, %v1637_v4  ;;  %v7024_v14 = vcombine.high %v1645_v9, %v1653_v11  ;;  %v1740_v2 = vld [vmem:[#allocation7 + $0xa90] sm:$0xff]  ;;  %v1741_v4 = vld [vmem:[#allocation7 + $0xa98] sm:$0xff] }
 0x30a   :  { %4820 = vmatprep.subr.bf16.mxu1 %v6912_v13  ;;  %v7022_v13 = vcombine.high %v1644_v28, %v1652_v8  ;;  %v1748_v3 = vld [vmem:[#allocation7 + $0xad0] sm:$0xff] }
 0x30c   :  { %4739 = vmatpush1.bf16.msra.mxu0 %v6909_v18  ;;  %v1669_v18 = vld [vmem:[#allocation7 + $0x858] sm:$0xff] }
 0x30d   :  { %4821 = vmatpush1.bf16.msra.mxu1 %v6911_v19  ;;  %4740 = vmatprep.subr.bf16.mxu0 %v6926_v20  ;;  %v7021_v19 = vcombine.low %v1644_v28, %v1652_v8  ;;  %v7023_v20 = vcombine.low %v1645_v9, %v1653_v11  ;;  %v7040_v22 = vcombine.high %v1661_v17, %v1669_v18  ;;  %v1756_v8 = vld [vmem:[#allocation7 + $0xb10] sm:$0xff]  ;;  %v1757_v11 = vld [vmem:[#allocation7 + $0xb18] sm:$0xff] }
 0x30e   :  { %4822 = vmatprep.subr.bf16.mxu1 %v6928_v21  ;;  %v7038_v21 = vcombine.high %v1660_v15, %v1668_v16  ;;  %v1764_v9 = vld [vmem:[#allocation7 + $0xb50] sm:$0xff] }
 0x30f   :  { %v1772_v16 = vld [vmem:[#allocation7 + $0xb90] sm:$0xff] }
 0x310   :  { %4741 = vmatpush1.bf16.msra.mxu0 %v6925_v27  ;;  %v1677_v27 = vld [vmem:[#allocation7 + $0x898] sm:$0xff] }
 0x311   :  { %4823 = vmatpush1.bf16.msra.mxu1 %v6927_v29  ;;  %4742 = vmatprep.subr.bf16.mxu0 %v6942_v30  ;;  %v1685_v29 = vld [vmem:[#allocation7 + $0x8d8] sm:$0xff]  ;;  %v7039_v30 = vcombine.low %v1661_v17, %v1669_v18  ;;  %v1780_v17 = vld [vmem:[#allocation7 + $0xbd0] sm:$0xff] }
 0x312   :  { %4824 = vmatprep.subr.bf16.mxu1 %v6944_v31  ;;  %v7054_v31 = vcombine.high %v1676_v24, %v1684_v25  ;;  %v7056_v34 = vcombine.high %v1677_v27, %v1685_v29  ;;  %v1773_v18 = vld [vmem:[#allocation7 + $0xb98] sm:$0xff] }
 0x314   :  { %4743 = vmatpush1.bf16.msra.mxu0 %v6941_v36  ;;  %v1701_v36 = vld [vmem:[#allocation7 + $0x958] sm:$0xff] }
 0x315   :  { %4825 = vmatpush1.bf16.msra.mxu1 %v6943_v41  ;;  %4744 = vmatprep.subr.bf16.mxu0 %v6958_v42  ;;  %v7053_v41 = vcombine.low %v1676_v24, %v1684_v25  ;;  %v7055_v42 = vcombine.low %v1677_v27, %v1685_v29  ;;  %v7072_v44 = vcombine.high %v1693_v35, %v1701_v36  ;;  %v1788_v25 = vld [vmem:[#allocation7 + $0xc10] sm:$0xff]  ;;  %v1789_v27 = vld [vmem:[#allocation7 + $0xc18] sm:$0xff] }
 0x316   :  { %4826 = vmatprep.subr.bf16.mxu1 %v6960_v43  ;;  %v7070_v43 = vcombine.high %v1692_v32, %v1700_v33  ;;  %v1797_v29 = vld [vmem:[#allocation7 + $0xc58] sm:$0xff] }
 0x318   :  { %4745 = vmatpush1.bf16.msra.mxu0 %v6957_v48  ;;  %v1717_v48 = vld [vmem:[#allocation7 + $0x9d8] sm:$0xff] }
 0x319   :  { %4827 = vmatpush1.bf16.msra.mxu1 %v6959_v52  ;;  %4746 = vmatprep.subr.bf16.mxu0 %v6974_v54  ;;  %v7069_v52 = vcombine.low %v1692_v32, %v1700_v33  ;;  %v7071_v54 = vcombine.low %v1693_v35, %v1701_v36  ;;  %v7088_v56 = vcombine.high %v1709_v47, %v1717_v48  ;;  %v1812_v35 = vld [vmem:[#allocation7 + $0xcd0] sm:$0xff]  ;;  %v1805_v36 = vld [vmem:[#allocation7 + $0xc98] sm:$0xff] }
 0x31a   :  { %4828 = vmatprep.subr.bf16.mxu1 %v6976_v55  ;;  %v7086_v55 = vcombine.high %v1708_v45, %v1716_v46  ;;  %v7168_v33 = vcombine.high %v1789_v27, %v1797_v29 }
 0x31c   :  { %4747 = vmatpush1.bf16.msra.mxu0 %v6973_v61  ;;  %v1733_v61 = vld [vmem:[#allocation7 + $0xa58] sm:$0xff] }
 0x31d   :  { %4829 = vmatpush1.bf16.msra.mxu1 %v6975_v62  ;;  %4748 = vmatprep.subr.bf16.mxu0 %v6990_v23  ;;  %v7085_v62 = vcombine.low %v1708_v45, %v1716_v46  ;;  %v7087_v23 = vcombine.low %v1709_v47, %v1717_v48  ;;  %v7104_v1 = vcombine.high %v1725_v60, %v1733_v61  ;;  %v1820_v46 = vld [vmem:[#allocation7 + $0xd10] sm:$0xff]  ;;  %v1821_v48 = vld [vmem:[#allocation7 + $0xd18] sm:$0xff] }
 0x31e   :  { %4830 = vmatprep.subr.bf16.mxu1 %v6992_v0  ;;  %v7102_v0 = vcombine.high %v1724_v57, %v1732_v58  ;;  %v1828_v47 = vld [vmem:[#allocation7 + $0xd50] sm:$0xff] }
 0x320   :  { %4749 = vmatpush1.bf16.msra.mxu0 %v6989_v5  ;;  %v1749_v5 = vld [vmem:[#allocation7 + $0xad8] sm:$0xff] }
 0x321   :  { %4831 = vmatpush1.bf16.msra.mxu1 %v6991_v6  ;;  %4750 = vmatprep.subr.bf16.mxu0 %v7006_v39  ;;  %v7101_v6 = vcombine.low %v1724_v57, %v1732_v58  ;;  %v7103_v39 = vcombine.low %v1725_v60, %v1733_v61  ;;  %v7120_v28 = vcombine.high %v1741_v4, %v1749_v5  ;;  %v1836_v58 = vld [vmem:[#allocation7 + $0xd90] sm:$0xff]  ;;  %v1837_v61 = vld [vmem:[#allocation7 + $0xd98] sm:$0xff] }
 0x322   :  { %4832 = vmatprep.subr.bf16.mxu1 %v7008_v7  ;;  %v7118_v7 = vcombine.high %v1740_v2, %v1748_v3  ;;  %v1844_v60 = vld [vmem:[#allocation7 + $0xdd0] sm:$0xff] }
 0x324   :  { %4751 = vmatpush1.bf16.msra.mxu0 %v7005_v12  ;;  %v1765_v12 = vld [vmem:[#allocation7 + $0xb58] sm:$0xff] }
 0x325   :  { %4833 = vmatpush1.bf16.msra.mxu1 %v7007_v63  ;;  %4752 = vmatprep.subr.bf16.mxu0 %v7022_v13  ;;  %v7117_v63 = vcombine.low %v1740_v2, %v1748_v3  ;;  %v7119_v13 = vcombine.low %v1741_v4, %v1749_v5  ;;  %v7136_v15 = vcombine.high %v1757_v11, %v1765_v12  ;;  %v1852_v3 = vld [vmem:[#allocation7 + $0xe10] sm:$0xff]  ;;  %v1853_v5 = vld [vmem:[#allocation7 + $0xe18] sm:$0xff] }
 0x326   :  { %4834 = vmatprep.subr.bf16.mxu1 %v7024_v14  ;;  %v7134_v14 = vcombine.high %v1756_v8, %v1764_v9  ;;  %v1860_v4 = vld [vmem:[#allocation7 + $0xe50] sm:$0xff] }
 0x328   :  { %4753 = vmatpush1.bf16.msra.mxu0 %v7021_v19  ;;  %v1781_v19 = vld [vmem:[#allocation7 + $0xbd8] sm:$0xff] }
 0x329   :  { %4835 = vmatpush1.bf16.msra.mxu1 %v7023_v20  ;;  %4763 = vmatprep.subr.bf16.mxu0 %v7038_v21  ;;  %v7133_v20 = vcombine.low %v1756_v8, %v1764_v9  ;;  %v7135_v21 = vcombine.low %v1757_v11, %v1765_v12  ;;  %v7152_v24 = vcombine.high %v1773_v18, %v1781_v19  ;;  %v1868_v9 = vld [vmem:[#allocation7 + $0xe90] sm:$0xff]  ;;  %v1869_v12 = vld [vmem:[#allocation7 + $0xe98] sm:$0xff] }
 0x32a   :  { %4845 = vmatprep.subr.bf16.mxu1 %v7040_v22  ;;  %v7150_v22 = vcombine.high %v1772_v16, %v1780_v17  ;;  %v1876_v11 = vld [vmem:[#allocation7 + $0xed0] sm:$0xff] }
 0x32b   :  { %4755 = vmatmul.mubr.bf16.vlgmr.msra.gmra.mrb[12].mxu0 %v8466_v50 }
 0x32c   :  { %4837 = vmatmul.mubr.bf16.vlgmr.msra.gmra.mrb[12].mxu1 %v8466_v50  ;;  %4764 = vmatpush1.bf16.msra.mxu0 %v7037_v26  ;;  %v1796_v26 = vld [vmem:[#allocation7 + $0xc50] sm:$0xff] }
 0x32d   :  { %4795 = vmatprep.mubr.bf16.mxu0 %v8470_v59  ;;  %4846 = vmatpush1.bf16.msra.mxu1 %v7039_v30  ;;  %v7149_v30 = vcombine.low %v1772_v16, %v1780_v17  ;;  %v7166_v32 = vcombine.high %v1788_v25, %v1796_v26  ;;  %v1884_v17 = vld [vmem:[#allocation7 + $0xf10] sm:$0xff] }
 0x32e   :  { %4877 = vmatprep.mubr.bf16.mxu1 %v8470_v59  ;;  %4765 = vmatprep.subr.bf16.mxu0 %v7054_v31  ;;  %v7151_v31 = vcombine.low %v1773_v18, %v1781_v19  ;;  %v1892_v18 = vld [vmem:[#allocation7 + $0xf50] sm:$0xff]  ;;  %v1885_v19 = vld [vmem:[#allocation7 + $0xf18] sm:$0xff] }
 0x32f   :  { %4847 = vmatprep.subr.bf16.mxu1 %v7056_v34  ;;  %v1804_v34 = vld [vmem:[#allocation7 + $0xc90] sm:$0xff] }
 0x330   :  { %4766 = vmatpush1.bf16.msra.mxu0 %v7053_v41  ;;  %v1813_v41 = vld [vmem:[#allocation7 + $0xcd8] sm:$0xff] }
 0x331   :  { %4848 = vmatpush1.bf16.msra.mxu1 %v7055_v42  ;;  %4767 = vmatprep.subr.bf16.mxu0 %v7070_v43  ;;  %v7165_v42 = vcombine.low %v1788_v25, %v1796_v26  ;;  %v7167_v43 = vcombine.low %v1789_v27, %v1797_v29  ;;  %v7184_v45 = vcombine.high %v1805_v36, %v1813_v41  ;;  %v1900_v26 = vld [vmem:[#allocation7 + $0xf90] sm:$0xff]  ;;  %v1901_v29 = vld [vmem:[#allocation7 + $0xf98] sm:$0xff] }
 0x332   :  { %4849 = vmatprep.subr.bf16.mxu1 %v7072_v44  ;;  %v7182_v44 = vcombine.high %v1804_v34, %v1812_v35  ;;  %v1908_v27 = vld [vmem:[#allocation7 + $0xfd0] sm:$0xff] }
 0x334   :  { %4768 = vmatpush1.bf16.msra.mxu0 %v7069_v52  ;;  %v1829_v52 = vld [vmem:[#allocation7 + $0xd58] sm:$0xff] }
 0x335   :  { %4850 = vmatpush1.bf16.msra.mxu1 %v7071_v54  ;;  %4769 = vmatprep.subr.bf16.mxu0 %v7086_v55  ;;  %v7181_v54 = vcombine.low %v1804_v34, %v1812_v35  ;;  %v7183_v55 = vcombine.low %v1805_v36, %v1813_v41  ;;  %v7200_v57 = vcombine.high %v1821_v48, %v1829_v52  ;;  %v1406_v35 = vld [vmem:[#allocation7 + $0x20] sm:$0xff]  ;;  %v1407_v41 = vld [vmem:[#allocation7 + $0x28] sm:$0xff] }
 0x336   :  { %4851 = vmatprep.subr.bf16.mxu1 %v7088_v56  ;;  %v7198_v56 = vcombine.high %v1820_v46, %v1828_v47  ;;  %v1414_v36 = vld [vmem:[#allocation7 + $0x60] sm:$0xff] }
 0x338   :  { %4770 = vmatpush1.bf16.msra.mxu0 %v7085_v62  ;;  %v1845_v62 = vld [vmem:[#allocation7 + $0xdd8] sm:$0xff] }
 0x339   :  { %4852 = vmatpush1.bf16.msra.mxu1 %v7087_v23  ;;  %4771 = vmatprep.subr.bf16.mxu0 %v7102_v0  ;;  %v7197_v23 = vcombine.low %v1820_v46, %v1828_v47  ;;  %v7199_v0 = vcombine.low %v1821_v48, %v1829_v52  ;;  %v7216_v2 = vcombine.high %v1837_v61, %v1845_v62  ;;  %v1422_v47 = vld [vmem:[#allocation7 + $0xa0] sm:$0xff] }
 0x33a   :  { %4853 = vmatprep.subr.bf16.mxu1 %v7104_v1  ;;  %v7214_v1 = vcombine.high %v1836_v58, %v1844_v60  ;;  %v1430_v48 = vld [vmem:[#allocation7 + $0xe0] sm:$0xff]  ;;  %v6785_v52 = vcombine.low %v1406_v35, %v1414_v36 }
 0x33c   :  { %4772 = vmatpush1.bf16.msra.mxu0 %v7101_v6  ;;  %v1861_v6 = vld [vmem:[#allocation7 + $0xe58] sm:$0xff] }
 0x33d   :  { %4854 = vmatpush1.bf16.msra.mxu1 %v7103_v39  ;;  %4773 = vmatprep.subr.bf16.mxu0 %v7118_v7  ;;  %v7213_v39 = vcombine.low %v1836_v58, %v1844_v60  ;;  %v7215_v7 = vcombine.low %v1837_v61, %v1845_v62  ;;  %v7232_v8 = vcombine.high %v1853_v5, %v1861_v6  ;;  %v1438_v58 = vld [vmem:[#allocation7 + $0x120] sm:$0xff]  ;;  %v1439_v62 = vld [vmem:[#allocation7 + $0x128] sm:$0xff] }
 0x33e   :  { %4855 = vmatprep.subr.bf16.mxu1 %v7120_v28  ;;  %v7230_v28 = vcombine.high %v1852_v3, %v1860_v4  ;;  %v1446_v60 = vld [vmem:[#allocation7 + $0x160] sm:$0xff] }
 0x340   :  { %4774 = vmatpush1.bf16.msra.mxu0 %v7117_v63  ;;  %v1877_v63 = vld [vmem:[#allocation7 + $0xed8] sm:$0xff] }
 0x341   :  { %4856 = vmatpush1.bf16.msra.mxu1 %v7119_v13  ;;  %4775 = vmatprep.subr.bf16.mxu0 %v7134_v14  ;;  %v7229_v13 = vcombine.low %v1852_v3, %v1860_v4  ;;  %v7231_v14 = vcombine.low %v1853_v5, %v1861_v6  ;;  %v7248_v16 = vcombine.high %v1869_v12, %v1877_v63  ;;  %v1454_v4 = vld [vmem:[#allocation7 + $0x1a0] sm:$0xff]  ;;  %v1455_v6 = vld [vmem:[#allocation7 + $0x1a8] sm:$0xff] }
 0x342   :  { %4857 = vmatprep.subr.bf16.mxu1 %v7136_v15  ;;  %v7246_v15 = vcombine.high %v1868_v9, %v1876_v11  ;;  %v1462_v5 = vld [vmem:[#allocation7 + $0x1e0] sm:$0xff] }
 0x344   :  { %4776 = vmatpush1.bf16.msra.mxu0 %v7133_v20  ;;  %v1893_v20 = vld [vmem:[#allocation7 + $0xf58] sm:$0xff] }
 0x345   :  { %4858 = vmatpush1.bf16.msra.mxu1 %v7135_v21  ;;  %4777 = vmatprep.subr.bf16.mxu0 %v7150_v22  ;;  %v7245_v21 = vcombine.low %v1868_v9, %v1876_v11  ;;  %v7247_v22 = vcombine.low %v1869_v12, %v1877_v63  ;;  %v7264_v25 = vcombine.high %v1885_v19, %v1893_v20  ;;  %v1470_v11 = vld [vmem:[#allocation7 + $0x220] sm:$0xff]  ;;  %v1471_v63 = vld [vmem:[#allocation7 + $0x228] sm:$0xff] }
 0x346   :  { %4859 = vmatprep.subr.bf16.mxu1 %v7152_v24  ;;  %v7262_v24 = vcombine.high %v1884_v17, %v1892_v18  ;;  %v1478_v12 = vld [vmem:[#allocation7 + $0x260] sm:$0xff] }
 0x348   :  { %4778 = vmatpush1.bf16.msra.mxu0 %v7149_v30  ;;  %v1909_v30 = vld [vmem:[#allocation7 + $0xfd8] sm:$0xff] }
 0x349   :  { %4860 = vmatpush1.bf16.msra.mxu1 %v7151_v31  ;;  %4779 = vmatprep.subr.bf16.mxu0 %v7166_v32  ;;  %v7261_v31 = vcombine.low %v1884_v17, %v1892_v18  ;;  %v7263_v32 = vcombine.low %v1885_v19, %v1893_v20  ;;  %v7280_v34 = vcombine.high %v1901_v29, %v1909_v30  ;;  %v1486_v18 = vld [vmem:[#allocation7 + $0x2a0] sm:$0xff]  ;;  %v1487_v20 = vld [vmem:[#allocation7 + $0x2a8] sm:$0xff] }
 0x34a   :  { %4861 = vmatprep.subr.bf16.mxu1 %v7168_v33  ;;  %v7278_v33 = vcombine.high %v1900_v26, %v1908_v27  ;;  %v1494_v19 = vld [vmem:[#allocation7 + $0x2e0] sm:$0xff] }
 0x34c   :  { %4780 = vmatpush1.bf16.msra.mxu0 %v7165_v42  ;;  %v1415_v42 = vld [vmem:[#allocation7 + $0x68] sm:$0xff] }
 0x34d   :  { %4862 = vmatpush1.bf16.msra.mxu1 %v7167_v43  ;;  %4781 = vmatprep.subr.bf16.mxu0 %v7182_v44  ;;  %v7277_v43 = vcombine.low %v1900_v26, %v1908_v27  ;;  %v7279_v44 = vcombine.low %v1901_v29, %v1909_v30  ;;  %v6788_v46 = vcombine.high %v1407_v41, %v1415_v42  ;;  %v1502_v27 = vld [vmem:[#allocation7 + $0x320] sm:$0xff]  ;;  %v1503_v30 = vld [vmem:[#allocation7 + $0x328] sm:$0xff] }
 0x34e   :  { %4863 = vmatprep.subr.bf16.mxu1 %v7184_v45  ;;  %v6786_v45 = vcombine.high %v1406_v35, %v1414_v36  ;;  %v1510_v29 = vld [vmem:[#allocation7 + $0x360] sm:$0xff] }
 0x34f   :  { %v1518_v36 = vld [vmem:[#allocation7 + $0x3a0] sm:$0xff] }
 0x350   :  { %4782 = vmatpush1.bf16.msra.mxu0 %v7181_v54  ;;  %v1423_v54 = vld [vmem:[#allocation7 + $0xa8] sm:$0xff] }
 0x351   :  { %4864 = vmatpush1.bf16.msra.mxu1 %v7183_v55  ;;  %4783 = vmatprep.subr.bf16.mxu0 %v7198_v56  ;;  %v1431_v55 = vld [vmem:[#allocation7 + $0xe8] sm:$0xff]  ;;  %v6787_v56 = vcombine.low %v1407_v41, %v1415_v42  ;;  %v1526_v41 = vld [vmem:[#allocation7 + $0x3e0] sm:$0xff] }
 0x352   :  { %4865 = vmatprep.subr.bf16.mxu1 %v7200_v57  ;;  %v6802_v57 = vcombine.high %v1422_v47, %v1430_v48  ;;  %v6804_v61 = vcombine.high %v1423_v54, %v1431_v55  ;;  %v1519_v42 = vld [vmem:[#allocation7 + $0x3a8] sm:$0xff] }
 0x354   :  { %4784 = vmatpush1.bf16.msra.mxu0 %v7197_v23  ;;  %v1447_v23 = vld [vmem:[#allocation7 + $0x168] sm:$0xff] }
 0x355   :  { %4866 = vmatpush1.bf16.msra.mxu1 %v7199_v0  ;;  %4785 = vmatprep.subr.bf16.mxu0 %v7214_v1  ;;  %v6801_v0 = vcombine.low %v1422_v47, %v1430_v48  ;;  %v6803_v1 = vcombine.low %v1423_v54, %v1431_v55  ;;  %v6820_v3 = vcombine.high %v1439_v62, %v1447_v23  ;;  %v1534_v48 = vld [vmem:[#allocation7 + $0x420] sm:$0xff]  ;;  %v1535_v54 = vld [vmem:[#allocation7 + $0x428] sm:$0xff] }
 0x356   :  { %4867 = vmatprep.subr.bf16.mxu1 %v7216_v2  ;;  %v6818_v2 = vcombine.high %v1438_v58, %v1446_v60  ;;  %v1543_v55 = vld [vmem:[#allocation7 + $0x468] sm:$0xff] }
 0x358   :  { %4786 = vmatpush1.bf16.msra.mxu0 %v7213_v39  ;;  %v1463_v39 = vld [vmem:[#allocation7 + $0x1e8] sm:$0xff] }
 0x359   :  { %4868 = vmatpush1.bf16.msra.mxu1 %v7215_v7  ;;  %4787 = vmatprep.subr.bf16.mxu0 %v7230_v28  ;;  %v6817_v7 = vcombine.low %v1438_v58, %v1446_v60  ;;  %v6819_v28 = vcombine.low %v1439_v62, %v1447_v23  ;;  %v6836_v9 = vcombine.high %v1455_v6, %v1463_v39  ;;  %v1558_v62 = vld [vmem:[#allocation7 + $0x4e0] sm:$0xff]  ;;  %v1551_v23 = vld [vmem:[#allocation7 + $0x4a8] sm:$0xff] }
 0x35a   :  { %4869 = vmatprep.subr.bf16.mxu1 %v7232_v8  ;;  %v6834_v8 = vcombine.high %v1454_v4, %v1462_v5  ;;  %v6916_v60 = vcombine.high %v1535_v54, %v1543_v55 }
 0x35c   :  { %4788 = vmatpush1.bf16.msra.mxu0 %v7229_v13  ;;  %v1479_v13 = vld [vmem:[#allocation7 + $0x268] sm:$0xff] }
 0x35d   :  { %4870 = vmatpush1.bf16.msra.mxu1 %v7231_v14  ;;  %4789 = vmatprep.subr.bf16.mxu0 %v7246_v15  ;;  %v6833_v14 = vcombine.low %v1454_v4, %v1462_v5  ;;  %v6835_v15 = vcombine.low %v1455_v6, %v1463_v39  ;;  %v6852_v17 = vcombine.high %v1471_v63, %v1479_v13  ;;  %v1566_v5 = vld [vmem:[#allocation7 + $0x520] sm:$0xff]  ;;  %v1567_v39 = vld [vmem:[#allocation7 + $0x528] sm:$0xff] }
 0x35e   :  { %4871 = vmatprep.subr.bf16.mxu1 %v7248_v16  ;;  %v6850_v16 = vcombine.high %v1470_v11, %v1478_v12  ;;  %v1574_v6 = vld [vmem:[#allocation7 + $0x560] sm:$0xff] }
 0x360   :  { %4790 = vmatpush1.bf16.msra.mxu0 %v7245_v21  ;;  %v1495_v21 = vld [vmem:[#allocation7 + $0x2e8] sm:$0xff] }
 0x361   :  { %4872 = vmatpush1.bf16.msra.mxu1 %v7247_v22  ;;  %4791 = vmatprep.subr.bf16.mxu0 %v7262_v24  ;;  %v6849_v22 = vcombine.low %v1470_v11, %v1478_v12  ;;  %v6851_v24 = vcombine.low %v1471_v63, %v1479_v13  ;;  %v6868_v26 = vcombine.high %v1487_v20, %v1495_v21  ;;  %v1582_v12 = vld [vmem:[#allocation7 + $0x5a0] sm:$0xff]  ;;  %v1583_v13 = vld [vmem:[#allocation7 + $0x5a8] sm:$0xff] }
 0x362   :  { %4873 = vmatprep.subr.bf16.mxu1 %v7264_v25  ;;  %v6866_v25 = vcombine.high %v1486_v18, %v1494_v19  ;;  %v1590_v63 = vld [vmem:[#allocation7 + $0x5e0] sm:$0xff] }
 0x364   :  { %4792 = vmatpush1.bf16.msra.mxu0 %v7261_v31  ;;  %v1511_v31 = vld [vmem:[#allocation7 + $0x368] sm:$0xff] }
 0x365   :  { %4874 = vmatpush1.bf16.msra.mxu1 %v7263_v32  ;;  %4793 = vmatprep.subr.bf16.mxu0 %v7278_v33  ;;  %v6865_v32 = vcombine.low %v1486_v18, %v1494_v19  ;;  %v6867_v33 = vcombine.low %v1487_v20, %v1495_v21  ;;  %v6884_v35 = vcombine.high %v1503_v30, %v1511_v31  ;;  %v1598_v19 = vld [vmem:[#allocation7 + $0x620] sm:$0xff]  ;;  %v1599_v21 = vld [vmem:[#allocation7 + $0x628] sm:$0xff] }
 0x366   :  { %4875 = vmatprep.subr.bf16.mxu1 %v7280_v34  ;;  %v6882_v34 = vcombine.high %v1502_v27, %v1510_v29  ;;  %v1606_v20 = vld [vmem:[#allocation7 + $0x660] sm:$0xff] }
 0x368   :  { %4794 = vmatpush1.bf16.msra.mxu0 %v7277_v43  ;;  %v1527_v43 = vld [vmem:[#allocation7 + $0x3e8] sm:$0xff] }
 0x369   :  { %4876 = vmatpush1.bf16.msra.mxu1 %v7279_v44  ;;  %4886 = vmatprep.subr.bf16.mxu0 %v6786_v45  ;;  %v6881_v44 = vcombine.low %v1502_v27, %v1510_v29  ;;  %v6883_v45 = vcombine.low %v1503_v30, %v1511_v31  ;;  %v6900_v47 = vcombine.high %v1519_v42, %v1527_v43  ;;  %v1614_v29 = vld [vmem:[#allocation7 + $0x6a0] sm:$0xff]  ;;  %v1615_v31 = vld [vmem:[#allocation7 + $0x6a8] sm:$0xff] }
 0x36a   :  { %4968 = vmatprep.subr.bf16.mxu1 %v6788_v46  ;;  %v6898_v46 = vcombine.high %v1518_v36, %v1526_v41  ;;  %v1622_v30 = vld [vmem:[#allocation7 + $0x6e0] sm:$0xff] }
 0x36b   :  { %4796 = vmatmul.mubr.bf16.vlgmr.msra.gmra.mrb[12].mxu0 %v8479_v10 }
 0x36c   :  { %4878 = vmatmul.mubr.bf16.vlgmr.msra.gmra.mrb[12].mxu1 %v8479_v10  ;;  %4887 = vmatpush1.bf16.msra.mxu0 %v6785_v52  ;;  %v1542_v52 = vld [vmem:[#allocation7 + $0x460] sm:$0xff] }
 0x36d   :  { %4918 = vmatprep.mubr.bf16.mxu0 %v8464_v49  ;;  %4969 = vmatpush1.bf16.msra.mxu1 %v6787_v56  ;;  %v6897_v56 = vcombine.low %v1518_v36, %v1526_v41  ;;  %v6914_v58 = vcombine.high %v1534_v48, %v1542_v52  ;;  %v1630_v41 = vld [vmem:[#allocation7 + $0x720] sm:$0xff] }
 0x36e   :  { %5000 = vmatprep.mubr.bf16.mxu1 %v8464_v49  ;;  %4888 = vmatprep.subr.bf16.mxu0 %v6802_v57  ;;  %v6899_v57 = vcombine.low %v1519_v42, %v1527_v43  ;;  %v1638_v42 = vld [vmem:[#allocation7 + $0x760] sm:$0xff]  ;;  %v1631_v43 = vld [vmem:[#allocation7 + $0x728] sm:$0xff] }
 0x36f   :  { %4970 = vmatprep.subr.bf16.mxu1 %v6804_v61  ;;  %v1550_v61 = vld [vmem:[#allocation7 + $0x4a0] sm:$0xff] }
 0x370   :  { %4889 = vmatpush1.bf16.msra.mxu0 %v6801_v0  ;;  %v1559_v0 = vld [vmem:[#allocation7 + $0x4e8] sm:$0xff] }
 0x371   :  { %4971 = vmatpush1.bf16.msra.mxu1 %v6803_v1  ;;  %4890 = vmatprep.subr.bf16.mxu0 %v6818_v2  ;;  %v6913_v1 = vcombine.low %v1534_v48, %v1542_v52  ;;  %v6915_v2 = vcombine.low %v1535_v54, %v1543_v55  ;;  %v6932_v4 = vcombine.high %v1551_v23, %v1559_v0  ;;  %v1646_v52 = vld [vmem:[#allocation7 + $0x7a0] sm:$0xff]  ;;  %v1647_v55 = vld [vmem:[#allocation7 + $0x7a8] sm:$0xff] }
 0x372   :  { %4972 = vmatprep.subr.bf16.mxu1 %v6820_v3  ;;  %v6930_v3 = vcombine.high %v1550_v61, %v1558_v62  ;;  %v1654_v54 = vld [vmem:[#allocation7 + $0x7e0] sm:$0xff] }
 0x374   :  { %4891 = vmatpush1.bf16.msra.mxu0 %v6817_v7  ;;  %v1575_v7 = vld [vmem:[#allocation7 + $0x568] sm:$0xff] }
 0x375   :  { %4973 = vmatpush1.bf16.msra.mxu1 %v6819_v28  ;;  %4892 = vmatprep.subr.bf16.mxu0 %v6834_v8  ;;  %v6929_v28 = vcombine.low %v1550_v61, %v1558_v62  ;;  %v6931_v8 = vcombine.low %v1551_v23, %v1559_v0  ;;  %v6948_v11 = vcombine.high %v1567_v39, %v1575_v7  ;;  %v1662_v62 = vld [vmem:[#allocation7 + $0x820] sm:$0xff]  ;;  %v1663_v0 = vld [vmem:[#allocation7 + $0x828] sm:$0xff] }
 0x376   :  { %4974 = vmatprep.subr.bf16.mxu1 %v6836_v9  ;;  %v6946_v9 = vcombine.high %v1566_v5, %v1574_v6  ;;  %v1670_v23 = vld [vmem:[#allocation7 + $0x860] sm:$0xff] }
 0x378   :  { %4893 = vmatpush1.bf16.msra.mxu0 %v6833_v14  ;;  %v1591_v14 = vld [vmem:[#allocation7 + $0x5e8] sm:$0xff] }
 0x379   :  { %4975 = vmatpush1.bf16.msra.mxu1 %v6835_v15  ;;  %4894 = vmatprep.subr.bf16.mxu0 %v6850_v16  ;;  %v6945_v15 = vcombine.low %v1566_v5, %v1574_v6  ;;  %v6947_v16 = vcombine.low %v1567_v39, %v1575_v7  ;;  %v6964_v18 = vcombine.high %v1583_v13, %v1591_v14  ;;  %v1678_v6 = vld [vmem:[#allocation7 + $0x8a0] sm:$0xff] }
 0x37a   :  { %4976 = vmatprep.subr.bf16.mxu1 %v6852_v17  ;;  %v6962_v17 = vcombine.high %v1582_v12, %v1590_v63  ;;  %v1686_v39 = vld [vmem:[#allocation7 + $0x8e0] sm:$0xff]  ;;  %v7041_v7 = vcombine.low %v1662_v62, %v1670_v23 }
 0x37c   :  { %4895 = vmatpush1.bf16.msra.mxu0 %v6849_v22  ;;  %v1607_v22 = vld [vmem:[#allocation7 + $0x668] sm:$0xff] }
 0x37d   :  { %4977 = vmatpush1.bf16.msra.mxu1 %v6851_v24  ;;  %4896 = vmatprep.subr.bf16.mxu0 %v6866_v25  ;;  %v6961_v24 = vcombine.low %v1582_v12, %v1590_v63  ;;  %v6963_v25 = vcombine.low %v1583_v13, %v1591_v14  ;;  %v6980_v27 = vcombine.high %v1599_v21, %v1607_v22  ;;  %v1694_v12 = vld [vmem:[#allocation7 + $0x920] sm:$0xff]  ;;  %v1695_v14 = vld [vmem:[#allocation7 + $0x928] sm:$0xff] }
 0x37e   :  { %4978 = vmatprep.subr.bf16.mxu1 %v6868_v26  ;;  %v6978_v26 = vcombine.high %v1598_v19, %v1606_v20  ;;  %v1702_v63 = vld [vmem:[#allocation7 + $0x960] sm:$0xff] }
 0x380   :  { %4897 = vmatpush1.bf16.msra.mxu0 %v6865_v32  ;;  %v1623_v32 = vld [vmem:[#allocation7 + $0x6e8] sm:$0xff] }
 0x381   :  { %4979 = vmatpush1.bf16.msra.mxu1 %v6867_v33  ;;  %4898 = vmatprep.subr.bf16.mxu0 %v6882_v34  ;;  %v6977_v33 = vcombine.low %v1598_v19, %v1606_v20  ;;  %v6979_v34 = vcombine.low %v1599_v21, %v1607_v22  ;;  %v6996_v36 = vcombine.high %v1615_v31, %v1623_v32  ;;  %v1710_v20 = vld [vmem:[#allocation7 + $0x9a0] sm:$0xff]  ;;  %v1711_v22 = vld [vmem:[#allocation7 + $0x9a8] sm:$0xff] }
 0x382   :  { %4980 = vmatprep.subr.bf16.mxu1 %v6884_v35  ;;  %v6994_v35 = vcombine.high %v1614_v29, %v1622_v30  ;;  %v1718_v21 = vld [vmem:[#allocation7 + $0x9e0] sm:$0xff] }
 0x384   :  { %4899 = vmatpush1.bf16.msra.mxu0 %v6881_v44  ;;  %v1639_v44 = vld [vmem:[#allocation7 + $0x768] sm:$0xff] }
 0x385   :  { %4981 = vmatpush1.bf16.msra.mxu1 %v6883_v45  ;;  %4900 = vmatprep.subr.bf16.mxu0 %v6898_v46  ;;  %v6993_v45 = vcombine.low %v1614_v29, %v1622_v30  ;;  %v6995_v46 = vcombine.low %v1615_v31, %v1623_v32  ;;  %v7012_v48 = vcombine.high %v1631_v43, %v1639_v44  ;;  %v1726_v30 = vld [vmem:[#allocation7 + $0xa20] sm:$0xff]  ;;  %v1727_v32 = vld [vmem:[#allocation7 + $0xa28] sm:$0xff] }
 0x386   :  { %4982 = vmatprep.subr.bf16.mxu1 %v6900_v47  ;;  %v7010_v47 = vcombine.high %v1630_v41, %v1638_v42  ;;  %v1734_v31 = vld [vmem:[#allocation7 + $0xa60] sm:$0xff] }
 0x388   :  { %4901 = vmatpush1.bf16.msra.mxu0 %v6897_v56  ;;  %v1655_v56 = vld [vmem:[#allocation7 + $0x7e8] sm:$0xff] }
 0x389   :  { %4983 = vmatpush1.bf16.msra.mxu1 %v6899_v57  ;;  %4902 = vmatprep.subr.bf16.mxu0 %v6914_v58  ;;  %v7009_v57 = vcombine.low %v1630_v41, %v1638_v42  ;;  %v7011_v58 = vcombine.low %v1631_v43, %v1639_v44  ;;  %v7028_v61 = vcombine.high %v1647_v55, %v1655_v56  ;;  %v1742_v42 = vld [vmem:[#allocation7 + $0xaa0] sm:$0xff]  ;;  %v1743_v44 = vld [vmem:[#allocation7 + $0xaa8] sm:$0xff] }
 0x38a   :  { %4984 = vmatprep.subr.bf16.mxu1 %v6916_v60  ;;  %v7026_v60 = vcombine.high %v1646_v52, %v1654_v54  ;;  %v1750_v43 = vld [vmem:[#allocation7 + $0xae0] sm:$0xff] }
 0x38c   :  { %4903 = vmatpush1.bf16.msra.mxu0 %v6913_v1  ;;  %v1671_v1 = vld [vmem:[#allocation7 + $0x868] sm:$0xff] }
 0x38d   :  { %4985 = vmatpush1.bf16.msra.mxu1 %v6915_v2  ;;  %4904 = vmatprep.subr.bf16.mxu0 %v6930_v3  ;;  %v7025_v2 = vcombine.low %v1646_v52, %v1654_v54  ;;  %v7027_v3 = vcombine.low %v1647_v55, %v1655_v56  ;;  %v7044_v5 = vcombine.high %v1663_v0, %v1671_v1  ;;  %v1758_v54 = vld [vmem:[#allocation7 + $0xb20] sm:$0xff]  ;;  %v1759_v56 = vld [vmem:[#allocation7 + $0xb28] sm:$0xff] }
 0x38e   :  { %4986 = vmatprep.subr.bf16.mxu1 %v6932_v4  ;;  %v7042_v4 = vcombine.high %v1662_v62, %v1670_v23  ;;  %v1766_v55 = vld [vmem:[#allocation7 + $0xb60] sm:$0xff] }
 0x390   :  { %4905 = vmatpush1.bf16.msra.mxu0 %v6929_v28  ;;  %v1679_v28 = vld [vmem:[#allocation7 + $0x8a8] sm:$0xff] }
 0x391   :  { %4987 = vmatpush1.bf16.msra.mxu1 %v6931_v8  ;;  %4906 = vmatprep.subr.bf16.mxu0 %v6946_v9  ;;  %v1687_v8 = vld [vmem:[#allocation7 + $0x8e8] sm:$0xff]  ;;  %v7043_v9 = vcombine.low %v1663_v0, %v1671_v1  ;;  %v1774_v1 = vld [vmem:[#allocation7 + $0xba0] sm:$0xff] }
 0x392   :  { %4988 = vmatprep.subr.bf16.mxu1 %v6948_v11  ;;  %v7058_v11 = vcombine.high %v1678_v6, %v1686_v39  ;;  %v7060_v13 = vcombine.high %v1679_v28, %v1687_v8 }
 0x394   :  { %4907 = vmatpush1.bf16.msra.mxu0 %v6945_v15  ;;  %v1703_v15 = vld [vmem:[#allocation7 + $0x968] sm:$0xff] }
 0x395   :  { %4989 = vmatpush1.bf16.msra.mxu1 %v6947_v16  ;;  %4908 = vmatprep.subr.bf16.mxu0 %v6962_v17  ;;  %v7057_v16 = vcombine.low %v1678_v6, %v1686_v39  ;;  %v7059_v17 = vcombine.low %v1679_v28, %v1687_v8  ;;  %v7076_v19 = vcombine.high %v1695_v14, %v1703_v15  ;;  %v1783_v6 = vld [vmem:[#allocation7 + $0xbe8] sm:$0xff] }
 0x396   :  { %4990 = vmatprep.subr.bf16.mxu1 %v6964_v18  ;;  %v7074_v18 = vcombine.high %v1694_v12, %v1702_v63  ;;  %v7137_v28 = vcombine.low %v1758_v54, %v1766_v55 }
 0x398   :  { %4909 = vmatpush1.bf16.msra.mxu0 %v6961_v24  ;;  %v1719_v24 = vld [vmem:[#allocation7 + $0x9e8] sm:$0xff] }
 0x399   :  { %4991 = vmatpush1.bf16.msra.mxu1 %v6963_v25  ;;  %4910 = vmatprep.subr.bf16.mxu0 %v6978_v26  ;;  %v7073_v25 = vcombine.low %v1694_v12, %v1702_v63  ;;  %v7075_v26 = vcombine.low %v1695_v14, %v1703_v15  ;;  %v7092_v29 = vcombine.high %v1711_v22, %v1719_v24  ;;  %v1798_v14 = vld [vmem:[#allocation7 + $0xc60] sm:$0xff]  ;;  %v1791_v15 = vld [vmem:[#allocation7 + $0xc28] sm:$0xff] }
 0x39a   :  { %4992 = vmatprep.subr.bf16.mxu1 %v6980_v27  ;;  %v7090_v27 = vcombine.high %v1710_v20, %v1718_v21 }
 0x39c   :  { %4911 = vmatpush1.bf16.msra.mxu0 %v6977_v33  ;;  %v1735_v33 = vld [vmem:[#allocation7 + $0xa68] sm:$0xff] }
 0x39d   :  { %4993 = vmatpush1.bf16.msra.mxu1 %v6979_v34  ;;  %4912 = vmatprep.subr.bf16.mxu0 %v6994_v35  ;;  %v7089_v34 = vcombine.low %v1710_v20, %v1718_v21  ;;  %v7091_v35 = vcombine.low %v1711_v22, %v1719_v24  ;;  %v7108_v41 = vcombine.high %v1727_v32, %v1735_v33  ;;  %v1806_v21 = vld [vmem:[#allocation7 + $0xca0] sm:$0xff]  ;;  %v1807_v24 = vld [vmem:[#allocation7 + $0xca8] sm:$0xff] }
 0x39e   :  { %4994 = vmatprep.subr.bf16.mxu1 %v6996_v36  ;;  %v7106_v36 = vcombine.high %v1726_v30, %v1734_v31  ;;  %v1814_v22 = vld [vmem:[#allocation7 + $0xce0] sm:$0xff] }
 0x3a0   :  { %4913 = vmatpush1.bf16.msra.mxu0 %v6993_v45  ;;  %v1751_v45 = vld [vmem:[#allocation7 + $0xae8] sm:$0xff] }
 0x3a1   :  { %4995 = vmatpush1.bf16.msra.mxu1 %v6995_v46  ;;  %4914 = vmatprep.subr.bf16.mxu0 %v7010_v47  ;;  %v7105_v46 = vcombine.low %v1726_v30, %v1734_v31  ;;  %v7107_v47 = vcombine.low %v1727_v32, %v1735_v33  ;;  %v7124_v52 = vcombine.high %v1743_v44, %v1751_v45  ;;  %v1822_v31 = vld [vmem:[#allocation7 + $0xd20] sm:$0xff]  ;;  %v1823_v33 = vld [vmem:[#allocation7 + $0xd28] sm:$0xff] }
 0x3a2   :  { %4996 = vmatprep.subr.bf16.mxu1 %v7012_v48  ;;  %v7122_v48 = vcombine.high %v1742_v42, %v1750_v43  ;;  %v1830_v32 = vld [vmem:[#allocation7 + $0xd60] sm:$0xff] }
 0x3a4   :  { %4915 = vmatpush1.bf16.msra.mxu0 %v7009_v57  ;;  %v1767_v57 = vld [vmem:[#allocation7 + $0xb68] sm:$0xff] }
 0x3a5   :  { %4997 = vmatpush1.bf16.msra.mxu1 %v7011_v58  ;;  %4916 = vmatprep.subr.bf16.mxu0 %v7026_v60  ;;  %v7121_v58 = vcombine.low %v1742_v42, %v1750_v43  ;;  %v7123_v60 = vcombine.low %v1743_v44, %v1751_v45  ;;  %v7140_v0 = vcombine.high %v1759_v56, %v1767_v57  ;;  %v1838_v43 = vld [vmem:[#allocation7 + $0xda0] sm:$0xff]  ;;  %v1839_v45 = vld [vmem:[#allocation7 + $0xda8] sm:$0xff] }
 0x3a6   :  { %4998 = vmatprep.subr.bf16.mxu1 %v7028_v61  ;;  %v7138_v61 = vcombine.high %v1758_v54, %v1766_v55  ;;  %v1846_v44 = vld [vmem:[#allocation7 + $0xde0] sm:$0xff] }
 0x3a7   :  { %v1854_v55 = vld [vmem:[#allocation7 + $0xe20] sm:$0xff] }
 0x3a8   :  { %4917 = vmatpush1.bf16.msra.mxu0 %v7025_v2  ;;  %v1782_v2 = vld [vmem:[#allocation7 + $0xbe0] sm:$0xff] }
 0x3a9   :  { %4999 = vmatpush1.bf16.msra.mxu1 %v7027_v3  ;;  %4927 = vmatprep.subr.bf16.mxu0 %v7042_v4  ;;  %v7154_v12 = vcombine.high %v1774_v1, %v1782_v2 }
 0x3aa   :  { %5009 = vmatprep.subr.bf16.mxu1 %v7044_v5  ;;  %v1775_v5 = vld [vmem:[#allocation7 + $0xba8] sm:$0xff] }
 0x3ab   :  { %4919 = vmatmul.mubr.bf16.vlgmr.msra.gmra.mrb[16].mxu0 %v8466_v50  ;;  %v7156_v63 = vcombine.high %v1775_v5, %v1783_v6 }
 0x3ac   :  { %5001 = vmatmul.mubr.bf16.vlgmr.msra.gmra.mrb[16].mxu1 %v8466_v50  ;;  %4928 = vmatpush1.bf16.msra.mxu0 %v7041_v7 }
 0x3ad   :  { %4959 = vmatprep.mubr.bf16.mxu0 %v8470_v59  ;;  %5010 = vmatpush1.bf16.msra.mxu1 %v7043_v9 }
 0x3ae   :  { %5041 = vmatprep.mubr.bf16.mxu1 %v8470_v59  ;;  %4929 = vmatprep.subr.bf16.mxu0 %v7058_v11  ;;  %v7139_v11 = vcombine.low %v1759_v56, %v1767_v57  ;;  %v1862_v56 = vld [vmem:[#allocation7 + $0xe60] sm:$0xff]  ;;  %v1855_v57 = vld [vmem:[#allocation7 + $0xe28] sm:$0xff] }
 0x3af   :  { %5011 = vmatprep.subr.bf16.mxu1 %v7060_v13  ;;  %v1790_v13 = vld [vmem:[#allocation7 + $0xc20] sm:$0xff] }
 0x3b0   :  { %4930 = vmatpush1.bf16.msra.mxu0 %v7057_v16  ;;  %v1799_v16 = vld [vmem:[#allocation7 + $0xc68] sm:$0xff] }
 0x3b1   :  { %5012 = vmatpush1.bf16.msra.mxu1 %v7059_v17  ;;  %4931 = vmatprep.subr.bf16.mxu0 %v7074_v18  ;;  %v7153_v17 = vcombine.low %v1774_v1, %v1782_v2  ;;  %v7155_v18 = vcombine.low %v1775_v5, %v1783_v6  ;;  %v7172_v20 = vcombine.high %v1791_v15, %v1799_v16  ;;  %v1870_v2 = vld [vmem:[#allocation7 + $0xea0] sm:$0xff]  ;;  %v1871_v6 = vld [vmem:[#allocation7 + $0xea8] sm:$0xff] }
 0x3b2   :  { %5013 = vmatprep.subr.bf16.mxu1 %v7076_v19  ;;  %v7170_v19 = vcombine.high %v1790_v13, %v1798_v14  ;;  %v1878_v5 = vld [vmem:[#allocation7 + $0xee0] sm:$0xff] }
 0x3b4   :  { %4932 = vmatpush1.bf16.msra.mxu0 %v7073_v25  ;;  %v1815_v25 = vld [vmem:[#allocation7 + $0xce8] sm:$0xff] }
 0x3b5   :  { %5014 = vmatpush1.bf16.msra.mxu1 %v7075_v26  ;;  %4933 = vmatprep.subr.bf16.mxu0 %v7090_v27  ;;  %v7169_v26 = vcombine.low %v1790_v13, %v1798_v14  ;;  %v7171_v27 = vcombine.low %v1791_v15, %v1799_v16  ;;  %v7188_v30 = vcombine.high %v1807_v24, %v1815_v25  ;;  %v1895_v13 = vld [vmem:[#allocation7 + $0xf68] sm:$0xff] }
 0x3b6   :  { %5015 = vmatprep.subr.bf16.mxu1 %v7092_v29  ;;  %v7186_v29 = vcombine.high %v1806_v21, %v1814_v22  ;;  %v7249_v14 = vcombine.low %v1870_v2, %v1878_v5 }
 0x3b8   :  { %4934 = vmatpush1.bf16.msra.mxu0 %v7089_v34  ;;  %v1831_v34 = vld [vmem:[#allocation7 + $0xd68] sm:$0xff] }
 0x3b9   :  { %5016 = vmatpush1.bf16.msra.mxu1 %v7091_v35  ;;  %4935 = vmatprep.subr.bf16.mxu0 %v7106_v36  ;;  %v7185_v35 = vcombine.low %v1806_v21, %v1814_v22  ;;  %v7187_v36 = vcombine.low %v1807_v24, %v1815_v25  ;;  %v7204_v42 = vcombine.high %v1823_v33, %v1831_v34  ;;  %v1911_v21 = vld [vmem:[#allocation7 + $0xfe8] sm:$0xff] }
 0x3ba   :  { %5017 = vmatprep.subr.bf16.mxu1 %v7108_v41  ;;  %v7202_v41 = vcombine.high %v1822_v31, %v1830_v32 }
 0x3bc   :  { %4936 = vmatpush1.bf16.msra.mxu0 %v7105_v46  ;;  %v1847_v46 = vld [vmem:[#allocation7 + $0xde8] sm:$0xff] }
 0x3bd   :  { %5018 = vmatpush1.bf16.msra.mxu1 %v7107_v47  ;;  %4937 = vmatprep.subr.bf16.mxu0 %v7122_v48  ;;  %v7201_v47 = vcombine.low %v1822_v31, %v1830_v32  ;;  %v7203_v48 = vcombine.low %v1823_v33, %v1831_v34  ;;  %v7220_v54 = vcombine.high %v1839_v45, %v1847_v46  ;;  %v1417_v31 = vld [vmem:[#allocation7 + $0x78] sm:$0xff] }
 0x3be   :  { %v8497_v62 = vpop.f32.mrb[8].mxu0  ;;  %v8499_v23 = vpop.f32.mrb[8].mxu1  ;;  %5019 = vmatprep.subr.bf16.mxu1 %v7124_v52  ;;  %v7218_v52 = vcombine.high %v1838_v43, %v1846_v44 }
 0x3bf   :  { %v8501_v3 = vpop.f32.mrb[9].mxu0  ;;  %v8503_v4 = vpop.f32.mrb[9].mxu1 }
 0x3c0   :  { %v4637_v39 = vpop.f32.mrb[10].mxu0  ;;  %v4719_v7 = vpop.f32.mrb[10].mxu1  ;;  %4938 = vmatpush1.bf16.msra.mxu0 %v7121_v58  ;;  %v1863_v58 = vld [vmem:[#allocation7 + $0xe68] sm:$0xff] }
 0x3c1   :  { %5020 = vmatpush1.bf16.msra.mxu1 %v7123_v60  ;;  %v4638_v8 = vpop.f32.mrb[11].mxu0  ;;  %v4720_v9 = vpop.f32.mrb[11].mxu1  ;;  %4939 = vmatprep.subr.bf16.mxu0 %v7138_v61  ;;  %v7217_v60 = vcombine.low %v1838_v43, %v1846_v44  ;;  %v7219_v61 = vcombine.low %v1839_v45, %v1847_v46  ;;  %v7236_v1 = vcombine.high %v1855_v57, %v1863_v58  ;;  %v1879_v39 = vld [vmem:[#allocation7 + $0xee8] sm:$0xff]  ;;  %v1425_v43 = vld [vmem:[#allocation7 + $0xb8] sm:$0xff] }
 0x3c2   :  { %5021 = vmatprep.subr.bf16.mxu1 %v7140_v0  ;;  %v7234_v0 = vcombine.high %v1854_v55, %v1862_v56  ;;  %v7233_v7 = vcombine.low %v1854_v55, %v1862_v56  ;;  %v7250_v8 = vcombine.high %v1870_v2, %v1878_v5  ;;  %v7252_v9 = vcombine.high %v1871_v6, %v1879_v39  ;;  %v1433_v44 = vld [vmem:[#allocation7 + $0xf8] sm:$0xff] }
 0x3c3   :  { %v7251_v15 = vcombine.low %v1871_v6, %v1879_v39  ;;  %v1449_v55 = vld [vmem:[#allocation7 + $0x178] sm:$0xff] }
 0x3c4   :  { %4940 = vmatpush1.bf16.msra.mxu0 %v7137_v28  ;;  %v7235_v28 = vcombine.low %v1855_v57, %v1863_v58  ;;  %v6807_v57 = vcombine.low %v1425_v43, %v1433_v44  ;;  %v1465_v2 = vld [vmem:[#allocation7 + $0x1f8] sm:$0xff] }
 0x3c5   :  { %5022 = vmatpush1.bf16.msra.mxu1 %v7139_v11  ;;  %4941 = vmatprep.subr.bf16.mxu0 %v7154_v12  ;;  %v1886_v11 = vld [vmem:[#allocation7 + $0xf20] sm:$0xff] }
 0x3c6   :  { %5023 = vmatprep.subr.bf16.mxu1 %v7156_v63  ;;  %v1894_v12 = vld [vmem:[#allocation7 + $0xf60] sm:$0xff]  ;;  %v1887_v63 = vld [vmem:[#allocation7 + $0xf28] sm:$0xff] }
 0x3c7   :  { %v7266_v16 = vcombine.high %v1886_v11, %v1894_v12  ;;  %v7265_v22 = vcombine.low %v1886_v11, %v1894_v12  ;;  %v7267_v24 = vcombine.low %v1887_v63, %v1895_v13  ;;  %v1481_v11 = vld [vmem:[#allocation7 + $0x278] sm:$0xff] }
 0x3c8   :  { %4942 = vmatpush1.bf16.msra.mxu0 %v7153_v17  ;;  %v7268_v17 = vcombine.high %v1887_v63, %v1895_v13 }
 0x3c9   :  { %5024 = vmatpush1.bf16.msra.mxu1 %v7155_v18  ;;  %4943 = vmatprep.subr.bf16.mxu0 %v7170_v19  ;;  %v1902_v18 = vld [vmem:[#allocation7 + $0xfa0] sm:$0xff] }
 0x3ca   :  { %5025 = vmatprep.subr.bf16.mxu1 %v7172_v20  ;;  %v1910_v19 = vld [vmem:[#allocation7 + $0xfe0] sm:$0xff]  ;;  %v1903_v20 = vld [vmem:[#allocation7 + $0xfa8] sm:$0xff] }
 0x3cb   :  { %v7282_v25 = vcombine.high %v1902_v18, %v1910_v19  ;;  %v7281_v32 = vcombine.low %v1902_v18, %v1910_v19  ;;  %v7283_v33 = vcombine.low %v1903_v20, %v1911_v21 }
 0x3cc   :  { %4944 = vmatpush1.bf16.msra.mxu0 %v7169_v26  ;;  %v7284_v26 = vcombine.high %v1903_v20, %v1911_v21 }
 0x3cd   :  { %5026 = vmatpush1.bf16.msra.mxu1 %v7171_v27  ;;  %4945 = vmatprep.subr.bf16.mxu0 %v7186_v29  ;;  %v1408_v27 = vld [vmem:[#allocation7 + $0x30] sm:$0xff] }
 0x3ce   :  { %5027 = vmatprep.subr.bf16.mxu1 %v7188_v30  ;;  %v1416_v29 = vld [vmem:[#allocation7 + $0x70] sm:$0xff]  ;;  %v1409_v30 = vld [vmem:[#allocation7 + $0x38] sm:$0xff] }
 0x3cf   :  { %v6790_v34 = vcombine.high %v1408_v27, %v1416_v29  ;;  %v6791_v45 = vcombine.low %v1409_v30, %v1417_v31 }
 0x3d0   :  { %4946 = vmatpush1.bf16.msra.mxu0 %v7185_v35  ;;  %v6792_v35 = vcombine.high %v1409_v30, %v1417_v31 }
 0x3d1   :  { %5028 = vmatpush1.bf16.msra.mxu1 %v7187_v36  ;;  %4947 = vmatprep.subr.bf16.mxu0 %v7202_v41  ;;  %v1424_v36 = vld [vmem:[#allocation7 + $0xb0] sm:$0xff] }
 0x3d2   :  { %5029 = vmatprep.subr.bf16.mxu1 %v7204_v42  ;;  %v1432_v41 = vld [vmem:[#allocation7 + $0xf0] sm:$0xff]  ;;  %v6789_v42 = vcombine.low %v1408_v27, %v1416_v29 }
 0x3d3   :  { %v6806_v46 = vcombine.high %v1424_v36, %v1432_v41  ;;  %v6805_v56 = vcombine.low %v1424_v36, %v1432_v41 }
 0x3d4   :  { %4948 = vmatpush1.bf16.msra.mxu0 %v7201_v47  ;;  %v1440_v47 = vld [vmem:[#allocation7 + $0x130] sm:$0xff] }
 0x3d5   :  { %5030 = vmatpush1.bf16.msra.mxu1 %v7203_v48  ;;  %4949 = vmatprep.subr.bf16.mxu0 %v7218_v52  ;;  %v1448_v48 = vld [vmem:[#allocation7 + $0x170] sm:$0xff]  ;;  %v6808_v52 = vcombine.high %v1425_v43, %v1433_v44 }
 0x3d6   :  { %5031 = vmatprep.subr.bf16.mxu1 %v7220_v54  ;;  %v1441_v54 = vld [vmem:[#allocation7 + $0x138] sm:$0xff]  ;;  %v6822_v58 = vcombine.high %v1440_v47, %v1448_v48  ;;  %v6821_v5 = vcombine.low %v1440_v47, %v1448_v48  ;;  %v1536_v44 = vld [vmem:[#allocation7 + $0x430] sm:$0xff] }
 0x3d7   :  { %v6823_v6 = vcombine.low %v1441_v54, %v1449_v55  ;;  %v1545_v47 = vld [vmem:[#allocation7 + $0x478] sm:$0xff] }
 0x3d8   :  { %4950 = vmatpush1.bf16.msra.mxu0 %v7217_v60  ;;  %v6824_v60 = vcombine.high %v1441_v54, %v1449_v55 }
 0x3d9   :  { %5032 = vmatpush1.bf16.msra.mxu1 %v7219_v61  ;;  %4951 = vmatprep.subr.bf16.mxu0 %v7234_v0  ;;  %v1456_v61 = vld [vmem:[#allocation7 + $0x1b0] sm:$0xff] }
 0x3da   :  { %5033 = vmatprep.subr.bf16.mxu1 %v7236_v1  ;;  %v1464_v0 = vld [vmem:[#allocation7 + $0x1f0] sm:$0xff]  ;;  %v1457_v1 = vld [vmem:[#allocation7 + $0x1b8] sm:$0xff] }
 0x3db   :  { %v6838_v39 = vcombine.high %v1456_v61, %v1464_v0  ;;  %v6839_v12 = vcombine.low %v1457_v1, %v1465_v2 }
 0x3dc   :  { %4952 = vmatpush1.bf16.msra.mxu0 %v7233_v7  ;;  %v6840_v7 = vcombine.high %v1457_v1, %v1465_v2 }
 0x3dd   :  { %5034 = vmatpush1.bf16.msra.mxu1 %v7235_v28  ;;  %4953 = vmatprep.subr.bf16.mxu0 %v7250_v8  ;;  %v1472_v28 = vld [vmem:[#allocation7 + $0x230] sm:$0xff] }
 0x3de   :  { %5035 = vmatprep.subr.bf16.mxu1 %v7252_v9  ;;  %v1480_v8 = vld [vmem:[#allocation7 + $0x270] sm:$0xff]  ;;  %v1473_v9 = vld [vmem:[#allocation7 + $0x238] sm:$0xff] }
 0x3df   :  { %v6854_v63 = vcombine.high %v1472_v28, %v1480_v8  ;;  %v6856_v13 = vcombine.high %v1473_v9, %v1481_v11  ;;  %v6853_v18 = vcombine.low %v1472_v28, %v1480_v8  ;;  %v6855_v19 = vcombine.low %v1473_v9, %v1481_v11 }
 0x3e0   :  { %4954 = vmatpush1.bf16.msra.mxu0 %v7249_v14  ;;  %v1488_v14 = vld [vmem:[#allocation7 + $0x2b0] sm:$0xff] }
 0x3e1   :  { %5036 = vmatpush1.bf16.msra.mxu1 %v7251_v15  ;;  %4955 = vmatprep.subr.bf16.mxu0 %v7266_v16  ;;  %v1496_v15 = vld [vmem:[#allocation7 + $0x2f0] sm:$0xff]  ;;  %v1489_v16 = vld [vmem:[#allocation7 + $0x2b8] sm:$0xff] }
 0x3e2   :  { %5037 = vmatprep.subr.bf16.mxu1 %v7268_v17  ;;  %v1497_v17 = vld [vmem:[#allocation7 + $0x2f8] sm:$0xff]  ;;  %v6870_v20 = vcombine.high %v1488_v14, %v1496_v15  ;;  %v6869_v27 = vcombine.low %v1488_v14, %v1496_v15 }
 0x3e3   :  { %v6872_v21 = vcombine.high %v1489_v16, %v1497_v17  ;;  %v6871_v29 = vcombine.low %v1489_v16, %v1497_v17 }
 0x3e4   :  { %4956 = vmatpush1.bf16.msra.mxu0 %v7265_v22  ;;  %v1504_v22 = vld [vmem:[#allocation7 + $0x330] sm:$0xff] }
 0x3e5   :  { %5038 = vmatpush1.bf16.msra.mxu1 %v7267_v24  ;;  %4957 = vmatprep.subr.bf16.mxu0 %v7282_v25  ;;  %v1512_v24 = vld [vmem:[#allocation7 + $0x370] sm:$0xff]  ;;  %v1505_v25 = vld [vmem:[#allocation7 + $0x338] sm:$0xff] }
 0x3e6   :  { %5039 = vmatprep.subr.bf16.mxu1 %v7284_v26  ;;  %v1513_v26 = vld [vmem:[#allocation7 + $0x378] sm:$0xff]  ;;  %v6886_v30 = vcombine.high %v1504_v22, %v1512_v24  ;;  %v6885_v36 = vcombine.low %v1504_v22, %v1512_v24 }
 0x3e7   :  { %v6888_v31 = vcombine.high %v1505_v25, %v1513_v26  ;;  %v6887_v41 = vcombine.low %v1505_v25, %v1513_v26 }
 0x3e8   :  { %4958 = vmatpush1.bf16.msra.mxu0 %v7281_v32  ;;  %v1520_v32 = vld [vmem:[#allocation7 + $0x3b0] sm:$0xff] }
 0x3e9   :  { %5040 = vmatpush1.bf16.msra.mxu1 %v7283_v33  ;;  %5050 = vmatprep.subr.bf16.mxu0 %v6790_v34  ;;  %v1528_v33 = vld [vmem:[#allocation7 + $0x3f0] sm:$0xff]  ;;  %v1521_v34 = vld [vmem:[#allocation7 + $0x3b8] sm:$0xff] }
 0x3ea   :  { %5132 = vmatprep.subr.bf16.mxu1 %v6792_v35  ;;  %v1529_v35 = vld [vmem:[#allocation7 + $0x3f8] sm:$0xff]  ;;  %v6901_v48 = vcombine.low %v1520_v32, %v1528_v33 }
 0x3eb   :  { %4960 = vmatmul.mubr.bf16.vlgmr.msra.gmra.mrb[16].mxu0 %v8479_v10  ;;  %v6904_v43 = vcombine.high %v1521_v34, %v1529_v35 }
 0x3ec   :  { %5042 = vmatmul.mubr.bf16.vlgmr.msra.gmra.mrb[16].mxu1 %v8479_v10  ;;  %5051 = vmatpush1.bf16.msra.mxu0 %v6789_v42  ;;  %v6902_v42 = vcombine.high %v1520_v32, %v1528_v33 }
 0x3ed   :  { %5082 = vmatprep.mubr.bf16.mxu0 %v8464_v49  ;;  %5133 = vmatpush1.bf16.msra.mxu1 %v6791_v45  ;;  %v1544_v45 = vld [vmem:[#allocation7 + $0x470] sm:$0xff] }
 0x3ee   :  { %5164 = vmatprep.mubr.bf16.mxu1 %v8464_v49  ;;  %5052 = vmatprep.subr.bf16.mxu0 %v6806_v46  ;;  %v6837_v49 = vcombine.low %v1456_v61, %v1464_v0  ;;  %v1537_v46 = vld [vmem:[#allocation7 + $0x438] sm:$0xff]  ;;  %v6918_v54 = vcombine.high %v1536_v44, %v1544_v45  ;;  %v6917_v61 = vcombine.low %v1536_v44, %v1544_v45 }
 0x3ef   :  { %5134 = vmatprep.subr.bf16.mxu1 %v6808_v52  ;;  %v6903_v52 = vcombine.low %v1521_v34, %v1529_v35  ;;  %v6920_v55 = vcombine.high %v1537_v46, %v1545_v47  ;;  %v6919_v0 = vcombine.low %v1537_v46, %v1545_v47 }
 0x3f0   :  { %5053 = vmatpush1.bf16.msra.mxu0 %v6805_v56  ;;  %v1552_v56 = vld [vmem:[#allocation7 + $0x4b0] sm:$0xff] }
 0x3f1   :  { %5135 = vmatpush1.bf16.msra.mxu1 %v6807_v57  ;;  %5054 = vmatprep.subr.bf16.mxu0 %v6822_v58  ;;  %v1560_v57 = vld [vmem:[#allocation7 + $0x4f0] sm:$0xff]  ;;  %v1553_v58 = vld [vmem:[#allocation7 + $0x4b8] sm:$0xff] }
 0x3f2   :  { %5136 = vmatprep.subr.bf16.mxu1 %v6824_v60  ;;  %v1561_v60 = vld [vmem:[#allocation7 + $0x4f8] sm:$0xff]  ;;  %v6934_v1 = vcombine.high %v1552_v56, %v1560_v57  ;;  %v6933_v28 = vcombine.low %v1552_v56, %v1560_v57 }
 0x3f3   :  { %v6936_v2 = vcombine.high %v1553_v58, %v1561_v60  ;;  %v6935_v8 = vcombine.low %v1553_v58, %v1561_v60 }
 0x3f4   :  { %5055 = vmatpush1.bf16.msra.mxu0 %v6821_v5  ;;  %v1568_v5 = vld [vmem:[#allocation7 + $0x530] sm:$0xff] }
 0x3f5   :  { %5137 = vmatpush1.bf16.msra.mxu1 %v6823_v6  ;;  %5056 = vmatprep.subr.bf16.mxu0 %v6838_v39  ;;  %v1576_v6 = vld [vmem:[#allocation7 + $0x570] sm:$0xff]  ;;  %v1569_v39 = vld [vmem:[#allocation7 + $0x538] sm:$0xff] }
 0x3f6   :  { %5138 = vmatprep.subr.bf16.mxu1 %v6840_v7  ;;  %v1577_v7 = vld [vmem:[#allocation7 + $0x578] sm:$0xff]  ;;  %v6950_v9 = vcombine.high %v1568_v5, %v1576_v6  ;;  %v6949_v14 = vcombine.low %v1568_v5, %v1576_v6 }
 0x3f7   :  { %v6952_v11 = vcombine.high %v1569_v39, %v1577_v7  ;;  %v6951_v15 = vcombine.low %v1569_v39, %v1577_v7 }
 0x3f8   :  { %5057 = vmatpush1.bf16.msra.mxu0 %v6837_v49  ;;  %v1584_v49 = vld [vmem:[#allocation7 + $0x5b0] sm:$0xff] }
 0x3f9   :  { %5139 = vmatpush1.bf16.msra.mxu1 %v6839_v12  ;;  %5058 = vmatprep.subr.bf16.mxu0 %v6854_v63  ;;  %v1592_v12 = vld [vmem:[#allocation7 + $0x5f0] sm:$0xff]  ;;  %v1585_v63 = vld [vmem:[#allocation7 + $0x5b8] sm:$0xff] }
 0x3fa   :  { %5140 = vmatprep.subr.bf16.mxu1 %v6856_v13  ;;  %v1593_v13 = vld [vmem:[#allocation7 + $0x5f8] sm:$0xff]  ;;  %v6966_v16 = vcombine.high %v1584_v49, %v1592_v12  ;;  %v6965_v22 = vcombine.low %v1584_v49, %v1592_v12 }
 0x3fb   :  { %v6968_v17 = vcombine.high %v1585_v63, %v1593_v13  ;;  %v6967_v24 = vcombine.low %v1585_v63, %v1593_v13  ;;  %v1689_v49 = vld [vmem:[#allocation7 + $0x8f8] sm:$0xff]  ;;  %v1696_v13 = vld [vmem:[#allocation7 + $0x930] sm:$0xff] }
 0x3fc   :  { %5059 = vmatpush1.bf16.msra.mxu0 %v6853_v18  ;;  %v1600_v18 = vld [vmem:[#allocation7 + $0x630] sm:$0xff] }
 0x3fd   :  { %5141 = vmatpush1.bf16.msra.mxu1 %v6855_v19  ;;  %5060 = vmatprep.subr.bf16.mxu0 %v6870_v20  ;;  %v1608_v19 = vld [vmem:[#allocation7 + $0x670] sm:$0xff]  ;;  %v1601_v20 = vld [vmem:[#allocation7 + $0x638] sm:$0xff] }
 0x3fe   :  { %5142 = vmatprep.subr.bf16.mxu1 %v6872_v21  ;;  %v1609_v21 = vld [vmem:[#allocation7 + $0x678] sm:$0xff]  ;;  %v6982_v25 = vcombine.high %v1600_v18, %v1608_v19  ;;  %v6981_v32 = vcombine.low %v1600_v18, %v1608_v19 }
 0x3ff   :  { %v6984_v26 = vcombine.high %v1601_v20, %v1609_v21  ;;  %v6983_v33 = vcombine.low %v1601_v20, %v1609_v21 }
 0x400   :  { %5061 = vmatpush1.bf16.msra.mxu0 %v6869_v27  ;;  %v1616_v27 = vld [vmem:[#allocation7 + $0x6b0] sm:$0xff] }
 0x401   :  { %5143 = vmatpush1.bf16.msra.mxu1 %v6871_v29  ;;  %5062 = vmatprep.subr.bf16.mxu0 %v6886_v30  ;;  %v1624_v29 = vld [vmem:[#allocation7 + $0x6f0] sm:$0xff]  ;;  %v1617_v30 = vld [vmem:[#allocation7 + $0x6b8] sm:$0xff] }
 0x402   :  { %5144 = vmatprep.subr.bf16.mxu1 %v6888_v31  ;;  %v1625_v31 = vld [vmem:[#allocation7 + $0x6f8] sm:$0xff]  ;;  %v6998_v34 = vcombine.high %v1616_v27, %v1624_v29  ;;  %v6997_v44 = vcombine.low %v1616_v27, %v1624_v29 }
 0x403   :  { %v7000_v35 = vcombine.high %v1617_v30, %v1625_v31  ;;  %v6999_v45 = vcombine.low %v1617_v30, %v1625_v31  ;;  %v1728_v31 = vld [vmem:[#allocation7 + $0xa30] sm:$0xff] }
 0x404   :  { %5063 = vmatpush1.bf16.msra.mxu0 %v6885_v36  ;;  %v1632_v36 = vld [vmem:[#allocation7 + $0x730] sm:$0xff] }
 0x405   :  { %5145 = vmatpush1.bf16.msra.mxu1 %v6887_v41  ;;  %5064 = vmatprep.subr.bf16.mxu0 %v6902_v42  ;;  %v1640_v41 = vld [vmem:[#allocation7 + $0x770] sm:$0xff]  ;;  %v1633_v42 = vld [vmem:[#allocation7 + $0x738] sm:$0xff] }
 0x406   :  { %5146 = vmatprep.subr.bf16.mxu1 %v6904_v43  ;;  %v1641_v43 = vld [vmem:[#allocation7 + $0x778] sm:$0xff]  ;;  %v7014_v46 = vcombine.high %v1632_v36, %v1640_v41  ;;  %v7013_v56 = vcombine.low %v1632_v36, %v1640_v41 }
 0x407   :  { %v7016_v47 = vcombine.high %v1633_v42, %v1641_v43  ;;  %v7015_v57 = vcombine.low %v1633_v42, %v1641_v43  ;;  %v1744_v42 = vld [vmem:[#allocation7 + $0xab0] sm:$0xff] }
 0x408   :  { %5065 = vmatpush1.bf16.msra.mxu0 %v6901_v48  ;;  %v1648_v48 = vld [vmem:[#allocation7 + $0x7b0] sm:$0xff] }
 0x409   :  { %5147 = vmatpush1.bf16.msra.mxu1 %v6903_v52  ;;  %5066 = vmatprep.subr.bf16.mxu0 %v6918_v54  ;;  %v1656_v52 = vld [vmem:[#allocation7 + $0x7f0] sm:$0xff]  ;;  %v1649_v54 = vld [vmem:[#allocation7 + $0x7b8] sm:$0xff] }
 0x40a   :  { %5148 = vmatprep.subr.bf16.mxu1 %v6920_v55  ;;  %v1657_v55 = vld [vmem:[#allocation7 + $0x7f8] sm:$0xff]  ;;  %v7030_v58 = vcombine.high %v1648_v48, %v1656_v52  ;;  %v7029_v5 = vcombine.low %v1648_v48, %v1656_v52  ;;  %v1752_v43 = vld [vmem:[#allocation7 + $0xaf0] sm:$0xff] }
 0x40b   :  { %v7032_v60 = vcombine.high %v1649_v54, %v1657_v55  ;;  %v7031_v6 = vcombine.low %v1649_v54, %v1657_v55  ;;  %v7126_v48 = vcombine.high %v1744_v42, %v1752_v43  ;;  %v1760_v54 = vld [vmem:[#allocation7 + $0xb30] sm:$0xff] }
 0x40c   :  { %5067 = vmatpush1.bf16.msra.mxu0 %v6917_v61  ;;  %v1664_v61 = vld [vmem:[#allocation7 + $0x830] sm:$0xff] }
 0x40d   :  { %5149 = vmatpush1.bf16.msra.mxu1 %v6919_v0  ;;  %5068 = vmatprep.subr.bf16.mxu0 %v6934_v1  ;;  %v1672_v0 = vld [vmem:[#allocation7 + $0x870] sm:$0xff]  ;;  %v1665_v1 = vld [vmem:[#allocation7 + $0x838] sm:$0xff] }
 0x40e   :  { %5150 = vmatprep.subr.bf16.mxu1 %v6936_v2  ;;  %v1673_v2 = vld [vmem:[#allocation7 + $0x878] sm:$0xff]  ;;  %v7046_v39 = vcombine.high %v1664_v61, %v1672_v0  ;;  %v1768_v55 = vld [vmem:[#allocation7 + $0xb70] sm:$0xff] }
 0x40f   :  { %v7048_v7 = vcombine.high %v1665_v1, %v1673_v2  ;;  %v7047_v12 = vcombine.low %v1665_v1, %v1673_v2  ;;  %v1776_v2 = vld [vmem:[#allocation7 + $0xbb0] sm:$0xff] }
 0x410   :  { %5069 = vmatpush1.bf16.msra.mxu0 %v6933_v28  ;;  %v1680_v28 = vld [vmem:[#allocation7 + $0x8b0] sm:$0xff] }
 0x411   :  { %5151 = vmatpush1.bf16.msra.mxu1 %v6935_v8  ;;  %5070 = vmatprep.subr.bf16.mxu0 %v6950_v9  ;;  %v1688_v8 = vld [vmem:[#allocation7 + $0x8f0] sm:$0xff]  ;;  %v7045_v9 = vcombine.low %v1664_v61, %v1672_v0  ;;  %v7142_v61 = vcombine.high %v1760_v54, %v1768_v55 }
 0x412   :  { %5152 = vmatprep.subr.bf16.mxu1 %v6952_v11  ;;  %v1681_v11 = vld [vmem:[#allocation7 + $0x8b8] sm:$0xff]  ;;  %v7062_v63 = vcombine.high %v1680_v28, %v1688_v8  ;;  %v7061_v18 = vcombine.low %v1680_v28, %v1688_v8 }
 0x413   :  { %v7063_v19 = vcombine.low %v1681_v11, %v1689_v49  ;;  %v1785_v28 = vld [vmem:[#allocation7 + $0xbf8] sm:$0xff] }
 0x414   :  { %5071 = vmatpush1.bf16.msra.mxu0 %v6949_v14  ;;  %v1704_v14 = vld [vmem:[#allocation7 + $0x970] sm:$0xff] }
 0x415   :  { %5153 = vmatpush1.bf16.msra.mxu1 %v6951_v15  ;;  %5072 = vmatprep.subr.bf16.mxu0 %v6966_v16  ;;  %v7064_v15 = vcombine.high %v1681_v11, %v1689_v49  ;;  %v1697_v16 = vld [vmem:[#allocation7 + $0x938] sm:$0xff]  ;;  %v7078_v20 = vcombine.high %v1696_v13, %v1704_v14  ;;  %v7077_v27 = vcombine.low %v1696_v13, %v1704_v14 }
 0x416   :  { %5154 = vmatprep.subr.bf16.mxu1 %v6968_v17  ;;  %v1705_v17 = vld [vmem:[#allocation7 + $0x978] sm:$0xff]  ;;  %v7141_v11 = vcombine.low %v1760_v54, %v1768_v55 }
 0x417   :  { %v7080_v21 = vcombine.high %v1697_v16, %v1705_v17 }
 0x418   :  { %5073 = vmatpush1.bf16.msra.mxu0 %v6965_v22  ;;  %v1712_v22 = vld [vmem:[#allocation7 + $0x9b0] sm:$0xff] }
 0x419   :  { %5155 = vmatpush1.bf16.msra.mxu1 %v6967_v24  ;;  %5074 = vmatprep.subr.bf16.mxu0 %v6982_v25  ;;  %v1720_v24 = vld [vmem:[#allocation7 + $0x9f0] sm:$0xff]  ;;  %v1713_v25 = vld [vmem:[#allocation7 + $0x9b8] sm:$0xff] }
 0x41a   :  { %5156 = vmatprep.subr.bf16.mxu1 %v6984_v26  ;;  %v1721_v26 = vld [vmem:[#allocation7 + $0x9f8] sm:$0xff]  ;;  %v7094_v29 = vcombine.high %v1712_v22, %v1720_v24 }
 0x41b   :  { %v7096_v30 = vcombine.high %v1713_v25, %v1721_v26 }
 0x41c   :  { %5075 = vmatpush1.bf16.msra.mxu0 %v6981_v32  ;;  %v1736_v32 = vld [vmem:[#allocation7 + $0xa70] sm:$0xff] }
 0x41d   :  { %5157 = vmatpush1.bf16.msra.mxu1 %v6983_v33  ;;  %5076 = vmatprep.subr.bf16.mxu0 %v6998_v34  ;;  %v1729_v33 = vld [vmem:[#allocation7 + $0xa38] sm:$0xff]  ;;  %v7110_v36 = vcombine.high %v1728_v31, %v1736_v32 }
 0x41e   :  { %5158 = vmatprep.subr.bf16.mxu1 %v7000_v35  ;;  %v1737_v34 = vld [vmem:[#allocation7 + $0xa78] sm:$0xff]  ;;  %v7095_v35 = vcombine.low %v1713_v25, %v1721_v26  ;;  %v1808_v25 = vld [vmem:[#allocation7 + $0xcb0] sm:$0xff] }
 0x41f   :  { %v7112_v41 = vcombine.high %v1729_v33, %v1737_v34  ;;  %v1816_v26 = vld [vmem:[#allocation7 + $0xcf0] sm:$0xff] }
 0x420   :  { %5077 = vmatpush1.bf16.msra.mxu0 %v6997_v44  ;;  %v1745_v44 = vld [vmem:[#allocation7 + $0xab8] sm:$0xff] }
 0x421   :  { %5159 = vmatpush1.bf16.msra.mxu1 %v6999_v45  ;;  %5078 = vmatprep.subr.bf16.mxu0 %v7014_v46  ;;  %v1753_v45 = vld [vmem:[#allocation7 + $0xaf8] sm:$0xff]  ;;  %v7109_v46 = vcombine.low %v1728_v31, %v1736_v32  ;;  %v7190_v31 = vcombine.high %v1808_v25, %v1816_v26 }
 0x422   :  { %5160 = vmatprep.subr.bf16.mxu1 %v7016_v47  ;;  %v7111_v47 = vcombine.low %v1729_v33, %v1737_v34  ;;  %v7128_v52 = vcombine.high %v1745_v44, %v1753_v45  ;;  %v1824_v33 = vld [vmem:[#allocation7 + $0xd30] sm:$0xff] }
 0x423   :  { %v1832_v34 = vld [vmem:[#allocation7 + $0xd70] sm:$0xff] }
 0x424   :  { %5079 = vmatpush1.bf16.msra.mxu0 %v7013_v56  ;;  %v1761_v56 = vld [vmem:[#allocation7 + $0xb38] sm:$0xff] }
 0x425   :  { %5161 = vmatpush1.bf16.msra.mxu1 %v7015_v57  ;;  %5080 = vmatprep.subr.bf16.mxu0 %v7030_v58  ;;  %v1769_v57 = vld [vmem:[#allocation7 + $0xb78] sm:$0xff]  ;;  %v7125_v58 = vcombine.low %v1744_v42, %v1752_v43  ;;  %v7206_v42 = vcombine.high %v1824_v33, %v1832_v34 }
 0x426   :  { %5162 = vmatprep.subr.bf16.mxu1 %v7032_v60  ;;  %v7127_v60 = vcombine.low %v1745_v44, %v1753_v45  ;;  %v7144_v1 = vcombine.high %v1761_v56, %v1769_v57  ;;  %v1840_v44 = vld [vmem:[#allocation7 + $0xdb0] sm:$0xff] }
 0x427   :  { %v1848_v45 = vld [vmem:[#allocation7 + $0xdf0] sm:$0xff] }
 0x428   :  { %5081 = vmatpush1.bf16.msra.mxu0 %v7029_v5  ;;  %v1784_v5 = vld [vmem:[#allocation7 + $0xbf0] sm:$0xff]  ;;  %v7222_v54 = vcombine.high %v1840_v44, %v1848_v45 }
 0x429   :  { %5163 = vmatpush1.bf16.msra.mxu1 %v7031_v6  ;;  %5091 = vmatprep.subr.bf16.mxu0 %v7046_v39  ;;  %v7158_v13 = vcombine.high %v1776_v2, %v1784_v5 }
 0x42a   :  { %5173 = vmatprep.subr.bf16.mxu1 %v7048_v7  ;;  %v1777_v7 = vld [vmem:[#allocation7 + $0xbb8] sm:$0xff] }
 0x42b   :  { %5083 = vmatmul.mubr.bf16.vlgmr.msra.gmra.mrb[20].mxu0 %v8466_v50 }
 0x42c   :  { %5165 = vmatmul.mubr.bf16.vlgmr.msra.gmra.mrb[20].mxu1 %v8466_v50  ;;  %5092 = vmatpush1.bf16.msra.mxu0 %v7045_v9  ;;  %v7079_v50 = vcombine.low %v1697_v16, %v1705_v17  ;;  %v1792_v16 = vld [vmem:[#allocation7 + $0xc30] sm:$0xff] }
 0x42d   :  { %5123 = vmatprep.mubr.bf16.mxu0 %v8470_v59  ;;  %5174 = vmatpush1.bf16.msra.mxu1 %v7047_v12  ;;  %v1800_v17 = vld [vmem:[#allocation7 + $0xc70] sm:$0xff] }
 0x42e   :  { %5205 = vmatprep.mubr.bf16.mxu1 %v8470_v59  ;;  %5093 = vmatprep.subr.bf16.mxu0 %v7062_v63  ;;  %v7093_v59 = vcombine.low %v1712_v22, %v1720_v24  ;;  %v7143_v63 = vcombine.low %v1761_v56, %v1769_v57  ;;  %v7174_v22 = vcombine.high %v1792_v16, %v1800_v17  ;;  %v1856_v56 = vld [vmem:[#allocation7 + $0xe30] sm:$0xff] }
 0x42f   :  { %5175 = vmatprep.subr.bf16.mxu1 %v7064_v15  ;;  %v7160_v15 = vcombine.high %v1777_v7, %v1785_v28  ;;  %v1864_v57 = vld [vmem:[#allocation7 + $0xe70] sm:$0xff] }
 0x430   :  { %5094 = vmatpush1.bf16.msra.mxu0 %v7061_v18  ;;  %v1793_v18 = vld [vmem:[#allocation7 + $0xc38] sm:$0xff] }
 0x431   :  { %5176 = vmatpush1.bf16.msra.mxu1 %v7063_v19  ;;  %5095 = vmatprep.subr.bf16.mxu0 %v7078_v20  ;;  %v1801_v19 = vld [vmem:[#allocation7 + $0xc78] sm:$0xff]  ;;  %v7157_v20 = vcombine.low %v1776_v2, %v1784_v5  ;;  %v7238_v2 = vcombine.high %v1856_v56, %v1864_v57 }
 0x432   :  { %5177 = vmatprep.subr.bf16.mxu1 %v7080_v21  ;;  %v7159_v21 = vcombine.low %v1777_v7, %v1785_v28  ;;  %v7176_v24 = vcombine.high %v1793_v18, %v1801_v19  ;;  %v1872_v7 = vld [vmem:[#allocation7 + $0xeb0] sm:$0xff] }
 0x433   :  { %v1880_v28 = vld [vmem:[#allocation7 + $0xef0] sm:$0xff] }
 0x434   :  { %5096 = vmatpush1.bf16.msra.mxu0 %v7077_v27  ;;  %v1809_v27 = vld [vmem:[#allocation7 + $0xcb8] sm:$0xff] }
 0x435   :  { %5178 = vmatpush1.bf16.msra.mxu1 %v7079_v50  ;;  %5097 = vmatprep.subr.bf16.mxu0 %v7094_v29  ;;  %v1817_v50 = vld [vmem:[#allocation7 + $0xcf8] sm:$0xff]  ;;  %v7173_v29 = vcombine.low %v1792_v16, %v1800_v17 }
 0x436   :  { %5179 = vmatprep.subr.bf16.mxu1 %v7096_v30  ;;  %v7175_v30 = vcombine.low %v1793_v18, %v1801_v19  ;;  %v7192_v32 = vcombine.high %v1809_v27, %v1817_v50  ;;  %v1889_v16 = vld [vmem:[#allocation7 + $0xf38] sm:$0xff]  ;;  %v8521_v18 = vld [vmem:[#allocation13] sm:$0xff]  ;;  %v7253_v19 = vcombine.low %v1872_v7, %v1880_v28 }
 0x437   :  { %v1897_v17 = vld [vmem:[#allocation7 + $0xf78] sm:$0xff] }
 0x438   :  { %5098 = vmatpush1.bf16.msra.mxu0 %v7093_v59  ;;  %v1825_v59 = vld [vmem:[#allocation7 + $0xd38] sm:$0xff] }
 0x439   :  { %5180 = vmatpush1.bf16.msra.mxu1 %v7095_v35  ;;  %5099 = vmatprep.subr.bf16.mxu0 %v7110_v36  ;;  %v1833_v35 = vld [vmem:[#allocation7 + $0xd78] sm:$0xff]  ;;  %v7189_v36 = vcombine.low %v1808_v25, %v1816_v26  ;;  %v1912_v25 = vld [vmem:[#allocation7 + $0xff0] sm:$0xff]  ;;  %v1925_v26 = vrot.slane %v8521_v18, %v8435_v40 }
 0x43a   :  { %5181 = vmatprep.subr.bf16.mxu1 %v7112_v41  ;;  %v7191_v41 = vcombine.low %v1809_v27, %v1817_v50  ;;  %v7208_v43 = vcombine.high %v1825_v59, %v1833_v35  ;;  %v1905_v27 = vld [vmem:[#allocation7 + $0xfb8] sm:$0xff] }
 0x43b   :  { %v1913_v50 = vld [vmem:[#allocation7 + $0xff8] sm:$0xff] }
 0x43c   :  { %5100 = vmatpush1.bf16.msra.mxu0 %v7109_v46  ;;  %v1841_v46 = vld [vmem:[#allocation7 + $0xdb8] sm:$0xff] }
 0x43d   :  { %5182 = vmatpush1.bf16.msra.mxu1 %v7111_v47  ;;  %5101 = vmatprep.subr.bf16.mxu0 %v7126_v48  ;;  %v1849_v47 = vld [vmem:[#allocation7 + $0xdf8] sm:$0xff]  ;;  %v7205_v48 = vcombine.low %v1824_v33, %v1832_v34  ;;  %v7288_v33 = vcombine.high %v1905_v27, %v1913_v50  ;;  %v7599_v34 = vadd.f32 %v8501_v3, %v1925_v26 }
 0x43e   :  { %v8513_v0 = vpop.f32.mrb[12].mxu0  ;;  %5183 = vmatprep.subr.bf16.mxu1 %v7128_v52  ;;  %v7207_v52 = vcombine.low %v1825_v59, %v1833_v35  ;;  %v7224_v55 = vcombine.high %v1841_v46, %v1849_v47 }
 0x43f   :  { %v8515_v6 = vpop.f32.mrb[12].mxu1  ;;  %v8517_v39 = vpop.f32.mrb[13].mxu0 }
 0x440   :  { %v8519_v8 = vpop.f32.mrb[13].mxu1  ;;  %v4801_v9 = vpop.f32.mrb[14].mxu0  ;;  %5102 = vmatpush1.bf16.msra.mxu0 %v7125_v58  ;;  %v1857_v58 = vld [vmem:[#allocation7 + $0xe38] sm:$0xff] }
 0x441   :  { %v4883_v49 = vpop.f32.mrb[14].mxu1  ;;  %5184 = vmatpush1.bf16.msra.mxu1 %v7127_v60  ;;  %v4802_v12 = vpop.f32.mrb[15].mxu0  ;;  %5103 = vmatprep.subr.bf16.mxu0 %v7142_v61  ;;  %v1865_v60 = vld [vmem:[#allocation7 + $0xe78] sm:$0xff]  ;;  %v7221_v61 = vcombine.low %v1840_v44, %v1848_v45  ;;  %v7911_v45 = vld [vmem:[#allocation8] sm:$0xff]  }
 0x442   :  { %v4884_v14 = vpop.f32.mrb[15].mxu1  ;;  %5185 = vmatprep.subr.bf16.mxu1 %v7144_v1  ;;  %v7223_v1 = vcombine.low %v1841_v46, %v1849_v47  ;;  %v7240_v5 = vcombine.high %v1857_v58, %v1865_v60  ;;  %v1873_v9 = vld [vmem:[#allocation7 + $0xeb8] sm:$0xff]  ;;  %v7237_v49 = vcombine.low %v1856_v56, %v1864_v57  ;;  %v7239_v12 = vcombine.low %v1857_v58, %v1865_v60  ;;  %v7912_v46 = vld [vmem:[#allocation8 + $0x80] sm:$0xff]   ;;  %v7913_v47 = vld [vmem:[#allocation8 + $0x48] sm:$0xff]  }
 0x443   :  { %v1888_v14 = vld [vmem:[#allocation7 + $0xf30] sm:$0xff]  ;;  %v7921_v60 = vld [vmem:[#allocation8 + $0x58] sm:$0xff]  }
 0x444   :  { %5104 = vmatpush1.bf16.msra.mxu0 %v7141_v11  ;;  %v1881_v11 = vld [vmem:[#allocation7 + $0xef8] sm:$0xff]  ;;  %v7918_v56 = vld [vmem:[#allocation8 + $0xd0] sm:$0xff]  }
 0x445   :  { %5186 = vmatpush1.bf16.msra.mxu1 %v7143_v63  ;;  %5105 = vmatprep.subr.bf16.mxu0 %v7158_v13  ;;  %v7254_v63 = vcombine.high %v1872_v7, %v1880_v28  ;;  %v7256_v13 = vcombine.high %v1873_v9, %v1881_v11  ;;  %v7919_v57 = vld [vmem:[#allocation8 + $0x10] sm:$0xff]   ;;  %v7927_v7 = vld [vmem:[#allocation8 + $0x20] sm:$0xff]  }
 0x446   :  { %5187 = vmatprep.subr.bf16.mxu1 %v7160_v15  ;;  %v1896_v15 = vld [vmem:[#allocation7 + $0xf70] sm:$0xff]  ;;  %v7928_v28 = vld [vmem:[#allocation8 + $0xa0] sm:$0xff]  }
 0x447   :  { %v7920_v58 = vld [vmem:[#allocation8 + $0x90] sm:$0xff]  }
 0x448   :  { %5106 = vmatpush1.bf16.msra.mxu0 %v7157_v20  ;;  %v7255_v20 = vcombine.low %v1873_v9, %v1881_v11  ;;  %v7929_v9 = vld [vmem:[#allocation8 + $0x68] sm:$0xff]  }
 0x449   :  { %5188 = vmatpush1.bf16.msra.mxu1 %v7159_v21  ;;  %5107 = vmatprep.subr.bf16.mxu0 %v7174_v22  ;;  %v7270_v21 = vcombine.high %v1888_v14, %v1896_v15  ;;  %v7272_v22 = vcombine.high %v1889_v16, %v1897_v17  ;;  %v7930_v11 = vld [vmem:[#allocation8 + $0xe8] sm:$0xff]  }
 0x44a   :  { %5189 = vmatprep.subr.bf16.mxu1 %v7176_v24  ;;  %v1904_v24 = vld [vmem:[#allocation7 + $0xfb0] sm:$0xff] }
 0x44b   :  { %v7285_v35 = vcombine.low %v1904_v24, %v1912_v25 }
 0x44c   :  { %5108 = vmatpush1.bf16.msra.mxu0 %v7173_v29  ;;  %v1933_v29 = vrot.slane %v8521_v18, %v8442_v51 }
 0x44d   :  { %5190 = vmatpush1.bf16.msra.mxu1 %v7175_v30  ;;  %5109 = vmatprep.subr.bf16.mxu0 %v7190_v31  ;;  %v7269_v30 = vcombine.low %v1888_v14, %v1896_v15  ;;  %v7271_v31 = vcombine.low %v1889_v16, %v1897_v17  ;;  %v7932_v14 = vld [vmem:[#allocation8 + $0xa8] sm:$0xff]   ;;  %v7933_v15 = vld [vmem:[#allocation8 + $0x70] sm:$0xff]   ;;  %v1929_v16 = vrot.slane %v8521_v18, %v8449_v53 }
 0x44e   :  { %5191 = vmatprep.subr.bf16.mxu1 %v7192_v32  ;;  %v7286_v32 = vcombine.high %v1904_v24, %v1912_v25  ;;  %v7601_v59 = vadd.f32 %v8503_v4, %v1933_v29  ;;  %v7914_v4 = vld [vmem:[#allocation8 + $0xc8] sm:$0xff]   ;;  %v7934_v17 = vld [vmem:[#allocation8 + $0xf0] sm:$0xff]   ;;  %v7937_v25 = vld [vmem:[#allocation8 + $0x78] sm:$0xff]  }
 0x44f   :  { %v7936_v24 = vld [vmem:[#allocation8 + $0xb0] sm:$0xff]   ;;  %v7600_v26 = vadd.f32 %v8499_v23, %v1929_v16  ;;  %v7943_v23 = vld [vmem:[#allocation8 + $0x100] sm:$0xff]  }
 0x450   :  { %5110 = vmatpush1.bf16.msra.mxu0 %v7189_v36  ;;  %v7287_v36 = vcombine.low %v1905_v27, %v1913_v50  ;;  %v5217_v44 = vmax.f32 %v7601_v59, 0.0  ;;  %v7938_v27 = vld [vmem:[#allocation8 + $0xf8] sm:$0xff]   ;;  %v7968_v16 = vld [vmem:[#allocation8 + $0x1b0] sm:$0xff]  }
 0x451   :  { %5192 = vmatpush1.bf16.msra.mxu1 %v7191_v41  ;;  %5111 = vmatprep.subr.bf16.mxu0 %v7206_v42  ;;  %v7909_v41 = vld [vmem:[#allocation8 + $0x40] sm:$0xff]  }
 0x452   :  { %5193 = vmatprep.subr.bf16.mxu1 %v7208_v43  ;;  %v7910_v42 = vld [vmem:[#allocation8 + $0xc0] sm:$0xff]   ;;  %v5215_v43 = vmax.f32 %v7599_v34, 0.0 }
 0x453   :  { %v7942_v34 = vld [vmem:[#allocation8 + $0x1c0] sm:$0xff]  }
 0x454   :  { %5112 = vmatpush1.bf16.msra.mxu0 %v7205_v48  ;;  %v5231_v3 = vpack.c.bf16 %v5215_v43, %v5215_v43  ;;  %v5233_v48 = vpack.c.bf16 %v5217_v44, %v5217_v44  ;;  %v7946_v43 = vld [vmem:[#allocation8 + $0x1c8] sm:$0xff]  }
 0x455   :  { %5194 = vmatpush1.bf16.msra.mxu1 %v7207_v52  ;;  %5113 = vmatprep.subr.bf16.mxu0 %v7222_v54  ;;  %v7915_v52 = vld [vmem:[#allocation8 + $0x8] sm:$0xff]  }
 0x456   :  { %5195 = vmatprep.subr.bf16.mxu1 %v7224_v55  ;;  %v7916_v54 = vld [vmem:[#allocation8 + $0x88] sm:$0xff]   ;;  %v7917_v55 = vld [vmem:[#allocation8 + $0x50] sm:$0xff]  }
 0x458   :  { %5114 = vmatpush1.bf16.msra.mxu0 %v7221_v61  ;;  %v7922_v61 = vld [vmem:[#allocation8 + $0xd8] sm:$0xff]  }
 0x459   :  { %5196 = vmatpush1.bf16.msra.mxu1 %v7223_v1  ;;  %5115 = vmatprep.subr.bf16.mxu0 %v7238_v2  ;;  %v7924_v1 = vld [vmem:[#allocation8 + $0x98] sm:$0xff]   ;;  %v7925_v2 = vld [vmem:[#allocation8 + $0x60] sm:$0xff]  }
 0x45a   :  { %5197 = vmatprep.subr.bf16.mxu1 %v7240_v5  ;;  %v7926_v5 = vld [vmem:[#allocation8 + $0xe0] sm:$0xff]  }
 0x45c   :  { %5116 = vmatpush1.bf16.msra.mxu0 %v7237_v49  ;;  %v1940_v49 = vsub.s32 5, %v8427_v37 }
 0x45d   :  { %5198 = vmatpush1.bf16.msra.mxu1 %v7239_v12  ;;  %5117 = vmatprep.subr.bf16.mxu0 %v7254_v63  ;;  %v1948_v12 = vsub.s32 7, %v8427_v37  ;;  %v7931_v63 = vld [vmem:[#allocation8 + $0x28] sm:$0xff]  }
 0x45e   :  { %5199 = vmatprep.subr.bf16.mxu1 %v7256_v13  ;;  %v1921_v13 = vrot.slane %v8521_v18, %v8430_v38 }
 0x460   :  { %5118 = vmatpush1.bf16.msra.mxu0 %v7253_v19  ;;  %v1941_v19 = vrot.slane %v8521_v18, %v1940_v49 }
 0x461   :  { %5200 = vmatpush1.bf16.msra.mxu1 %v7255_v20  ;;  %5119 = vmatprep.subr.bf16.mxu0 %v7270_v21  ;;  %v1949_v20 = vrot.slane %v8521_v18, %v1948_v12  ;;  %v7935_v21 = vld [vmem:[#allocation8 + $0x30] sm:$0xff]  }
 0x462   :  { %5201 = vmatprep.subr.bf16.mxu1 %v7272_v22  ;;  %v7598_v22 = vadd.f32 %v8497_v62, %v1921_v13  ;;  %v7603_v50 = vadd.f32 %v8517_v39, %v1941_v19  ;;  %v5216_v62 = vmax.f32 %v7600_v26, 0.0  ;;  %v7944_v39 = vld [vmem:[#allocation8 + $0x180] sm:$0xff]   ;;  %v7966_v13 = vld [vmem:[#allocation8 + $0x1f0] sm:$0xff]  }
 0x463   :  { %v7605_v29 = vadd.f32 %v8519_v8, %v1949_v20  ;;  %v7945_v8 = vld [vmem:[#allocation8 + $0x148] sm:$0xff]   ;;  %v7970_v20 = vld [vmem:[#allocation8 + $0x1f8] sm:$0xff]   ;;  %v7974_v26 = vld [vmem:[#allocation8 + $0x2c0] sm:$0xff]  }
 0x464   :  { %5120 = vmatpush1.bf16.msra.mxu0 %v7269_v30  ;;  %v7939_v30 = vld [vmem:[#allocation8 + $0x38] sm:$0xff]   ;;  %v5219_v59 = vmax.f32 %v7603_v50, 0.0  ;;  %v7976_v50 = vld [vmem:[#allocation8 + $0x280] sm:$0xff]  }
 0x465   :  { %5202 = vmatpush1.bf16.msra.mxu1 %v7271_v31  ;;  %5121 = vmatprep.subr.bf16.mxu0 %v7286_v32  ;;  %v5214_v31 = vmax.f32 %v7598_v22, 0.0  ;;  %v7940_v32 = vld [vmem:[#allocation8 + $0xb8] sm:$0xff]  }
 0x466   :  { %5203 = vmatprep.subr.bf16.mxu1 %v7288_v33  ;;  %v7941_v33 = vld [vmem:[#allocation8 + $0x140] sm:$0xff]  }
 0x468   :  { %5122 = vmatpush1.bf16.msra.mxu0 %v7285_v35  ;;  %v5221_v35 = vmax.f32 %v7605_v29, 0.0  ;;  %v7977_v29 = vld [vmem:[#allocation8 + $0x248] sm:$0xff]  }
 0x469   :  { %5204 = vmatpush1.bf16.msra.mxu1 %v7287_v36  ;;  %7418 = vmatprep.subr.bf16.mxu0 %v7909_v41  ;;  %v5230_v36 = vpack.c.bf16 %v5214_v31, %v5214_v31  ;;  %v5232_v41 = vpack.c.bf16 %v5216_v62, %v5216_v62  ;;  %v7979_v31 = vld [vmem:[#allocation8 + $0x208] sm:$0xff]   ;;  %v7982_v62 = vld [vmem:[#allocation8 + $0x2d0] sm:$0xff]  }
 0x46a   :  { %7440 = vmatprep.subr.bf16.mxu1 %v7910_v42  ;;  %v5235_v42 = vpack.c.bf16 %v5219_v59, %v5219_v59  ;;  %v5237_v44 = vpack.c.bf16 %v5221_v35, %v5221_v35  ;;  %v7984_v59 = vld [vmem:[#allocation8 + $0x290] sm:$0xff]   ;;  %v7985_v35 = vld [vmem:[#allocation8 + $0x258] sm:$0xff]  }
 0x46b   :  { %5124 = vmatmul.mubr.bf16.vlgmr.msra.gmra.mrb[20].mxu0 %v8479_v10 }
 0x46c   :  { %5206 = vmatmul.mubr.bf16.vlgmr.msra.gmra.mrb[20].mxu1 %v8479_v10  ;;  %7419 = vmatpush3.bf16.msra.mxu0 %v7911_v45  ;;  %v7923_v10 = vld [vmem:[#allocation8 + $0x18] sm:$0xff]   ;;  %v7947_v45 = vld [vmem:[#allocation8 + $0x108] sm:$0xff]  }
 0x46d   :  { %6309 = vmatprep.mubr.bf16.mxu0 %v5231_v3  ;;  %7441 = vmatpush3.bf16.msra.mxu1 %v7912_v46  ;;  %v7948_v46 = vld [vmem:[#allocation8 + $0x188] sm:$0xff]   ;;  %v7950_v3 = vld [vmem:[#allocation8 + $0x1d0] sm:$0xff]  }
 0x46e   :  { %6349 = vmatprep.mubr.bf16.mxu1 %v5233_v48  ;;  %7420 = vmatprep.subr.bf16.mxu0 %v7913_v47  ;;  %v7949_v47 = vld [vmem:[#allocation8 + $0x150] sm:$0xff]  }
 0x46f   :  { %7442 = vmatprep.subr.bf16.mxu1 %v7914_v4  ;;  %v7951_v4 = vld [vmem:[#allocation8 + $0x110] sm:$0xff]  }
 0x470   :  { %7421 = vmatpush3.bf16.msra.mxu0 %v7915_v52  ;;  %v7952_v48 = vld [vmem:[#allocation8 + $0x190] sm:$0xff]   ;;  %v7953_v52 = vld [vmem:[#allocation8 + $0x158] sm:$0xff]  }
 0x471   :  { %7443 = vmatpush3.bf16.msra.mxu1 %v7916_v54  ;;  %7422 = vmatprep.subr.bf16.mxu0 %v7917_v55  ;;  %v7954_v54 = vld [vmem:[#allocation8 + $0x1d8] sm:$0xff]  }
 0x472   :  { %7444 = vmatprep.subr.bf16.mxu1 %v7918_v56  ;;  %v7955_v55 = vld [vmem:[#allocation8 + $0x118] sm:$0xff]  }
 0x473   :  { %v7956_v56 = vld [vmem:[#allocation8 + $0x198] sm:$0xff]  }
 0x474   :  { %7423 = vmatpush3.bf16.msra.mxu0 %v7919_v57  ;;  %v7957_v57 = vld [vmem:[#allocation8 + $0x160] sm:$0xff]  }
 0x475   :  { %7445 = vmatpush3.bf16.msra.mxu1 %v7920_v58  ;;  %7424 = vmatprep.subr.bf16.mxu0 %v7921_v60  ;;  %v7958_v58 = vld [vmem:[#allocation8 + $0x1e0] sm:$0xff]  }
 0x476   :  { %7446 = vmatprep.subr.bf16.mxu1 %v7922_v61  ;;  %v7959_v60 = vld [vmem:[#allocation8 + $0x120] sm:$0xff]   ;;  %v1936_v61 = vsub.s32 4, %v8427_v37 }
 0x478   :  { %7425 = vmatpush3.bf16.msra.mxu0 %v7923_v10  ;;  %v7960_v10 = vld [vmem:[#allocation8 + $0x1a0] sm:$0xff]  }
 0x479   :  { %7447 = vmatpush3.bf16.msra.mxu1 %v7924_v1  ;;  %7426 = vmatprep.subr.bf16.mxu0 %v7925_v2  ;;  %v7961_v1 = vld [vmem:[#allocation8 + $0x168] sm:$0xff]   ;;  %v1944_v2 = vsub.s32 6, %v8427_v37 }
 0x47a   :  { %7448 = vmatprep.subr.bf16.mxu1 %v7926_v5  ;;  %v7962_v5 = vld [vmem:[#allocation8 + $0x1e8] sm:$0xff]  }
 0x47c   :  { %7427 = vmatpush3.bf16.msra.mxu0 %v7927_v7  ;;  %v7963_v7 = vld [vmem:[#allocation8 + $0x128] sm:$0xff]  }
 0x47d   :  { %7449 = vmatpush3.bf16.msra.mxu1 %v7928_v28  ;;  %7428 = vmatprep.subr.bf16.mxu0 %v7929_v9  ;;  %v1937_v28 = vrot.slane %v8521_v18, %v1936_v61  ;;  %v7964_v9 = vld [vmem:[#allocation8 + $0x1a8] sm:$0xff]  }
 0x47e   :  { %7450 = vmatprep.subr.bf16.mxu1 %v7930_v11  ;;  %v7965_v11 = vld [vmem:[#allocation8 + $0x170] sm:$0xff]  }
 0x480   :  { %7429 = vmatpush3.bf16.msra.mxu0 %v7931_v63  ;;  %v1945_v63 = vrot.slane %v8521_v18, %v1944_v2  ;;  %v7972_v18 = vld [vmem:[#allocation8 + $0x1b8] sm:$0xff]  }
 0x481   :  { %7451 = vmatpush3.bf16.msra.mxu1 %v7932_v14  ;;  %7430 = vmatprep.subr.bf16.mxu0 %v7933_v15  ;;  %v7967_v14 = vld [vmem:[#allocation8 + $0x130] sm:$0xff]   ;;  %v7602_v15 = vadd.f32 %v8513_v0, %v1937_v28  ;;  %v7975_v0 = vld [vmem:[#allocation8 + $0x200] sm:$0xff]  }
 0x482   :  { %7452 = vmatprep.subr.bf16.mxu1 %v7934_v17  ;;  %v7969_v17 = vld [vmem:[#allocation8 + $0x178] sm:$0xff]   ;;  %v7604_v19 = vadd.f32 %v8515_v6, %v1945_v63 }
 0x483   :  { %v5218_v22 = vmax.f32 %v7602_v15, 0.0 }
 0x484   :  { %7431 = vmatpush3.bf16.msra.mxu0 %v7935_v21  ;;  %v7971_v21 = vld [vmem:[#allocation8 + $0x138] sm:$0xff]  }
 0x485   :  { %7453 = vmatpush3.bf16.msra.mxu1 %v7936_v24  ;;  %7432 = vmatprep.subr.bf16.mxu0 %v7937_v25  ;;  %v7973_v24 = vld [vmem:[#allocation8 + $0x240] sm:$0xff]   ;;  %v5220_v25 = vmax.f32 %v7604_v19, 0.0 }
 0x486   :  { %7454 = vmatprep.subr.bf16.mxu1 %v7938_v27  ;;  %v5234_v27 = vpack.c.bf16 %v5218_v22, %v5218_v22  ;;  %v8005_v22 = vld [vmem:[#allocation8 + $0x340] sm:$0xff]  }
 0x487   :  { %v5236_v6 = vpack.c.bf16 %v5220_v25, %v5220_v25  ;;  %v8007_v25 = vld [vmem:[#allocation8 + $0x300] sm:$0xff]  }
 0x488   :  { %7433 = vmatpush3.bf16.msra.mxu0 %v7939_v30  ;;  %v7978_v30 = vld [vmem:[#allocation8 + $0x2c8] sm:$0xff]  }
 0x489   :  { %7455 = vmatpush3.bf16.msra.mxu1 %v7940_v32  ;;  %7462 = vmatprep.subr.bf16.mxu0 %v7941_v33  ;;  %v7980_v32 = vld [vmem:[#allocation8 + $0x288] sm:$0xff]   ;;  %v7981_v33 = vld [vmem:[#allocation8 + $0x250] sm:$0xff]  }
 0x48a   :  { %7484 = vmatprep.subr.bf16.mxu1 %v7942_v34  ;;  %v7983_v34 = vld [vmem:[#allocation8 + $0x210] sm:$0xff]  }
 0x48b   :  { %6310 = vmatmul.mubr.bf16.vlgmr.msra.gmra.mrb[24].mxu0 %v5230_v36  ;;  %v7987_v36 = vld [vmem:[#allocation8 + $0x218] sm:$0xff]  }
 0x48c   :  { %6350 = vmatmul.mubr.bf16.vlgmr.msra.gmra.mrb[24].mxu1 %v5232_v41  ;;  %7463 = vmatpush3.bf16.msra.mxu0 %v7943_v23  ;;  %v7986_v23 = vld [vmem:[#allocation8 + $0x2d8] sm:$0xff]   ;;  %v7989_v41 = vld [vmem:[#allocation8 + $0x260] sm:$0xff]  }
 0x48d   :  { %6389 = vmatprep.mubr.bf16.mxu0 %v5235_v42  ;;  %7485 = vmatpush3.bf16.msra.mxu1 %v7944_v39  ;;  %v7988_v39 = vld [vmem:[#allocation8 + $0x298] sm:$0xff]   ;;  %v7991_v42 = vld [vmem:[#allocation8 + $0x220] sm:$0xff]  }
 0x48e   :  { %6429 = vmatprep.mubr.bf16.mxu1 %v5237_v44  ;;  %7464 = vmatprep.subr.bf16.mxu0 %v7945_v8  ;;  %v7990_v8 = vld [vmem:[#allocation8 + $0x2e0] sm:$0xff]   ;;  %v8557_v44 = vld [vmem:[#allocation13 + $0x8] sm:$0xff] }
 0x48f   :  { %7486 = vmatprep.subr.bf16.mxu1 %v7946_v43  ;;  %v7992_v43 = vld [vmem:[#allocation8 + $0x2a0] sm:$0xff]  }
 0x490   :  { %7465 = vmatpush3.bf16.msra.mxu0 %v7947_v45  ;;  %v7993_v45 = vld [vmem:[#allocation8 + $0x268] sm:$0xff]  }
 0x491   :  { %7487 = vmatpush3.bf16.msra.mxu1 %v7948_v46  ;;  %7466 = vmatprep.subr.bf16.mxu0 %v7949_v47  ;;  %v7994_v46 = vld [vmem:[#allocation8 + $0x2e8] sm:$0xff]   ;;  %v1957_v47 = vrot.slane %v8557_v44, %v8435_v40 }
 0x492   :  { %7488 = vmatprep.subr.bf16.mxu1 %v7950_v3  ;;  %v7995_v3 = vld [vmem:[#allocation8 + $0x228] sm:$0xff]  }
 0x494   :  { %7467 = vmatpush3.bf16.msra.mxu0 %v7951_v4  ;;  %v1953_v4 = vrot.slane %v8557_v44, %v8430_v38 }
 0x495   :  { %7489 = vmatpush3.bf16.msra.mxu1 %v7952_v48  ;;  %7468 = vmatprep.subr.bf16.mxu0 %v7953_v52  ;;  %v1965_v48 = vrot.slane %v8557_v44, %v8442_v51  ;;  %v7996_v52 = vld [vmem:[#allocation8 + $0x2a8] sm:$0xff]  }
 0x496   :  { %7490 = vmatprep.subr.bf16.mxu1 %v7954_v54  ;;  %v7997_v54 = vld [vmem:[#allocation8 + $0x270] sm:$0xff]  }
 0x498   :  { %7469 = vmatpush3.bf16.msra.mxu0 %v7955_v55 }
 0x499   :  { %7491 = vmatpush3.bf16.msra.mxu1 %v7956_v56  ;;  %7470 = vmatprep.subr.bf16.mxu0 %v7957_v57  ;;  %v1961_v56 = vrot.slane %v8557_v44, %v8449_v53  ;;  %v7998_v57 = vld [vmem:[#allocation8 + $0x2f0] sm:$0xff]  }
 0x49a   :  { %7492 = vmatprep.subr.bf16.mxu1 %v7958_v58 }
 0x49c   :  { %7471 = vmatpush3.bf16.msra.mxu0 %v7959_v60 }
 0x49d   :  { %7493 = vmatpush3.bf16.msra.mxu1 %v7960_v10  ;;  %7472 = vmatprep.subr.bf16.mxu0 %v7961_v1 }
 0x49e   :  { %7494 = vmatprep.subr.bf16.mxu1 %v7962_v5  ;;  %v7999_v5 = vld [vmem:[#allocation8 + $0x230] sm:$0xff]  }
 0x4a0   :  { %7473 = vmatpush3.bf16.msra.mxu0 %v7963_v7 }
 0x4a1   :  { %7495 = vmatpush3.bf16.msra.mxu1 %v7964_v9  ;;  %7474 = vmatprep.subr.bf16.mxu0 %v7965_v11  ;;  %v8000_v9 = vld [vmem:[#allocation8 + $0x2b0] sm:$0xff]   ;;  %v8001_v11 = vld [vmem:[#allocation8 + $0x278] sm:$0xff]  }
 0x4a2   :  { %7496 = vmatprep.subr.bf16.mxu1 %v7966_v13 }
 0x4a4   :  { %7475 = vmatpush3.bf16.msra.mxu0 %v7967_v14  ;;  %v8002_v14 = vld [vmem:[#allocation8 + $0x2f8] sm:$0xff]  }
 0x4a5   :  { %7497 = vmatpush3.bf16.msra.mxu1 %v7968_v16  ;;  %7476 = vmatprep.subr.bf16.mxu0 %v7969_v17  ;;  %v8003_v17 = vld [vmem:[#allocation8 + $0x238] sm:$0xff]  }
 0x4a6   :  { %7498 = vmatprep.subr.bf16.mxu1 %v7970_v20 }
 0x4a8   :  { %7477 = vmatpush3.bf16.msra.mxu0 %v7971_v21  ;;  %v8004_v21 = vld [vmem:[#allocation8 + $0x2b8] sm:$0xff]  }
 0x4a9   :  { %7499 = vmatpush3.bf16.msra.mxu1 %v7972_v18  ;;  %7506 = vmatprep.subr.bf16.mxu0 %v7973_v24  ;;  %v8006_v24 = vld [vmem:[#allocation8 + $0x3c0] sm:$0xff]  }
 0x4aa   :  { %7528 = vmatprep.subr.bf16.mxu1 %v7974_v26 }
 0x4ab   :  { %6390 = vmatmul.mubr.bf16.vlgmr.msra.gmra.mrb[28].mxu0 %v5234_v27  ;;  %v8009_v27 = vld [vmem:[#allocation8 + $0x348] sm:$0xff]  }
 0x4ac   :  { %6430 = vmatmul.mubr.bf16.vlgmr.msra.gmra.mrb[28].mxu1 %v5236_v6  ;;  %7507 = vmatpush3.bf16.msra.mxu0 %v7975_v0  ;;  %v8008_v0 = vld [vmem:[#allocation8 + $0x380] sm:$0xff]   ;;  %v8011_v6 = vld [vmem:[#allocation8 + $0x308] sm:$0xff]  }
 0x4ad   :  { %7529 = vmatpush3.bf16.msra.mxu1 %v7976_v50  ;;  %7508 = vmatprep.subr.bf16.mxu0 %v7977_v29  ;;  %v8010_v29 = vld [vmem:[#allocation8 + $0x3c8] sm:$0xff]  }
 0x4ae   :  { %7530 = vmatprep.subr.bf16.mxu1 %v7978_v30  ;;  %v8012_v30 = vld [vmem:[#allocation8 + $0x388] sm:$0xff]  }
 0x4b0   :  { %7509 = vmatpush3.bf16.msra.mxu0 %v7979_v31  ;;  %v8013_v31 = vld [vmem:[#allocation8 + $0x350] sm:$0xff]  }
 0x4b1   :  { %7531 = vmatpush3.bf16.msra.mxu1 %v7980_v32  ;;  %7510 = vmatprep.subr.bf16.mxu0 %v7981_v33  ;;  %v8014_v32 = vld [vmem:[#allocation8 + $0x3d0] sm:$0xff]  }
 0x4b2   :  { %7532 = vmatprep.subr.bf16.mxu1 %v7982_v62  ;;  %v8015_v33 = vld [vmem:[#allocation8 + $0x310] sm:$0xff]  }
 0x4b3   :  { %v8016_v62 = vld [vmem:[#allocation8 + $0x390] sm:$0xff]  }
 0x4b4   :  { %7511 = vmatpush3.bf16.msra.mxu0 %v7983_v34  ;;  %v8017_v34 = vld [vmem:[#allocation8 + $0x358] sm:$0xff]  }
 0x4b5   :  { %7533 = vmatpush3.bf16.msra.mxu1 %v7984_v59  ;;  %7512 = vmatprep.subr.bf16.mxu0 %v7985_v35  ;;  %v8018_v59 = vld [vmem:[#allocation8 + $0x3d8] sm:$0xff]  }
 0x4b6   :  { %7534 = vmatprep.subr.bf16.mxu1 %v7986_v23  ;;  %v8019_v35 = vld [vmem:[#allocation8 + $0x318] sm:$0xff]  }
 0x4b7   :  { %v8020_v23 = vld [vmem:[#allocation8 + $0x398] sm:$0xff]  }
 0x4b8   :  { %7513 = vmatpush3.bf16.msra.mxu0 %v7987_v36  ;;  %v8021_v36 = vld [vmem:[#allocation8 + $0x360] sm:$0xff]  }
 0x4b9   :  { %7535 = vmatpush3.bf16.msra.mxu1 %v7988_v39  ;;  %7514 = vmatprep.subr.bf16.mxu0 %v7989_v41  ;;  %v8022_v39 = vld [vmem:[#allocation8 + $0x3e0] sm:$0xff]  }
 0x4ba   :  { %7536 = vmatprep.subr.bf16.mxu1 %v7990_v8  ;;  %v8023_v41 = vld [vmem:[#allocation8 + $0x320] sm:$0xff]  }
 0x4bb   :  { %v8024_v8 = vld [vmem:[#allocation8 + $0x3a0] sm:$0xff]  }
 0x4bc   :  { %7515 = vmatpush3.bf16.msra.mxu0 %v7991_v42  ;;  %v8025_v42 = vld [vmem:[#allocation8 + $0x368] sm:$0xff]  }
 0x4bd   :  { %7537 = vmatpush3.bf16.msra.mxu1 %v7992_v43  ;;  %7516 = vmatprep.subr.bf16.mxu0 %v7993_v45  ;;  %v8026_v43 = vld [vmem:[#allocation8 + $0x3e8] sm:$0xff]  }
 0x4be   :  { %v4961_v55 = vpop.f32.mrb[16].mxu0  ;;  %7538 = vmatprep.subr.bf16.mxu1 %v7994_v46  ;;  %v8027_v45 = vld [vmem:[#allocation8 + $0x328] sm:$0xff]  }
 0x4bf   :  { %v5043_v58 = vpop.f32.mrb[16].mxu1  ;;  %v4963_v60 = vpop.f32.mrb[17].mxu0  ;;  %v7606_v38 = vadd.f32 %v4961_v55, %v1953_v4  ;;  %v8028_v46 = vld [vmem:[#allocation8 + $0x3a8] sm:$0xff]   ;;  %v8031_v4 = vld [vmem:[#allocation8 + $0x330] sm:$0xff]   ;;  %v8035_v55 = vld [vmem:[#allocation8 + $0x338] sm:$0xff]  }
 0x4c0   :  { %v7607_v40 = vadd.f32 %v4963_v60, %v1957_v47  ;;  %v5045_v10 = vpop.f32.mrb[17].mxu1  ;;  %v4965_v1 = vpop.f32.mrb[18].mxu0  ;;  %7517 = vmatpush3.bf16.msra.mxu0 %v7995_v3  ;;  %v7608_v63 = vadd.f32 %v5043_v58, %v1961_v56  ;;  %v8029_v47 = vld [vmem:[#allocation8 + $0x370] sm:$0xff]   ;;  %v8036_v56 = vld [vmem:[#allocation8 + $0x3b8] sm:$0xff]   ;;  %v1977_v58 = vrot.slane %v8557_v44, %v1944_v2  ;;  %v1973_v60 = vrot.slane %v8557_v44, %v1940_v49 }
 0x4c1   :  { %v7609_v7 = vadd.f32 %v5045_v10, %v1965_v48  ;;  %v5047_v28 = vpop.f32.mrb[18].mxu1  ;;  %7539 = vmatpush3.bf16.msra.mxu1 %v7996_v52  ;;  %v4966_v51 = vpop.f32.mrb[19].mxu0  ;;  %7518 = vmatprep.subr.bf16.mxu0 %v7997_v54  ;;  %v5222_v19 = vmax.f32 %v7606_v38, 0.0  ;;  %v8030_v3 = vld [vmem:[#allocation8 + $0x3f0] sm:$0xff]   ;;  %v8033_v52 = vld [vmem:[#allocation8 + $0x378] sm:$0xff]  }
 0x4c2   :  { %v5223_v13 = vmax.f32 %v7607_v40, 0.0  ;;  %v5048_v53 = vpop.f32.mrb[19].mxu1  ;;  %7540 = vmatprep.subr.bf16.mxu1 %v7998_v57  ;;  %v5224_v18 = vmax.f32 %v7608_v63, 0.0  ;;  %v8032_v48 = vld [vmem:[#allocation8 + $0x3b0] sm:$0xff]   ;;  %v8034_v54 = vld [vmem:[#allocation8 + $0x3f8] sm:$0xff]   ;;  %v1969_v57 = vrot.slane %v8557_v44, %v1936_v61  ;;  %v1981_v40 = vrot.slane %v8557_v44, %v1948_v12 }
 0x4c3   :  { %v5225_v15 = vmax.f32 %v7609_v7, 0.0  ;;  %v5238_v26 = vpack.c.bf16 %v5222_v19, %v5222_v19  ;;  %v7289_v19 = vld [vmem:[#allocation14] ss:$0 sm:$0xff] }
 0x4c4   :  { %v5239_v16 = vpack.c.bf16 %v5223_v13, %v5223_v13  ;;  %7519 = vmatpush3.bf16.msra.mxu0 %v7999_v5  ;;  %v5240_v50 = vpack.c.bf16 %v5224_v18, %v5224_v18 }
 0x4c5   :  { %v5241_v20 = vpack.c.bf16 %v5225_v15, %v5225_v15  ;;  %7541 = vmatpush3.bf16.msra.mxu1 %v8000_v9  ;;  %7520 = vmatprep.subr.bf16.mxu0 %v8001_v11 }
 0x4c6   :  { %6469 = vmatprep.mubr.bf16.mxu0 %v5239_v16  ;;  %7542 = vmatprep.subr.bf16.mxu1 %v8002_v14 }
 0x4c7   :  { %6509 = vmatprep.mubr.bf16.mxu1 %v5241_v20 }
 0x4c8   :  { %7521 = vmatpush3.bf16.msra.mxu0 %v8003_v17 }
 0x4c9   :  { %7543 = vmatpush3.bf16.msra.mxu1 %v8004_v21  ;;  %7550 = vmatprep.subr.bf16.mxu0 %v8005_v22 }
 0x4ca   :  { %7572 = vmatprep.subr.bf16.mxu1 %v8006_v24 }
 0x4cb   :  { %6470 = vmatmul.mubr.bf16.vlgmr.msra.gmra.mrb[32].mxu0 %v5238_v26 }
 0x4cc   :  { %6510 = vmatmul.mubr.bf16.vlgmr.msra.gmra.mrb[32].mxu1 %v5240_v50  ;;  %7551 = vmatpush3.bf16.msra.mxu0 %v8007_v25 }
 0x4cd   :  { %7573 = vmatpush3.bf16.msra.mxu1 %v8008_v0  ;;  %7552 = vmatprep.subr.bf16.mxu0 %v8009_v27 }
 0x4ce   :  { %7574 = vmatprep.subr.bf16.mxu1 %v8010_v29 }
 0x4d0   :  { %7553 = vmatpush3.bf16.msra.mxu0 %v8011_v6 }
 0x4d1   :  { %7575 = vmatpush3.bf16.msra.mxu1 %v8012_v30  ;;  %7554 = vmatprep.subr.bf16.mxu0 %v8013_v31 }
 0x4d2   :  { %7576 = vmatprep.subr.bf16.mxu1 %v8014_v32 }
 0x4d4   :  { %7555 = vmatpush3.bf16.msra.mxu0 %v8015_v33 }
 0x4d5   :  { %7577 = vmatpush3.bf16.msra.mxu1 %v8016_v62  ;;  %7556 = vmatprep.subr.bf16.mxu0 %v8017_v34 }
 0x4d6   :  { %7578 = vmatprep.subr.bf16.mxu1 %v8018_v59 }
 0x4d8   :  { %7557 = vmatpush3.bf16.msra.mxu0 %v8019_v35 }
 0x4d9   :  { %7579 = vmatpush3.bf16.msra.mxu1 %v8020_v23  ;;  %7558 = vmatprep.subr.bf16.mxu0 %v8021_v36 }
 0x4da   :  { %7580 = vmatprep.subr.bf16.mxu1 %v8022_v39 }
 0x4dc   :  { %7559 = vmatpush3.bf16.msra.mxu0 %v8023_v41 }
 0x4dd   :  { %7581 = vmatpush3.bf16.msra.mxu1 %v8024_v8  ;;  %7560 = vmatprep.subr.bf16.mxu0 %v8025_v42 }
 0x4de   :  { %7582 = vmatprep.subr.bf16.mxu1 %v8026_v43 }
 0x4e0   :  { %7561 = vmatpush3.bf16.msra.mxu0 %v8027_v45 }
 0x4e1   :  { %7583 = vmatpush3.bf16.msra.mxu1 %v8028_v46  ;;  %7562 = vmatprep.subr.bf16.mxu0 %v8029_v47 }
 0x4e2   :  { %7584 = vmatprep.subr.bf16.mxu1 %v8030_v3 }
 0x4e4   :  { %7563 = vmatpush3.bf16.msra.mxu0 %v8031_v4 }
 0x4e5   :  { %7585 = vmatpush3.bf16.msra.mxu1 %v8032_v48  ;;  %7564 = vmatprep.subr.bf16.mxu0 %v8033_v52 }
 0x4e6   :  { %7586 = vmatprep.subr.bf16.mxu1 %v8034_v54 }
 0x4e8   :  { %7565 = vmatpush3.bf16.msra.mxu0 %v8035_v55 }
 0x4e9   :  { %7587 = vmatpush3.bf16.msra.mxu1 %v8036_v56 }
 0x53e   :  { %v5125_v10 = vpop.f32.mrb[20].mxu0 }
 0x53f   :  { %v7610_v1 = vadd.f32 %v5125_v10, %v1969_v57  ;;  %v5207_v5 = vpop.f32.mrb[20].mxu1  ;;  %v5127_v38 = vpop.f32.mrb[21].mxu0 }
 0x540   :  { %v7612_v7 = vadd.f32 %v5207_v5, %v1977_v58  ;;  %v7611_v28 = vadd.f32 %v5127_v38, %v1973_v60  ;;  %v5209_v51 = vpop.f32.mrb[21].mxu1  ;;  %v5129_v61 = vpop.f32.mrb[22].mxu0 }
 0x541   :  { %v5226_v9 = vmax.f32 %v7610_v1, 0.0  ;;  %v7613_v11 = vadd.f32 %v5209_v51, %v1981_v40  ;;  %v5211_v63 = vpop.f32.mrb[22].mxu1  ;;  %v5130_v2 = vpop.f32.mrb[23].mxu0 }
 0x542   :  { %v5228_v13 = vmax.f32 %v7612_v7, 0.0  ;;  %v5227_v53 = vmax.f32 %v7611_v28, 0.0  ;;  %v5212_v14 = vpop.f32.mrb[23].mxu1 }
 0x543   :  { %v5229_v49 = vmax.f32 %v7613_v11, 0.0  ;;  %v5242_v37 = vpack.c.bf16 %v5226_v9, %v5226_v9 }
 0x544   :  { %v5243_v15 = vpack.c.bf16 %v5227_v53, %v5227_v53  ;;  %v5244_v12 = vpack.c.bf16 %v5228_v13, %v5228_v13 }
 0x545   :  { %v5245_v16 = vpack.c.bf16 %v5229_v49, %v5229_v49 }
 0x546   :  { %6549 = vmatprep.mubr.bf16.mxu0 %v5243_v15 }
 0x547   :  { %6589 = vmatprep.mubr.bf16.mxu1 %v5245_v16  ;;  %6550 = vmatmul.mubr.bf16.vlgmr.msra.gmra.mrb[36].mxu0 %v5242_v37 }
 0x548   :  { %6590 = vmatmul.mubr.bf16.vlgmr.msra.gmra.mrb[36].mxu1 %v5244_v12 }
 0x55e   :  { %v7434_v44 = vpop.f32.mrb[24].mxu0 }
 0x55f   :  { %v7456_v17 = vpop.f32.mrb[24].mxu1  ;;  %v7435_v20 = vpop.f32.mrb[25].mxu0 }
 0x560   :  { %v7436_v21 = vadd.f32 %v7435_v20, %v7434_v44  ;;  %v7457_v22 = vpop.f32.mrb[25].mxu1  ;;  %v7437_v18 = vpop.f32.mrb[26].mxu0 }
 0x561   :  { %v7458_v24 = vadd.f32 %v7457_v22, %v7456_v17  ;;  %v7459_v25 = vpop.f32.mrb[26].mxu1  ;;  %v7438_v26 = vpop.f32.mrb[27].mxu0 }
 0x562   :  { %v6312_v0 = vadd.f32 %v7436_v21, %v7289_v19  ;;  %v7460_v27 = vpop.f32.mrb[27].mxu1 }
 0x564   :  { %v6352_v50 = vadd.f32 %v7458_v24, %v6312_v0 }
 0x57e   :  { %v7478_v29 = vpop.f32.mrb[28].mxu0 }
 0x57f   :  { %v7500_v6 = vpop.f32.mrb[28].mxu1  ;;  %v7479_v30 = vpop.f32.mrb[29].mxu0 }
 0x580   :  { %v7480_v31 = vadd.f32 %v7479_v30, %v7478_v29  ;;  %v7501_v32 = vpop.f32.mrb[29].mxu1  ;;  %v7481_v33 = vpop.f32.mrb[30].mxu0 }
 0x581   :  { %v7502_v62 = vadd.f32 %v7501_v32, %v7500_v6  ;;  %v7503_v34 = vpop.f32.mrb[30].mxu1  ;;  %v7482_v59 = vpop.f32.mrb[31].mxu0 }
 0x582   :  { %v6392_v35 = vadd.f32 %v7480_v31, %v6352_v50  ;;  %v7504_v23 = vpop.f32.mrb[31].mxu1 }
 0x584   :  { %v6432_v36 = vadd.f32 %v7502_v62, %v6392_v35 }
 0x59e   :  { %v7522_v39 = vpop.f32.mrb[32].mxu0 }
 0x59f   :  { %v7544_v41 = vpop.f32.mrb[32].mxu1  ;;  %v7523_v8 = vpop.f32.mrb[33].mxu0 }
 0x5a0   :  { %v7524_v42 = vadd.f32 %v7523_v8, %v7522_v39  ;;  %v7545_v43 = vpop.f32.mrb[33].mxu1  ;;  %v7525_v45 = vpop.f32.mrb[34].mxu0 }
 0x5a1   :  { %v7546_v46 = vadd.f32 %v7545_v43, %v7544_v41  ;;  %v7547_v47 = vpop.f32.mrb[34].mxu1  ;;  %v7526_v3 = vpop.f32.mrb[35].mxu0 }
 0x5a2   :  { %v6472_v4 = vadd.f32 %v7524_v42, %v6432_v36  ;;  %v7548_v48 = vpop.f32.mrb[35].mxu1 }
 0x5a4   :  { %v6512_v52 = vadd.f32 %v7546_v46, %v6472_v4 }
 0x61a   :  { %v7566_v54 = vpop.f32.mrb[36].mxu0 }
 0x61b   :  { %v7588_v55 = vpop.f32.mrb[36].mxu1  ;;  %v7567_v56 = vpop.f32.mrb[37].mxu0 }
 0x61c   :  { %v7568_v57 = vadd.f32 %v7567_v56, %v7566_v54  ;;  %v7589_v58 = vpop.f32.mrb[37].mxu1  ;;  %v7569_v60 = vpop.f32.mrb[38].mxu0 }
 0x61d   :  { %v7590_v40 = vadd.f32 %v7589_v58, %v7588_v55  ;;  %v7591_v10 = vpop.f32.mrb[38].mxu1  ;;  %v7570_v1 = vpop.f32.mrb[39].mxu0 }
 0x61e   :  { %v6552_v5 = vadd.f32 %v7568_v57, %v6512_v52  ;;  %v7592_v38 = vpop.f32.mrb[39].mxu1 }
 0x620   :  { %v6592_v7 = vadd.f32 %v7590_v40, %v6552_v5 }
 0x622   :  { %6597 = vst [vmem:[#allocation16] sm:$0xff] %v6592_v7 }
 0x623   :  { %8224 = shalt.err (!%p8221_p12)
}
 0x624   :  { %s8225_s23 = scalar_lea.hbm %s8600_s9, 128 }
 0x625   :  { %p8226_p13 = scmp.ne.s32.totalorder %s8600_s9, %s8225_s23  ;;  %p8229_p0 = scmp.lt.u32.totalorder %s8225_s23, %s8600_s9 }
 0x627   :  { %p8231_p1 = pnand %p8229_p0, %p8226_p13 }
 0x629   :  { %8234 = shalt.err (!%p8231_p1)
}
 0x62a   :  { %6607 = dma.vmem_to_hbm [thread:$0]  %s6605_s3, 128, %s8600_s9, [#allocation4]  }
 0x62b   :  { %8245 = dma.done.wait [#allocation4], 128  }
 0x62c   :  { %8246 = vsyncadd [#allocation4], 4294967168 }
 0x62d   :  { %6611 = vsyncpa [#allocation3], 1 }
 0x62e   :  { %6612 = vsyncpa [#allocation6], 1 }
 0x62f   :  { %6613 = vsyncpa [#allocation9], 1 }
 0x630   :  { %6614 = vsyncpa [#allocation12], 1 }
 0x631   :  { %6615 = vsyncpa [#allocation15], 1 }
 0x632   :  { %6616 = vsyncpa [#allocation4], 1 }

</bundles_post_ra>
